<compile_context>
chip_gen: v7x
topology: tpu7x:2x2x1
jax: 0.10.0
libtpu: 0.0.40
codegen_flags: <defaults>
</compile_context>

<pallas_src>
import jax
import jax.numpy as jnp
from jax.experimental import pallas as pl
from jax.experimental.pallas import tpu as pltpu

H1 = 5      # lstm1 hidden size
H2 = 1      # lstm2 hidden size
HP1 = 8     # lstm1 hidden padded to a full sublane group

# Row offsets inside the packed weight slab (all 8-row aligned).
R_WIH1 = 0                       # (HP1, 4B)   lstm1 input weights (lane-packed)
R_B1   = R_WIH1 + HP1            # (HP1, 4B)   lstm1 bias (bih+bhh, lane-packed)
R_WHH1 = R_B1 + HP1              # H1 blocks of (HP1, 4B)  lstm1 recurrent cols
R_WIH2 = R_WHH1 + H1 * HP1       # H1 blocks of (8, 4B), first (4, B) used
R_WHH2 = R_WIH2 + H1 * HP1       # (8, 4B), first (4, B) used
R_B2   = R_WHH2 + HP1            # (8, 4B), first (4, B) used
N_ROWS = R_B2 + HP1              # 112


def seq_kernel(x_ref, w_ref, out_ref):
    total, B = out_ref.shape           # B = batch (lanes)
    T = x_ref.shape[0]
    future = total - T
    LW = 4 * B                         # lane width of the packed gate slab

    # ---- hoist every weight/bias load; slices of W are free vreg selects ----
    W = w_ref[...]                                              # (112, 4B)
    wih1 = W[R_WIH1:R_WIH1 + HP1, :]                            # (8, 4B)
    b1   = W[R_B1:R_B1 + HP1, :]                                # (8, 4B)
    whh1 = [W[R_WHH1 + k * HP1:R_WHH1 + (k + 1) * HP1, :]       # (8, 4B) each
            for k in range(H1)]
    wih2 = [W[R_WIH2 + k * HP1:R_WIH2 + k * HP1 + 4, :B]        # (4, B) each
            for k in range(H1)]
    whh2 = W[R_WHH2:R_WHH2 + 4, :B]                             # (4, B)
    b2   = W[R_B2:R_B2 + 4, :B]                                 # (4, B)
    x = x_ref[...]                                              # (T, 4B), pre-tiled

    # Padded hidden rows (5..7) stay exactly 0 forever: their weight/bias rows
    # are zero, c1/h1 start at zero, and the MAC loops only read rows 0..4.
    def cell1(xin4, h1t, c1):
        # xin4: (1, 4B) input tiled across the 4 gate lane-blocks.
        g = wih1 * xin4 + b1                                    # (8, 4B)
        for k in range(H1):
            g = g + whh1[k] * h1t[k:k + 1, :]
        t = jnp.tanh(g)                                         # 1 EUP push
        u = 1.0 + t                                             # 1+tanh(0.5 z)
        i1 = u[:, 0:B]
        f1 = u[:, B:2 * B]
        gg = t[:, 2 * B:3 * B]
        o1 = u[:, 3 * B:4 * B]
        c1n = 0.5 * (f1 * c1 + i1 * gg)                         # (8, B)
        h1n = 0.5 * (o1 * jnp.tanh(c1n))                        # (8, B)
        h1t_n = jnp.concatenate([h1n] * 4, axis=1)              # (8, 4B) tiled
        return h1t_n, h1n, c1n

    def cell2(h1n, h2, c2):
        g = b2 + whh2 * h2                                      # (4, B)
        for k in range(H1):
            g = g + wih2[k] * h1n[k:k + 1, :]
        t = jnp.tanh(g)                                         # 1 EUP push
        u = 1.0 + t
        i2 = u[0:1, :]
        f2 = u[1:2, :]
        gg = t[2:3, :]
        o2 = u[3:4, :]
        c2n = 0.5 * (f2 * c2 + i2 * gg)                         # (1, B)
        h2n = 0.5 * (o2 * jnp.tanh(c2n))                        # (1, B)
        return h2n, c2n

    # Loop-carried states live in vregs (no VMEM scratch round-trips).
    h1t = jnp.zeros((HP1, LW), jnp.float32)    # lstm1 hidden, lane-tiled x4
    c1 = jnp.zeros((HP1, B), jnp.float32)
    h2 = jnp.zeros((H2, B), jnp.float32)
    c2 = jnp.zeros((H2, B), jnp.float32)

    # Static trip counts -> fully unrolled; each result is stored at its static
    # sublane offset as soon as it is produced (cheap masked vst, hidden under
    # the tanh latency of the recurrence).
    for t_idx in range(T):
        h1t, h1n, c1 = cell1(x[t_idx:t_idx + 1, :], h1t, c1)
        h2, c2 = cell2(h1n, h2, c2)
        out_ref[pl.ds(t_idx, 1), :] = h2
    for s in range(future):                    # feed prediction back as input
        xin4 = jnp.concatenate([h2] * 4, axis=1)                # (1, 4B)
        h1t, h1n, c1 = cell1(xin4, h1t, c1)
        h2, c2 = cell2(h1n, h2, c2)
        out_ref[pl.ds(T + s, 1), :] = h2


def _pack_params(p, B):
    """Pre-scale (sigmoid-via-tanh), pre-broadcast over B lanes / 4 gate lane
    blocks, pad, and concatenate all weights into one (N_ROWS, 4*B) slab."""
    scale = jnp.array([0.5, 0.5, 1.0, 0.5], jnp.float32)        # gates i,f,g,o

    def rep_lanes(m):        # (4, HP1) [gate, hidden] -> (HP1, 4*B) lane-packed
        return jnp.repeat(m.T, B, axis=1)

    def pad_blk(m):          # (4, B) -> (8, 4*B), zeros elsewhere
        return jnp.pad(m, ((0, HP1 - 4), (0, 3 * B)))

    w1 = p["wih1"].astype(jnp.float32).reshape(4, H1) * scale[:, None]
    w1 = jnp.pad(w1, ((0, 0), (0, HP1 - H1)))
    wih1_pb = rep_lanes(w1)                                             # (8,4B)

    bias1 = (p["bih1"] + p["bhh1"]).astype(jnp.float32).reshape(4, H1)
    bias1 = jnp.pad(bias1 * scale[:, None], ((0, 0), (0, HP1 - H1)))
    b1_pb = rep_lanes(bias1)                                            # (8,4B)

    r1 = p["whh1"].astype(jnp.float32).reshape(4, H1, H1) * scale[:, None, None]
    r1 = jnp.pad(r1, ((0, 0), (0, HP1 - H1), (0, 0)))                   # (4,8,5)
    whh1_stack = jnp.concatenate(
        [rep_lanes(r1[:, :, k]) for k in range(H1)], axis=0)            # (40,4B)

    w2 = p["wih2"].astype(jnp.float32) * scale[:, None]                 # (4,5)
    wih2_stack = jnp.concatenate(
        [pad_blk(jnp.repeat(w2[:, k:k + 1], B, axis=1)) for k in range(H1)],
        axis=0)                                                         # (40,4B)

    r2 = p["whh2"].astype(jnp.float32) * scale[:, None]                 # (4,1)
    whh2_blk = pad_blk(jnp.repeat(r2, B, axis=1))                       # (8,4B)

    bias2 = ((p["bih2"] + p["bhh2"]).astype(jnp.float32) * scale).reshape(4, 1)
    b2_blk = pad_blk(jnp.repeat(bias2, B, axis=1))                      # (8,4B)

    slab = jnp.concatenate(
        [wih1_pb, b1_pb, whh1_stack, wih2_stack, whh2_blk, b2_blk], axis=0)
    assert slab.shape == (N_ROWS, 4 * B), slab.shape
    return slab


def init_params(key):
    # nn.LSTMCell default init: U(-1/sqrt(hidden), 1/sqrt(hidden)).
    ks = jax.random.split(key, 8)
    k1 = 1.0 / jnp.sqrt(jnp.float32(H1))
    k2 = 1.0 / jnp.sqrt(jnp.float32(H2))
    u = lambda k, s, b: jax.random.uniform(k, s, jnp.float32, -b, b)
    return dict(
        wih1=u(ks[0], (4 * H1, 1), k1), whh1=u(ks[1], (4 * H1, H1), k1),
        bih1=u(ks[2], (4 * H1,), k1),   bhh1=u(ks[3], (4 * H1,), k1),
        wih2=u(ks[4], (4 * H2, H1), k2), whh2=u(ks[5], (4 * H2, H2), k2),
        bih2=u(ks[6], (4 * H2,), k2),   bhh2=u(ks[7], (4 * H2,), k2),
    )


def sequence_forward(x, p, future=0):
    """x: (B, T) float32 -> (B, T + future) float32 (matches PyTorch)."""
    B, T = x.shape
    assert 4 * B <= 128, "gate lane-packing assumes 4*B fits one vreg row"

    # Observed inputs pre-tiled across the 4 gate lane blocks: (T, 4*B).
    x_tiled = jnp.tile(x.T.astype(jnp.float32), (1, 4))
    w_slab = _pack_params(p, B)                                  # (112, 4*B)

    vmem = pl.BlockSpec(memory_space=pltpu.MemorySpace.VMEM)
    out = pl.pallas_call(
        seq_kernel,
        out_shape=jax.ShapeDtypeStruct((T + future, B), jnp.float32),
        in_specs=[vmem, vmem],          # 2 DMAs total: input + packed weights
        out_specs=vmem,
    )(x_tiled, w_slab)
    return out.T                                                 # (B, T+future)


def sequence_ref(x, p, future=0):
    """Pure-JAX reference identical to the PyTorch forward."""
    B, T = x.shape

    def cell(xt, h, c, wih, whh, bih, bhh, hid):
        g = xt @ wih.T + bih + h @ whh.T + bhh
        i = jax.nn.sigmoid(g[:, :hid])
        f = jax.nn.sigmoid(g[:, hid:2 * hid])
        gg = jnp.tanh(g[:, 2 * hid:3 * hid])
        o = jax.nn.sigmoid(g[:, 3 * hid:])
        c = f * c + i * gg
        return o * jnp.tanh(c), c

    h1 = jnp.zeros((B, H1), jnp.float32); c1 = jnp.zeros((B, H1), jnp.float32)
    h2 = jnp.zeros((B, H2), jnp.float32); c2 = jnp.zeros((B, H2), jnp.float32)
    outs = []
    for t in range(T):
        xt = x[:, t:t + 1]
        h1, c1 = cell(xt, h1, c1, p["wih1"], p["whh1"], p["bih1"], p["bhh1"], H1)
        h2, c2 = cell(h1, h2, c2, p["wih2"], p["whh2"], p["bih2"], p["bhh2"], H2)
        outs.append(h2)
    for _ in range(future):
        h1, c1 = cell(h2, h1, c1, p["wih1"], p["whh1"], p["bih1"], p["bhh1"], H1)
        h2, c2 = cell(h1, h2, c2, p["wih2"], p["whh2"], p["bih2"], p["bhh2"], H2)
        outs.append(h2)
    return jnp.concatenate(outs, axis=1)                  # (B, T + future)


if __name__ == "__main__":
    key = jax.random.PRNGKey(0)
    kp, kx = jax.random.split(key)
    params = init_params(kp)

    B, T, FUTURE = 4, 8, 4
    x = jax.random.normal(kx, (B, T), jnp.float32)

    out = sequence_forward(x, params, future=FUTURE)
    out = jax.block_until_ready(out)

    ref = sequence_ref(x, params, future=FUTURE)
    assert out.shape == (B, T + FUTURE), out.shape
    assert jnp.allclose(out, ref, atol=5e-5, rtol=5e-5), (
        float(jnp.max(jnp.abs(out - ref))))
    print("KERNEL_OK")
</pallas_src>

<mosaic_0001>
module attributes {stable_mosaic.version = 11 : i64} {
  func.func @seq_kernel(%arg0: memref<8x16xf32, #tpu.memory_space<vmem>>, %arg1: memref<112x16xf32, #tpu.memory_space<vmem>>, %arg2: memref<12x4xf32, #tpu.memory_space<vmem>>) attributes {dimension_semantics = [], scalar_prefetch = 0 : i64, scratch_operands = 0 : i64, tpu.core_type = #tpu.core_type<tc>} {
    %c0 = arith.constant 0 : index
    %c0_0 = arith.constant 0 : index
    %0 = vector.load %arg1[%c0, %c0_0] : memref<112x16xf32, #tpu.memory_space<vmem>>, vector<112x16xf32>
    %1 = vector.extract_strided_slice %0 {offsets = [0, 0], sizes = [8, 16], strides = [1, 1]} : vector<112x16xf32> to vector<8x16xf32>
    %2 = vector.extract_strided_slice %0 {offsets = [8, 0], sizes = [8, 16], strides = [1, 1]} : vector<112x16xf32> to vector<8x16xf32>
    %3 = vector.extract_strided_slice %0 {offsets = [16, 0], sizes = [8, 16], strides = [1, 1]} : vector<112x16xf32> to vector<8x16xf32>
    %4 = vector.extract_strided_slice %0 {offsets = [24, 0], sizes = [8, 16], strides = [1, 1]} : vector<112x16xf32> to vector<8x16xf32>
    %5 = vector.extract_strided_slice %0 {offsets = [32, 0], sizes = [8, 16], strides = [1, 1]} : vector<112x16xf32> to vector<8x16xf32>
    %6 = vector.extract_strided_slice %0 {offsets = [40, 0], sizes = [8, 16], strides = [1, 1]} : vector<112x16xf32> to vector<8x16xf32>
    %7 = vector.extract_strided_slice %0 {offsets = [48, 0], sizes = [8, 16], strides = [1, 1]} : vector<112x16xf32> to vector<8x16xf32>
    %8 = vector.extract_strided_slice %0 {offsets = [56, 0], sizes = [4, 4], strides = [1, 1]} : vector<112x16xf32> to vector<4x4xf32>
    %9 = vector.extract_strided_slice %0 {offsets = [64, 0], sizes = [4, 4], strides = [1, 1]} : vector<112x16xf32> to vector<4x4xf32>
    %10 = vector.extract_strided_slice %0 {offsets = [72, 0], sizes = [4, 4], strides = [1, 1]} : vector<112x16xf32> to vector<4x4xf32>
    %11 = vector.extract_strided_slice %0 {offsets = [80, 0], sizes = [4, 4], strides = [1, 1]} : vector<112x16xf32> to vector<4x4xf32>
    %12 = vector.extract_strided_slice %0 {offsets = [88, 0], sizes = [4, 4], strides = [1, 1]} : vector<112x16xf32> to vector<4x4xf32>
    %13 = vector.extract_strided_slice %0 {offsets = [96, 0], sizes = [4, 4], strides = [1, 1]} : vector<112x16xf32> to vector<4x4xf32>
    %14 = vector.extract_strided_slice %0 {offsets = [104, 0], sizes = [4, 4], strides = [1, 1]} : vector<112x16xf32> to vector<4x4xf32>
    %c0_1 = arith.constant 0 : index
    %c0_2 = arith.constant 0 : index
    %15 = vector.load %arg0[%c0_1, %c0_2] : memref<8x16xf32, #tpu.memory_space<vmem>>, vector<8x16xf32>
    %cst = arith.constant 0.000000e+00 : f32
    %16 = vector.broadcast %cst : f32 to vector<8x16xf32>
    %cst_3 = arith.constant 0.000000e+00 : f32
    %17 = vector.broadcast %cst_3 : f32 to vector<8x4xf32>
    %cst_4 = arith.constant 0.000000e+00 : f32
    %18 = vector.broadcast %cst_4 : f32 to vector<1x4xf32>
    %cst_5 = arith.constant 0.000000e+00 : f32
    %19 = vector.broadcast %cst_5 : f32 to vector<1x4xf32>
    %20 = vector.extract_strided_slice %15 {offsets = [0, 0], sizes = [1, 16], strides = [1, 1]} : vector<8x16xf32> to vector<1x16xf32>
    %21 = vector.broadcast %20 : vector<1x16xf32> to vector<8x16xf32>
    %22 = arith.mulf %1, %21 : vector<8x16xf32>
    %23 = arith.addf %22, %2 : vector<8x16xf32>
    %24 = vector.extract_strided_slice %16 {offsets = [0, 0], sizes = [1, 16], strides = [1, 1]} : vector<8x16xf32> to vector<1x16xf32>
    %25 = vector.broadcast %24 : vector<1x16xf32> to vector<8x16xf32>
    %26 = arith.mulf %3, %25 : vector<8x16xf32>
    %27 = arith.addf %23, %26 : vector<8x16xf32>
    %28 = vector.extract_strided_slice %16 {offsets = [1, 0], sizes = [1, 16], strides = [1, 1]} : vector<8x16xf32> to vector<1x16xf32>
    %29 = vector.broadcast %28 : vector<1x16xf32> to vector<8x16xf32>
    %30 = arith.mulf %4, %29 : vector<8x16xf32>
    %31 = arith.addf %27, %30 : vector<8x16xf32>
    %32 = vector.extract_strided_slice %16 {offsets = [2, 0], sizes = [1, 16], strides = [1, 1]} : vector<8x16xf32> to vector<1x16xf32>
    %33 = vector.broadcast %32 : vector<1x16xf32> to vector<8x16xf32>
    %34 = arith.mulf %5, %33 : vector<8x16xf32>
    %35 = arith.addf %31, %34 : vector<8x16xf32>
    %36 = vector.extract_strided_slice %16 {offsets = [3, 0], sizes = [1, 16], strides = [1, 1]} : vector<8x16xf32> to vector<1x16xf32>
    %37 = vector.broadcast %36 : vector<1x16xf32> to vector<8x16xf32>
    %38 = arith.mulf %6, %37 : vector<8x16xf32>
    %39 = arith.addf %35, %38 : vector<8x16xf32>
    %40 = vector.extract_strided_slice %16 {offsets = [4, 0], sizes = [1, 16], strides = [1, 1]} : vector<8x16xf32> to vector<1x16xf32>
    %41 = vector.broadcast %40 : vector<1x16xf32> to vector<8x16xf32>
    %42 = arith.mulf %7, %41 : vector<8x16xf32>
    %43 = arith.addf %39, %42 : vector<8x16xf32>
    %44 = math.tanh %43 : vector<8x16xf32>
    %cst_6 = arith.constant 1.000000e+00 : f32
    %45 = vector.broadcast %cst_6 : f32 to vector<8x16xf32>
    %46 = arith.addf %45, %44 : vector<8x16xf32>
    %47 = vector.extract_strided_slice %46 {offsets = [0, 0], sizes = [8, 4], strides = [1, 1]} : vector<8x16xf32> to vector<8x4xf32>
    %48 = vector.extract_strided_slice %46 {offsets = [0, 4], sizes = [8, 4], strides = [1, 1]} : vector<8x16xf32> to vector<8x4xf32>
    %49 = vector.extract_strided_slice %44 {offsets = [0, 8], sizes = [8, 4], strides = [1, 1]} : vector<8x16xf32> to vector<8x4xf32>
    %50 = vector.extract_strided_slice %46 {offsets = [0, 12], sizes = [8, 4], strides = [1, 1]} : vector<8x16xf32> to vector<8x4xf32>
    %51 = arith.mulf %48, %17 : vector<8x4xf32>
    %52 = arith.mulf %47, %49 : vector<8x4xf32>
    %53 = arith.addf %51, %52 : vector<8x4xf32>
    %cst_7 = arith.constant 5.000000e-01 : f32
    %54 = vector.broadcast %cst_7 : f32 to vector<8x4xf32>
    %55 = arith.mulf %54, %53 : vector<8x4xf32>
    %56 = math.tanh %55 : vector<8x4xf32>
    %57 = arith.mulf %50, %56 : vector<8x4xf32>
    %cst_8 = arith.constant 5.000000e-01 : f32
    %58 = vector.broadcast %cst_8 : f32 to vector<8x4xf32>
    %59 = arith.mulf %58, %57 : vector<8x4xf32>
    %60 = tpu.concatenate %59, %59, %59, %59 in 1 : vector<8x4xf32>, vector<8x4xf32>, vector<8x4xf32>, vector<8x4xf32> -> vector<8x16xf32>
    %61 = vector.broadcast %18 : vector<1x4xf32> to vector<4x4xf32>
    %62 = arith.mulf %13, %61 : vector<4x4xf32>
    %63 = arith.addf %14, %62 : vector<4x4xf32>
    %64 = vector.extract_strided_slice %59 {offsets = [0, 0], sizes = [1, 4], strides = [1, 1]} : vector<8x4xf32> to vector<1x4xf32>
    %65 = vector.broadcast %64 : vector<1x4xf32> to vector<4x4xf32>
    %66 = arith.mulf %8, %65 : vector<4x4xf32>
    %67 = arith.addf %63, %66 : vector<4x4xf32>
    %68 = vector.extract_strided_slice %59 {offsets = [1, 0], sizes = [1, 4], strides = [1, 1]} : vector<8x4xf32> to vector<1x4xf32>
    %69 = vector.broadcast %68 : vector<1x4xf32> to vector<4x4xf32>
    %70 = arith.mulf %9, %69 : vector<4x4xf32>
    %71 = arith.addf %67, %70 : vector<4x4xf32>
    %72 = vector.extract_strided_slice %59 {offsets = [2, 0], sizes = [1, 4], strides = [1, 1]} : vector<8x4xf32> to vector<1x4xf32>
    %73 = vector.broadcast %72 : vector<1x4xf32> to vector<4x4xf32>
    %74 = arith.mulf %10, %73 : vector<4x4xf32>
    %75 = arith.addf %71, %74 : vector<4x4xf32>
    %76 = vector.extract_strided_slice %59 {offsets = [3, 0], sizes = [1, 4], strides = [1, 1]} : vector<8x4xf32> to vector<1x4xf32>
    %77 = vector.broadcast %76 : vector<1x4xf32> to vector<4x4xf32>
    %78 = arith.mulf %11, %77 : vector<4x4xf32>
    %79 = arith.addf %75, %78 : vector<4x4xf32>
    %80 = vector.extract_strided_slice %59 {offsets = [4, 0], sizes = [1, 4], strides = [1, 1]} : vector<8x4xf32> to vector<1x4xf32>
    %81 = vector.broadcast %80 : vector<1x4xf32> to vector<4x4xf32>
    %82 = arith.mulf %12, %81 : vector<4x4xf32>
    %83 = arith.addf %79, %82 : vector<4x4xf32>
    %84 = math.tanh %83 : vector<4x4xf32>
    %cst_9 = arith.constant 1.000000e+00 : f32
    %85 = vector.broadcast %cst_9 : f32 to vector<4x4xf32>
    %86 = arith.addf %85, %84 : vector<4x4xf32>
    %87 = vector.extract_strided_slice %86 {offsets = [0, 0], sizes = [1, 4], strides = [1, 1]} : vector<4x4xf32> to vector<1x4xf32>
    %88 = vector.extract_strided_slice %86 {offsets = [1, 0], sizes = [1, 4], strides = [1, 1]} : vector<4x4xf32> to vector<1x4xf32>
    %89 = vector.extract_strided_slice %84 {offsets = [2, 0], sizes = [1, 4], strides = [1, 1]} : vector<4x4xf32> to vector<1x4xf32>
    %90 = vector.extract_strided_slice %86 {offsets = [3, 0], sizes = [1, 4], strides = [1, 1]} : vector<4x4xf32> to vector<1x4xf32>
    %91 = arith.mulf %88, %19 : vector<1x4xf32>
    %92 = arith.mulf %87, %89 : vector<1x4xf32>
    %93 = arith.addf %91, %92 : vector<1x4xf32>
    %cst_10 = arith.constant 5.000000e-01 : f32
    %94 = vector.broadcast %cst_10 : f32 to vector<1x4xf32>
    %95 = arith.mulf %94, %93 : vector<1x4xf32>
    %96 = math.tanh %95 : vector<1x4xf32>
    %97 = arith.mulf %90, %96 : vector<1x4xf32>
    %cst_11 = arith.constant 5.000000e-01 : f32
    %98 = vector.broadcast %cst_11 : f32 to vector<1x4xf32>
    %99 = arith.mulf %98, %97 : vector<1x4xf32>
    %c0_12 = arith.constant 0 : index
    %c0_13 = arith.constant 0 : index
    %100 = vector.load %arg2[%c0_12, %c0_13] : memref<12x4xf32, #tpu.memory_space<vmem>>, vector<1x4xf32>
    tpu.vector_store %arg2[%c0_12, %c0_13], %99 {strides = array<i32>} : memref<12x4xf32, #tpu.memory_space<vmem>>, vector<1x4xf32>,
    %101 = vector.extract_strided_slice %15 {offsets = [1, 0], sizes = [1, 16], strides = [1, 1]} : vector<8x16xf32> to vector<1x16xf32>
    %102 = vector.broadcast %101 : vector<1x16xf32> to vector<8x16xf32>
    %103 = arith.mulf %1, %102 : vector<8x16xf32>
    %104 = arith.addf %103, %2 : vector<8x16xf32>
    %105 = vector.extract_strided_slice %60 {offsets = [0, 0], sizes = [1, 16], strides = [1, 1]} : vector<8x16xf32> to vector<1x16xf32>
    %106 = vector.broadcast %105 : vector<1x16xf32> to vector<8x16xf32>
    %107 = arith.mulf %3, %106 : vector<8x16xf32>
    %108 = arith.addf %104, %107 : vector<8x16xf32>
    %109 = vector.extract_strided_slice %60 {offsets = [1, 0], sizes = [1, 16], strides = [1, 1]} : vector<8x16xf32> to vector<1x16xf32>
    %110 = vector.broadcast %109 : vector<1x16xf32> to vector<8x16xf32>
    %111 = arith.mulf %4, %110 : vector<8x16xf32>
    %112 = arith.addf %108, %111 : vector<8x16xf32>
    %113 = vector.extract_strided_slice %60 {offsets = [2, 0], sizes = [1, 16], strides = [1, 1]} : vector<8x16xf32> to vector<1x16xf32>
    %114 = vector.broadcast %113 : vector<1x16xf32> to vector<8x16xf32>
    %115 = arith.mulf %5, %114 : vector<8x16xf32>
    %116 = arith.addf %112, %115 : vector<8x16xf32>
    %117 = vector.extract_strided_slice %60 {offsets = [3, 0], sizes = [1, 16], strides = [1, 1]} : vector<8x16xf32> to vector<1x16xf32>
    %118 = vector.broadcast %117 : vector<1x16xf32> to vector<8x16xf32>
    %119 = arith.mulf %6, %118 : vector<8x16xf32>
    %120 = arith.addf %116, %119 : vector<8x16xf32>
    %121 = vector.extract_strided_slice %60 {offsets = [4, 0], sizes = [1, 16], strides = [1, 1]} : vector<8x16xf32> to vector<1x16xf32>
    %122 = vector.broadcast %121 : vector<1x16xf32> to vector<8x16xf32>
    %123 = arith.mulf %7, %122 : vector<8x16xf32>
    %124 = arith.addf %120, %123 : vector<8x16xf32>
    %125 = math.tanh %124 : vector<8x16xf32>
    %cst_14 = arith.constant 1.000000e+00 : f32
    %126 = vector.broadcast %cst_14 : f32 to vector<8x16xf32>
    %127 = arith.addf %126, %125 : vector<8x16xf32>
    %128 = vector.extract_strided_slice %127 {offsets = [0, 0], sizes = [8, 4], strides = [1, 1]} : vector<8x16xf32> to vector<8x4xf32>
    %129 = vector.extract_strided_slice %127 {offsets = [0, 4], sizes = [8, 4], strides = [1, 1]} : vector<8x16xf32> to vector<8x4xf32>
    %130 = vector.extract_strided_slice %125 {offsets = [0, 8], sizes = [8, 4], strides = [1, 1]} : vector<8x16xf32> to vector<8x4xf32>
    %131 = vector.extract_strided_slice %127 {offsets = [0, 12], sizes = [8, 4], strides = [1, 1]} : vector<8x16xf32> to vector<8x4xf32>
    %132 = arith.mulf %129, %55 : vector<8x4xf32>
    %133 = arith.mulf %128, %130 : vector<8x4xf32>
    %134 = arith.addf %132, %133 : vector<8x4xf32>
    %cst_15 = arith.constant 5.000000e-01 : f32
    %135 = vector.broadcast %cst_15 : f32 to vector<8x4xf32>
    %136 = arith.mulf %135, %134 : vector<8x4xf32>
    %137 = math.tanh %136 : vector<8x4xf32>
    %138 = arith.mulf %131, %137 : vector<8x4xf32>
    %cst_16 = arith.constant 5.000000e-01 : f32
    %139 = vector.broadcast %cst_16 : f32 to vector<8x4xf32>
    %140 = arith.mulf %139, %138 : vector<8x4xf32>
    %141 = tpu.concatenate %140, %140, %140, %140 in 1 : vector<8x4xf32>, vector<8x4xf32>, vector<8x4xf32>, vector<8x4xf32> -> vector<8x16xf32>
    %142 = vector.broadcast %99 : vector<1x4xf32> to vector<4x4xf32>
    %143 = arith.mulf %13, %142 : vector<4x4xf32>
    %144 = arith.addf %14, %143 : vector<4x4xf32>
    %145 = vector.extract_strided_slice %140 {offsets = [0, 0], sizes = [1, 4], strides = [1, 1]} : vector<8x4xf32> to vector<1x4xf32>
    %146 = vector.broadcast %145 : vector<1x4xf32> to vector<4x4xf32>
    %147 = arith.mulf %8, %146 : vector<4x4xf32>
    %148 = arith.addf %144, %147 : vector<4x4xf32>
    %149 = vector.extract_strided_slice %140 {offsets = [1, 0], sizes = [1, 4], strides = [1, 1]} : vector<8x4xf32> to vector<1x4xf32>
    %150 = vector.broadcast %149 : vector<1x4xf32> to vector<4x4xf32>
    %151 = arith.mulf %9, %150 : vector<4x4xf32>
    %152 = arith.addf %148, %151 : vector<4x4xf32>
    %153 = vector.extract_strided_slice %140 {offsets = [2, 0], sizes = [1, 4], strides = [1, 1]} : vector<8x4xf32> to vector<1x4xf32>
    %154 = vector.broadcast %153 : vector<1x4xf32> to vector<4x4xf32>
    %155 = arith.mulf %10, %154 : vector<4x4xf32>
    %156 = arith.addf %152, %155 : vector<4x4xf32>
    %157 = vector.extract_strided_slice %140 {offsets = [3, 0], sizes = [1, 4], strides = [1, 1]} : vector<8x4xf32> to vector<1x4xf32>
    %158 = vector.broadcast %157 : vector<1x4xf32> to vector<4x4xf32>
    %159 = arith.mulf %11, %158 : vector<4x4xf32>
    %160 = arith.addf %156, %159 : vector<4x4xf32>
    %161 = vector.extract_strided_slice %140 {offsets = [4, 0], sizes = [1, 4], strides = [1, 1]} : vector<8x4xf32> to vector<1x4xf32>
    %162 = vector.broadcast %161 : vector<1x4xf32> to vector<4x4xf32>
    %163 = arith.mulf %12, %162 : vector<4x4xf32>
    %164 = arith.addf %160, %163 : vector<4x4xf32>
    %165 = math.tanh %164 : vector<4x4xf32>
    %cst_17 = arith.constant 1.000000e+00 : f32
    %166 = vector.broadcast %cst_17 : f32 to vector<4x4xf32>
    %167 = arith.addf %166, %165 : vector<4x4xf32>
    %168 = vector.extract_strided_slice %167 {offsets = [0, 0], sizes = [1, 4], strides = [1, 1]} : vector<4x4xf32> to vector<1x4xf32>
    %169 = vector.extract_strided_slice %167 {offsets = [1, 0], sizes = [1, 4], strides = [1, 1]} : vector<4x4xf32> to vector<1x4xf32>
    %170 = vector.extract_strided_slice %165 {offsets = [2, 0], sizes = [1, 4], strides = [1, 1]} : vector<4x4xf32> to vector<1x4xf32>
    %171 = vector.extract_strided_slice %167 {offsets = [3, 0], sizes = [1, 4], strides = [1, 1]} : vector<4x4xf32> to vector<1x4xf32>
    %172 = arith.mulf %169, %95 : vector<1x4xf32>
    %173 = arith.mulf %168, %170 : vector<1x4xf32>
    %174 = arith.addf %172, %173 : vector<1x4xf32>
    %cst_18 = arith.constant 5.000000e-01 : f32
    %175 = vector.broadcast %cst_18 : f32 to vector<1x4xf32>
    %176 = arith.mulf %175, %174 : vector<1x4xf32>
    %177 = math.tanh %176 : vector<1x4xf32>
    %178 = arith.mulf %171, %177 : vector<1x4xf32>
    %cst_19 = arith.constant 5.000000e-01 : f32
    %179 = vector.broadcast %cst_19 : f32 to vector<1x4xf32>
    %180 = arith.mulf %179, %178 : vector<1x4xf32>
    %c1 = arith.constant 1 : index
    %c0_20 = arith.constant 0 : index
    %181 = vector.load %arg2[%c1, %c0_20] : memref<12x4xf32, #tpu.memory_space<vmem>>, vector<1x4xf32>
    tpu.vector_store %arg2[%c1, %c0_20], %180 {strides = array<i32>} : memref<12x4xf32, #tpu.memory_space<vmem>>, vector<1x4xf32>,
    %182 = vector.extract_strided_slice %15 {offsets = [2, 0], sizes = [1, 16], strides = [1, 1]} : vector<8x16xf32> to vector<1x16xf32>
    %183 = vector.broadcast %182 : vector<1x16xf32> to vector<8x16xf32>
    %184 = arith.mulf %1, %183 : vector<8x16xf32>
    %185 = arith.addf %184, %2 : vector<8x16xf32>
    %186 = vector.extract_strided_slice %141 {offsets = [0, 0], sizes = [1, 16], strides = [1, 1]} : vector<8x16xf32> to vector<1x16xf32>
    %187 = vector.broadcast %186 : vector<1x16xf32> to vector<8x16xf32>
    %188 = arith.mulf %3, %187 : vector<8x16xf32>
    %189 = arith.addf %185, %188 : vector<8x16xf32>
    %190 = vector.extract_strided_slice %141 {offsets = [1, 0], sizes = [1, 16], strides = [1, 1]} : vector<8x16xf32> to vector<1x16xf32>
    %191 = vector.broadcast %190 : vector<1x16xf32> to vector<8x16xf32>
    %192 = arith.mulf %4, %191 : vector<8x16xf32>
    %193 = arith.addf %189, %192 : vector<8x16xf32>
    %194 = vector.extract_strided_slice %141 {offsets = [2, 0], sizes = [1, 16], strides = [1, 1]} : vector<8x16xf32> to vector<1x16xf32>
    %195 = vector.broadcast %194 : vector<1x16xf32> to vector<8x16xf32>
    %196 = arith.mulf %5, %195 : vector<8x16xf32>
    %197 = arith.addf %193, %196 : vector<8x16xf32>
    %198 = vector.extract_strided_slice %141 {offsets = [3, 0], sizes = [1, 16], strides = [1, 1]} : vector<8x16xf32> to vector<1x16xf32>
    %199 = vector.broadcast %198 : vector<1x16xf32> to vector<8x16xf32>
    %200 = arith.mulf %6, %199 : vector<8x16xf32>
    %201 = arith.addf %197, %200 : vector<8x16xf32>
    %202 = vector.extract_strided_slice %141 {offsets = [4, 0], sizes = [1, 16], strides = [1, 1]} : vector<8x16xf32> to vector<1x16xf32>
    %203 = vector.broadcast %202 : vector<1x16xf32> to vector<8x16xf32>
    %204 = arith.mulf %7, %203 : vector<8x16xf32>
    %205 = arith.addf %201, %204 : vector<8x16xf32>
    %206 = math.tanh %205 : vector<8x16xf32>
    %cst_21 = arith.constant 1.000000e+00 : f32
    %207 = vector.broadcast %cst_21 : f32 to vector<8x16xf32>
    %208 = arith.addf %207, %206 : vector<8x16xf32>
    %209 = vector.extract_strided_slice %208 {offsets = [0, 0], sizes = [8, 4], strides = [1, 1]} : vector<8x16xf32> to vector<8x4xf32>
    %210 = vector.extract_strided_slice %208 {offsets = [0, 4], sizes = [8, 4], strides = [1, 1]} : vector<8x16xf32> to vector<8x4xf32>
    %211 = vector.extract_strided_slice %206 {offsets = [0, 8], sizes = [8, 4], strides = [1, 1]} : vector<8x16xf32> to vector<8x4xf32>
    %212 = vector.extract_strided_slice %208 {offsets = [0, 12], sizes = [8, 4], strides = [1, 1]} : vector<8x16xf32> to vector<8x4xf32>
    %213 = arith.mulf %210, %136 : vector<8x4xf32>
    %214 = arith.mulf %209, %211 : vector<8x4xf32>
    %215 = arith.addf %213, %214 : vector<8x4xf32>
    %cst_22 = arith.constant 5.000000e-01 : f32
    %216 = vector.broadcast %cst_22 : f32 to vector<8x4xf32>
    %217 = arith.mulf %216, %215 : vector<8x4xf32>
    %218 = math.tanh %217 : vector<8x4xf32>
    %219 = arith.mulf %212, %218 : vector<8x4xf32>
    %cst_23 = arith.constant 5.000000e-01 : f32
    %220 = vector.broadcast %cst_23 : f32 to vector<8x4xf32>
    %221 = arith.mulf %220, %219 : vector<8x4xf32>
    %222 = tpu.concatenate %221, %221, %221, %221 in 1 : vector<8x4xf32>, vector<8x4xf32>, vector<8x4xf32>, vector<8x4xf32> -> vector<8x16xf32>
    %223 = vector.broadcast %180 : vector<1x4xf32> to vector<4x4xf32>
    %224 = arith.mulf %13, %223 : vector<4x4xf32>
    %225 = arith.addf %14, %224 : vector<4x4xf32>
    %226 = vector.extract_strided_slice %221 {offsets = [0, 0], sizes = [1, 4], strides = [1, 1]} : vector<8x4xf32> to vector<1x4xf32>
    %227 = vector.broadcast %226 : vector<1x4xf32> to vector<4x4xf32>
    %228 = arith.mulf %8, %227 : vector<4x4xf32>
    %229 = arith.addf %225, %228 : vector<4x4xf32>
    %230 = vector.extract_strided_slice %221 {offsets = [1, 0], sizes = [1, 4], strides = [1, 1]} : vector<8x4xf32> to vector<1x4xf32>
    %231 = vector.broadcast %230 : vector<1x4xf32> to vector<4x4xf32>
    %232 = arith.mulf %9, %231 : vector<4x4xf32>
    %233 = arith.addf %229, %232 : vector<4x4xf32>
    %234 = vector.extract_strided_slice %221 {offsets = [2, 0], sizes = [1, 4], strides = [1, 1]} : vector<8x4xf32> to vector<1x4xf32>
    %235 = vector.broadcast %234 : vector<1x4xf32> to vector<4x4xf32>
    %236 = arith.mulf %10, %235 : vector<4x4xf32>
    %237 = arith.addf %233, %236 : vector<4x4xf32>
    %238 = vector.extract_strided_slice %221 {offsets = [3, 0], sizes = [1, 4], strides = [1, 1]} : vector<8x4xf32> to vector<1x4xf32>
    %239 = vector.broadcast %238 : vector<1x4xf32> to vector<4x4xf32>
    %240 = arith.mulf %11, %239 : vector<4x4xf32>
    %241 = arith.addf %237, %240 : vector<4x4xf32>
    %242 = vector.extract_strided_slice %221 {offsets = [4, 0], sizes = [1, 4], strides = [1, 1]} : vector<8x4xf32> to vector<1x4xf32>
    %243 = vector.broadcast %242 : vector<1x4xf32> to vector<4x4xf32>
    %244 = arith.mulf %12, %243 : vector<4x4xf32>
    %245 = arith.addf %241, %244 : vector<4x4xf32>
    %246 = math.tanh %245 : vector<4x4xf32>
    %cst_24 = arith.constant 1.000000e+00 : f32
    %247 = vector.broadcast %cst_24 : f32 to vector<4x4xf32>
    %248 = arith.addf %247, %246 : vector<4x4xf32>
    %249 = vector.extract_strided_slice %248 {offsets = [0, 0], sizes = [1, 4], strides = [1, 1]} : vector<4x4xf32> to vector<1x4xf32>
    %250 = vector.extract_strided_slice %248 {offsets = [1, 0], sizes = [1, 4], strides = [1, 1]} : vector<4x4xf32> to vector<1x4xf32>
    %251 = vector.extract_strided_slice %246 {offsets = [2, 0], sizes = [1, 4], strides = [1, 1]} : vector<4x4xf32> to vector<1x4xf32>
    %252 = vector.extract_strided_slice %248 {offsets = [3, 0], sizes = [1, 4], strides = [1, 1]} : vector<4x4xf32> to vector<1x4xf32>
    %253 = arith.mulf %250, %176 : vector<1x4xf32>
    %254 = arith.mulf %249, %251 : vector<1x4xf32>
    %255 = arith.addf %253, %254 : vector<1x4xf32>
    %cst_25 = arith.constant 5.000000e-01 : f32
    %256 = vector.broadcast %cst_25 : f32 to vector<1x4xf32>
    %257 = arith.mulf %256, %255 : vector<1x4xf32>
    %258 = math.tanh %257 : vector<1x4xf32>
    %259 = arith.mulf %252, %258 : vector<1x4xf32>
    %cst_26 = arith.constant 5.000000e-01 : f32
    %260 = vector.broadcast %cst_26 : f32 to vector<1x4xf32>
    %261 = arith.mulf %260, %259 : vector<1x4xf32>
    %c2 = arith.constant 2 : index
    %c0_27 = arith.constant 0 : index
    %262 = vector.load %arg2[%c2, %c0_27] : memref<12x4xf32, #tpu.memory_space<vmem>>, vector<1x4xf32>
    tpu.vector_store %arg2[%c2, %c0_27], %261 {strides = array<i32>} : memref<12x4xf32, #tpu.memory_space<vmem>>, vector<1x4xf32>,
    %263 = vector.extract_strided_slice %15 {offsets = [3, 0], sizes = [1, 16], strides = [1, 1]} : vector<8x16xf32> to vector<1x16xf32>
    %264 = vector.broadcast %263 : vector<1x16xf32> to vector<8x16xf32>
    %265 = arith.mulf %1, %264 : vector<8x16xf32>
    %266 = arith.addf %265, %2 : vector<8x16xf32>
    %267 = vector.extract_strided_slice %222 {offsets = [0, 0], sizes = [1, 16], strides = [1, 1]} : vector<8x16xf32> to vector<1x16xf32>
    %268 = vector.broadcast %267 : vector<1x16xf32> to vector<8x16xf32>
    %269 = arith.mulf %3, %268 : vector<8x16xf32>
    %270 = arith.addf %266, %269 : vector<8x16xf32>
    %271 = vector.extract_strided_slice %222 {offsets = [1, 0], sizes = [1, 16], strides = [1, 1]} : vector<8x16xf32> to vector<1x16xf32>
    %272 = vector.broadcast %271 : vector<1x16xf32> to vector<8x16xf32>
    %273 = arith.mulf %4, %272 : vector<8x16xf32>
    %274 = arith.addf %270, %273 : vector<8x16xf32>
    %275 = vector.extract_strided_slice %222 {offsets = [2, 0], sizes = [1, 16], strides = [1, 1]} : vector<8x16xf32> to vector<1x16xf32>
    %276 = vector.broadcast %275 : vector<1x16xf32> to vector<8x16xf32>
    %277 = arith.mulf %5, %276 : vector<8x16xf32>
    %278 = arith.addf %274, %277 : vector<8x16xf32>
    %279 = vector.extract_strided_slice %222 {offsets = [3, 0], sizes = [1, 16], strides = [1, 1]} : vector<8x16xf32> to vector<1x16xf32>
    %280 = vector.broadcast %279 : vector<1x16xf32> to vector<8x16xf32>
    %281 = arith.mulf %6, %280 : vector<8x16xf32>
    %282 = arith.addf %278, %281 : vector<8x16xf32>
    %283 = vector.extract_strided_slice %222 {offsets = [4, 0], sizes = [1, 16], strides = [1, 1]} : vector<8x16xf32> to vector<1x16xf32>
    %284 = vector.broadcast %283 : vector<1x16xf32> to vector<8x16xf32>
    %285 = arith.mulf %7, %284 : vector<8x16xf32>
    %286 = arith.addf %282, %285 : vector<8x16xf32>
    %287 = math.tanh %286 : vector<8x16xf32>
    %cst_28 = arith.constant 1.000000e+00 : f32
    %288 = vector.broadcast %cst_28 : f32 to vector<8x16xf32>
    %289 = arith.addf %288, %287 : vector<8x16xf32>
    %290 = vector.extract_strided_slice %289 {offsets = [0, 0], sizes = [8, 4], strides = [1, 1]} : vector<8x16xf32> to vector<8x4xf32>
    %291 = vector.extract_strided_slice %289 {offsets = [0, 4], sizes = [8, 4], strides = [1, 1]} : vector<8x16xf32> to vector<8x4xf32>
    %292 = vector.extract_strided_slice %287 {offsets = [0, 8], sizes = [8, 4], strides = [1, 1]} : vector<8x16xf32> to vector<8x4xf32>
    %293 = vector.extract_strided_slice %289 {offsets = [0, 12], sizes = [8, 4], strides = [1, 1]} : vector<8x16xf32> to vector<8x4xf32>
    %294 = arith.mulf %291, %217 : vector<8x4xf32>
    %295 = arith.mulf %290, %292 : vector<8x4xf32>
    %296 = arith.addf %294, %295 : vector<8x4xf32>
    %cst_29 = arith.constant 5.000000e-01 : f32
    %297 = vector.broadcast %cst_29 : f32 to vector<8x4xf32>
    %298 = arith.mulf %297, %296 : vector<8x4xf32>
    %299 = math.tanh %298 : vector<8x4xf32>
    %300 = arith.mulf %293, %299 : vector<8x4xf32>
    %cst_30 = arith.constant 5.000000e-01 : f32
    %301 = vector.broadcast %cst_30 : f32 to vector<8x4xf32>
    %302 = arith.mulf %301, %300 : vector<8x4xf32>
    %303 = tpu.concatenate %302, %302, %302, %302 in 1 : vector<8x4xf32>, vector<8x4xf32>, vector<8x4xf32>, vector<8x4xf32> -> vector<8x16xf32>
    %304 = vector.broadcast %261 : vector<1x4xf32> to vector<4x4xf32>
    %305 = arith.mulf %13, %304 : vector<4x4xf32>
    %306 = arith.addf %14, %305 : vector<4x4xf32>
    %307 = vector.extract_strided_slice %302 {offsets = [0, 0], sizes = [1, 4], strides = [1, 1]} : vector<8x4xf32> to vector<1x4xf32>
    %308 = vector.broadcast %307 : vector<1x4xf32> to vector<4x4xf32>
    %309 = arith.mulf %8, %308 : vector<4x4xf32>
    %310 = arith.addf %306, %309 : vector<4x4xf32>
    %311 = vector.extract_strided_slice %302 {offsets = [1, 0], sizes = [1, 4], strides = [1, 1]} : vector<8x4xf32> to vector<1x4xf32>
    %312 = vector.broadcast %311 : vector<1x4xf32> to vector<4x4xf32>
    %313 = arith.mulf %9, %312 : vector<4x4xf32>
    %314 = arith.addf %310, %313 : vector<4x4xf32>
    %315 = vector.extract_strided_slice %302 {offsets = [2, 0], sizes = [1, 4], strides = [1, 1]} : vector<8x4xf32> to vector<1x4xf32>
    %316 = vector.broadcast %315 : vector<1x4xf32> to vector<4x4xf32>
    %317 = arith.mulf %10, %316 : vector<4x4xf32>
    %318 = arith.addf %314, %317 : vector<4x4xf32>
    %319 = vector.extract_strided_slice %302 {offsets = [3, 0], sizes = [1, 4], strides = [1, 1]} : vector<8x4xf32> to vector<1x4xf32>
    %320 = vector.broadcast %319 : vector<1x4xf32> to vector<4x4xf32>
    %321 = arith.mulf %11, %320 : vector<4x4xf32>
    %322 = arith.addf %318, %321 : vector<4x4xf32>
    %323 = vector.extract_strided_slice %302 {offsets = [4, 0], sizes = [1, 4], strides = [1, 1]} : vector<8x4xf32> to vector<1x4xf32>
    %324 = vector.broadcast %323 : vector<1x4xf32> to vector<4x4xf32>
    %325 = arith.mulf %12, %324 : vector<4x4xf32>
    %326 = arith.addf %322, %325 : vector<4x4xf32>
    %327 = math.tanh %326 : vector<4x4xf32>
    %cst_31 = arith.constant 1.000000e+00 : f32
    %328 = vector.broadcast %cst_31 : f32 to vector<4x4xf32>
    %329 = arith.addf %328, %327 : vector<4x4xf32>
    %330 = vector.extract_strided_slice %329 {offsets = [0, 0], sizes = [1, 4], strides = [1, 1]} : vector<4x4xf32> to vector<1x4xf32>
    %331 = vector.extract_strided_slice %329 {offsets = [1, 0], sizes = [1, 4], strides = [1, 1]} : vector<4x4xf32> to vector<1x4xf32>
    %332 = vector.extract_strided_slice %327 {offsets = [2, 0], sizes = [1, 4], strides = [1, 1]} : vector<4x4xf32> to vector<1x4xf32>
    %333 = vector.extract_strided_slice %329 {offsets = [3, 0], sizes = [1, 4], strides = [1, 1]} : vector<4x4xf32> to vector<1x4xf32>
    %334 = arith.mulf %331, %257 : vector<1x4xf32>
    %335 = arith.mulf %330, %332 : vector<1x4xf32>
    %336 = arith.addf %334, %335 : vector<1x4xf32>
    %cst_32 = arith.constant 5.000000e-01 : f32
    %337 = vector.broadcast %cst_32 : f32 to vector<1x4xf32>
    %338 = arith.mulf %337, %336 : vector<1x4xf32>
    %339 = math.tanh %338 : vector<1x4xf32>
    %340 = arith.mulf %333, %339 : vector<1x4xf32>
    %cst_33 = arith.constant 5.000000e-01 : f32
    %341 = vector.broadcast %cst_33 : f32 to vector<1x4xf32>
    %342 = arith.mulf %341, %340 : vector<1x4xf32>
    %c3 = arith.constant 3 : index
    %c0_34 = arith.constant 0 : index
    %343 = vector.load %arg2[%c3, %c0_34] : memref<12x4xf32, #tpu.memory_space<vmem>>, vector<1x4xf32>
    tpu.vector_store %arg2[%c3, %c0_34], %342 {strides = array<i32>} : memref<12x4xf32, #tpu.memory_space<vmem>>, vector<1x4xf32>,
    %344 = vector.extract_strided_slice %15 {offsets = [4, 0], sizes = [1, 16], strides = [1, 1]} : vector<8x16xf32> to vector<1x16xf32>
    %345 = vector.broadcast %344 : vector<1x16xf32> to vector<8x16xf32>
    %346 = arith.mulf %1, %345 : vector<8x16xf32>
    %347 = arith.addf %346, %2 : vector<8x16xf32>
    %348 = vector.extract_strided_slice %303 {offsets = [0, 0], sizes = [1, 16], strides = [1, 1]} : vector<8x16xf32> to vector<1x16xf32>
    %349 = vector.broadcast %348 : vector<1x16xf32> to vector<8x16xf32>
    %350 = arith.mulf %3, %349 : vector<8x16xf32>
    %351 = arith.addf %347, %350 : vector<8x16xf32>
    %352 = vector.extract_strided_slice %303 {offsets = [1, 0], sizes = [1, 16], strides = [1, 1]} : vector<8x16xf32> to vector<1x16xf32>
    %353 = vector.broadcast %352 : vector<1x16xf32> to vector<8x16xf32>
    %354 = arith.mulf %4, %353 : vector<8x16xf32>
    %355 = arith.addf %351, %354 : vector<8x16xf32>
    %356 = vector.extract_strided_slice %303 {offsets = [2, 0], sizes = [1, 16], strides = [1, 1]} : vector<8x16xf32> to vector<1x16xf32>
    %357 = vector.broadcast %356 : vector<1x16xf32> to vector<8x16xf32>
    %358 = arith.mulf %5, %357 : vector<8x16xf32>
    %359 = arith.addf %355, %358 : vector<8x16xf32>
    %360 = vector.extract_strided_slice %303 {offsets = [3, 0], sizes = [1, 16], strides = [1, 1]} : vector<8x16xf32> to vector<1x16xf32>
    %361 = vector.broadcast %360 : vector<1x16xf32> to vector<8x16xf32>
    %362 = arith.mulf %6, %361 : vector<8x16xf32>
    %363 = arith.addf %359, %362 : vector<8x16xf32>
    %364 = vector.extract_strided_slice %303 {offsets = [4, 0], sizes = [1, 16], strides = [1, 1]} : vector<8x16xf32> to vector<1x16xf32>
    %365 = vector.broadcast %364 : vector<1x16xf32> to vector<8x16xf32>
    %366 = arith.mulf %7, %365 : vector<8x16xf32>
    %367 = arith.addf %363, %366 : vector<8x16xf32>
    %368 = math.tanh %367 : vector<8x16xf32>
    %cst_35 = arith.constant 1.000000e+00 : f32
    %369 = vector.broadcast %cst_35 : f32 to vector<8x16xf32>
    %370 = arith.addf %369, %368 : vector<8x16xf32>
    %371 = vector.extract_strided_slice %370 {offsets = [0, 0], sizes = [8, 4], strides = [1, 1]} : vector<8x16xf32> to vector<8x4xf32>
    %372 = vector.extract_strided_slice %370 {offsets = [0, 4], sizes = [8, 4], strides = [1, 1]} : vector<8x16xf32> to vector<8x4xf32>
    %373 = vector.extract_strided_slice %368 {offsets = [0, 8], sizes = [8, 4], strides = [1, 1]} : vector<8x16xf32> to vector<8x4xf32>
    %374 = vector.extract_strided_slice %370 {offsets = [0, 12], sizes = [8, 4], strides = [1, 1]} : vector<8x16xf32> to vector<8x4xf32>
    %375 = arith.mulf %372, %298 : vector<8x4xf32>
    %376 = arith.mulf %371, %373 : vector<8x4xf32>
    %377 = arith.addf %375, %376 : vector<8x4xf32>
    %cst_36 = arith.constant 5.000000e-01 : f32
    %378 = vector.broadcast %cst_36 : f32 to vector<8x4xf32>
    %379 = arith.mulf %378, %377 : vector<8x4xf32>
    %380 = math.tanh %379 : vector<8x4xf32>
    %381 = arith.mulf %374, %380 : vector<8x4xf32>
    %cst_37 = arith.constant 5.000000e-01 : f32
    %382 = vector.broadcast %cst_37 : f32 to vector<8x4xf32>
    %383 = arith.mulf %382, %381 : vector<8x4xf32>
    %384 = tpu.concatenate %383, %383, %383, %383 in 1 : vector<8x4xf32>, vector<8x4xf32>, vector<8x4xf32>, vector<8x4xf32> -> vector<8x16xf32>
    %385 = vector.broadcast %342 : vector<1x4xf32> to vector<4x4xf32>
    %386 = arith.mulf %13, %385 : vector<4x4xf32>
    %387 = arith.addf %14, %386 : vector<4x4xf32>
    %388 = vector.extract_strided_slice %383 {offsets = [0, 0], sizes = [1, 4], strides = [1, 1]} : vector<8x4xf32> to vector<1x4xf32>
    %389 = vector.broadcast %388 : vector<1x4xf32> to vector<4x4xf32>
    %390 = arith.mulf %8, %389 : vector<4x4xf32>
    %391 = arith.addf %387, %390 : vector<4x4xf32>
    %392 = vector.extract_strided_slice %383 {offsets = [1, 0], sizes = [1, 4], strides = [1, 1]} : vector<8x4xf32> to vector<1x4xf32>
    %393 = vector.broadcast %392 : vector<1x4xf32> to vector<4x4xf32>
    %394 = arith.mulf %9, %393 : vector<4x4xf32>
    %395 = arith.addf %391, %394 : vector<4x4xf32>
    %396 = vector.extract_strided_slice %383 {offsets = [2, 0], sizes = [1, 4], strides = [1, 1]} : vector<8x4xf32> to vector<1x4xf32>
    %397 = vector.broadcast %396 : vector<1x4xf32> to vector<4x4xf32>
    %398 = arith.mulf %10, %397 : vector<4x4xf32>
    %399 = arith.addf %395, %398 : vector<4x4xf32>
    %400 = vector.extract_strided_slice %383 {offsets = [3, 0], sizes = [1, 4], strides = [1, 1]} : vector<8x4xf32> to vector<1x4xf32>
    %401 = vector.broadcast %400 : vector<1x4xf32> to vector<4x4xf32>
    %402 = arith.mulf %11, %401 : vector<4x4xf32>
    %403 = arith.addf %399, %402 : vector<4x4xf32>
    %404 = vector.extract_strided_slice %383 {offsets = [4, 0], sizes = [1, 4], strides = [1, 1]} : vector<8x4xf32> to vector<1x4xf32>
    %405 = vector.broadcast %404 : vector<1x4xf32> to vector<4x4xf32>
    %406 = arith.mulf %12, %405 : vector<4x4xf32>
    %407 = arith.addf %403, %406 : vector<4x4xf32>
    %408 = math.tanh %407 : vector<4x4xf32>
    %cst_38 = arith.constant 1.000000e+00 : f32
    %409 = vector.broadcast %cst_38 : f32 to vector<4x4xf32>
    %410 = arith.addf %409, %408 : vector<4x4xf32>
    %411 = vector.extract_strided_slice %410 {offsets = [0, 0], sizes = [1, 4], strides = [1, 1]} : vector<4x4xf32> to vector<1x4xf32>
    %412 = vector.extract_strided_slice %410 {offsets = [1, 0], sizes = [1, 4], strides = [1, 1]} : vector<4x4xf32> to vector<1x4xf32>
    %413 = vector.extract_strided_slice %408 {offsets = [2, 0], sizes = [1, 4], strides = [1, 1]} : vector<4x4xf32> to vector<1x4xf32>
    %414 = vector.extract_strided_slice %410 {offsets = [3, 0], sizes = [1, 4], strides = [1, 1]} : vector<4x4xf32> to vector<1x4xf32>
    %415 = arith.mulf %412, %338 : vector<1x4xf32>
    %416 = arith.mulf %411, %413 : vector<1x4xf32>
    %417 = arith.addf %415, %416 : vector<1x4xf32>
    %cst_39 = arith.constant 5.000000e-01 : f32
    %418 = vector.broadcast %cst_39 : f32 to vector<1x4xf32>
    %419 = arith.mulf %418, %417 : vector<1x4xf32>
    %420 = math.tanh %419 : vector<1x4xf32>
    %421 = arith.mulf %414, %420 : vector<1x4xf32>
    %cst_40 = arith.constant 5.000000e-01 : f32
    %422 = vector.broadcast %cst_40 : f32 to vector<1x4xf32>
    %423 = arith.mulf %422, %421 : vector<1x4xf32>
    %c4 = arith.constant 4 : index
    %c0_41 = arith.constant 0 : index
    %424 = vector.load %arg2[%c4, %c0_41] : memref<12x4xf32, #tpu.memory_space<vmem>>, vector<1x4xf32>
    tpu.vector_store %arg2[%c4, %c0_41], %423 {strides = array<i32>} : memref<12x4xf32, #tpu.memory_space<vmem>>, vector<1x4xf32>,
    %425 = vector.extract_strided_slice %15 {offsets = [5, 0], sizes = [1, 16], strides = [1, 1]} : vector<8x16xf32> to vector<1x16xf32>
    %426 = vector.broadcast %425 : vector<1x16xf32> to vector<8x16xf32>
    %427 = arith.mulf %1, %426 : vector<8x16xf32>
    %428 = arith.addf %427, %2 : vector<8x16xf32>
    %429 = vector.extract_strided_slice %384 {offsets = [0, 0], sizes = [1, 16], strides = [1, 1]} : vector<8x16xf32> to vector<1x16xf32>
    %430 = vector.broadcast %429 : vector<1x16xf32> to vector<8x16xf32>
    %431 = arith.mulf %3, %430 : vector<8x16xf32>
    %432 = arith.addf %428, %431 : vector<8x16xf32>
    %433 = vector.extract_strided_slice %384 {offsets = [1, 0], sizes = [1, 16], strides = [1, 1]} : vector<8x16xf32> to vector<1x16xf32>
    %434 = vector.broadcast %433 : vector<1x16xf32> to vector<8x16xf32>
    %435 = arith.mulf %4, %434 : vector<8x16xf32>
    %436 = arith.addf %432, %435 : vector<8x16xf32>
    %437 = vector.extract_strided_slice %384 {offsets = [2, 0], sizes = [1, 16], strides = [1, 1]} : vector<8x16xf32> to vector<1x16xf32>
    %438 = vector.broadcast %437 : vector<1x16xf32> to vector<8x16xf32>
    %439 = arith.mulf %5, %438 : vector<8x16xf32>
    %440 = arith.addf %436, %439 : vector<8x16xf32>
    %441 = vector.extract_strided_slice %384 {offsets = [3, 0], sizes = [1, 16], strides = [1, 1]} : vector<8x16xf32> to vector<1x16xf32>
    %442 = vector.broadcast %441 : vector<1x16xf32> to vector<8x16xf32>
    %443 = arith.mulf %6, %442 : vector<8x16xf32>
    %444 = arith.addf %440, %443 : vector<8x16xf32>
    %445 = vector.extract_strided_slice %384 {offsets = [4, 0], sizes = [1, 16], strides = [1, 1]} : vector<8x16xf32> to vector<1x16xf32>
    %446 = vector.broadcast %445 : vector<1x16xf32> to vector<8x16xf32>
    %447 = arith.mulf %7, %446 : vector<8x16xf32>
    %448 = arith.addf %444, %447 : vector<8x16xf32>
    %449 = math.tanh %448 : vector<8x16xf32>
    %cst_42 = arith.constant 1.000000e+00 : f32
    %450 = vector.broadcast %cst_42 : f32 to vector<8x16xf32>
    %451 = arith.addf %450, %449 : vector<8x16xf32>
    %452 = vector.extract_strided_slice %451 {offsets = [0, 0], sizes = [8, 4], strides = [1, 1]} : vector<8x16xf32> to vector<8x4xf32>
    %453 = vector.extract_strided_slice %451 {offsets = [0, 4], sizes = [8, 4], strides = [1, 1]} : vector<8x16xf32> to vector<8x4xf32>
    %454 = vector.extract_strided_slice %449 {offsets = [0, 8], sizes = [8, 4], strides = [1, 1]} : vector<8x16xf32> to vector<8x4xf32>
    %455 = vector.extract_strided_slice %451 {offsets = [0, 12], sizes = [8, 4], strides = [1, 1]} : vector<8x16xf32> to vector<8x4xf32>
    %456 = arith.mulf %453, %379 : vector<8x4xf32>
    %457 = arith.mulf %452, %454 : vector<8x4xf32>
    %458 = arith.addf %456, %457 : vector<8x4xf32>
    %cst_43 = arith.constant 5.000000e-01 : f32
    %459 = vector.broadcast %cst_43 : f32 to vector<8x4xf32>
    %460 = arith.mulf %459, %458 : vector<8x4xf32>
    %461 = math.tanh %460 : vector<8x4xf32>
    %462 = arith.mulf %455, %461 : vector<8x4xf32>
    %cst_44 = arith.constant 5.000000e-01 : f32
    %463 = vector.broadcast %cst_44 : f32 to vector<8x4xf32>
    %464 = arith.mulf %463, %462 : vector<8x4xf32>
    %465 = tpu.concatenate %464, %464, %464, %464 in 1 : vector<8x4xf32>, vector<8x4xf32>, vector<8x4xf32>, vector<8x4xf32> -> vector<8x16xf32>
    %466 = vector.broadcast %423 : vector<1x4xf32> to vector<4x4xf32>
    %467 = arith.mulf %13, %466 : vector<4x4xf32>
    %468 = arith.addf %14, %467 : vector<4x4xf32>
    %469 = vector.extract_strided_slice %464 {offsets = [0, 0], sizes = [1, 4], strides = [1, 1]} : vector<8x4xf32> to vector<1x4xf32>
    %470 = vector.broadcast %469 : vector<1x4xf32> to vector<4x4xf32>
    %471 = arith.mulf %8, %470 : vector<4x4xf32>
    %472 = arith.addf %468, %471 : vector<4x4xf32>
    %473 = vector.extract_strided_slice %464 {offsets = [1, 0], sizes = [1, 4], strides = [1, 1]} : vector<8x4xf32> to vector<1x4xf32>
    %474 = vector.broadcast %473 : vector<1x4xf32> to vector<4x4xf32>
    %475 = arith.mulf %9, %474 : vector<4x4xf32>
    %476 = arith.addf %472, %475 : vector<4x4xf32>
    %477 = vector.extract_strided_slice %464 {offsets = [2, 0], sizes = [1, 4], strides = [1, 1]} : vector<8x4xf32> to vector<1x4xf32>
    %478 = vector.broadcast %477 : vector<1x4xf32> to vector<4x4xf32>
    %479 = arith.mulf %10, %478 : vector<4x4xf32>
    %480 = arith.addf %476, %479 : vector<4x4xf32>
    %481 = vector.extract_strided_slice %464 {offsets = [3, 0], sizes = [1, 4], strides = [1, 1]} : vector<8x4xf32> to vector<1x4xf32>
    %482 = vector.broadcast %481 : vector<1x4xf32> to vector<4x4xf32>
    %483 = arith.mulf %11, %482 : vector<4x4xf32>
    %484 = arith.addf %480, %483 : vector<4x4xf32>
    %485 = vector.extract_strided_slice %464 {offsets = [4, 0], sizes = [1, 4], strides = [1, 1]} : vector<8x4xf32> to vector<1x4xf32>
    %486 = vector.broadcast %485 : vector<1x4xf32> to vector<4x4xf32>
    %487 = arith.mulf %12, %486 : vector<4x4xf32>
    %488 = arith.addf %484, %487 : vector<4x4xf32>
    %489 = math.tanh %488 : vector<4x4xf32>
    %cst_45 = arith.constant 1.000000e+00 : f32
    %490 = vector.broadcast %cst_45 : f32 to vector<4x4xf32>
    %491 = arith.addf %490, %489 : vector<4x4xf32>
    %492 = vector.extract_strided_slice %491 {offsets = [0, 0], sizes = [1, 4], strides = [1, 1]} : vector<4x4xf32> to vector<1x4xf32>
    %493 = vector.extract_strided_slice %491 {offsets = [1, 0], sizes = [1, 4], strides = [1, 1]} : vector<4x4xf32> to vector<1x4xf32>
    %494 = vector.extract_strided_slice %489 {offsets = [2, 0], sizes = [1, 4], strides = [1, 1]} : vector<4x4xf32> to vector<1x4xf32>
    %495 = vector.extract_strided_slice %491 {offsets = [3, 0], sizes = [1, 4], strides = [1, 1]} : vector<4x4xf32> to vector<1x4xf32>
    %496 = arith.mulf %493, %419 : vector<1x4xf32>
    %497 = arith.mulf %492, %494 : vector<1x4xf32>
    %498 = arith.addf %496, %497 : vector<1x4xf32>
    %cst_46 = arith.constant 5.000000e-01 : f32
    %499 = vector.broadcast %cst_46 : f32 to vector<1x4xf32>
    %500 = arith.mulf %499, %498 : vector<1x4xf32>
    %501 = math.tanh %500 : vector<1x4xf32>
    %502 = arith.mulf %495, %501 : vector<1x4xf32>
    %cst_47 = arith.constant 5.000000e-01 : f32
    %503 = vector.broadcast %cst_47 : f32 to vector<1x4xf32>
    %504 = arith.mulf %503, %502 : vector<1x4xf32>
    %c5 = arith.constant 5 : index
    %c0_48 = arith.constant 0 : index
    %505 = vector.load %arg2[%c5, %c0_48] : memref<12x4xf32, #tpu.memory_space<vmem>>, vector<1x4xf32>
    tpu.vector_store %arg2[%c5, %c0_48], %504 {strides = array<i32>} : memref<12x4xf32, #tpu.memory_space<vmem>>, vector<1x4xf32>,
    %506 = vector.extract_strided_slice %15 {offsets = [6, 0], sizes = [1, 16], strides = [1, 1]} : vector<8x16xf32> to vector<1x16xf32>
    %507 = vector.broadcast %506 : vector<1x16xf32> to vector<8x16xf32>
    %508 = arith.mulf %1, %507 : vector<8x16xf32>
    %509 = arith.addf %508, %2 : vector<8x16xf32>
    %510 = vector.extract_strided_slice %465 {offsets = [0, 0], sizes = [1, 16], strides = [1, 1]} : vector<8x16xf32> to vector<1x16xf32>
    %511 = vector.broadcast %510 : vector<1x16xf32> to vector<8x16xf32>
    %512 = arith.mulf %3, %511 : vector<8x16xf32>
    %513 = arith.addf %509, %512 : vector<8x16xf32>
    %514 = vector.extract_strided_slice %465 {offsets = [1, 0], sizes = [1, 16], strides = [1, 1]} : vector<8x16xf32> to vector<1x16xf32>
    %515 = vector.broadcast %514 : vector<1x16xf32> to vector<8x16xf32>
    %516 = arith.mulf %4, %515 : vector<8x16xf32>
    %517 = arith.addf %513, %516 : vector<8x16xf32>
    %518 = vector.extract_strided_slice %465 {offsets = [2, 0], sizes = [1, 16], strides = [1, 1]} : vector<8x16xf32> to vector<1x16xf32>
    %519 = vector.broadcast %518 : vector<1x16xf32> to vector<8x16xf32>
    %520 = arith.mulf %5, %519 : vector<8x16xf32>
    %521 = arith.addf %517, %520 : vector<8x16xf32>
    %522 = vector.extract_strided_slice %465 {offsets = [3, 0], sizes = [1, 16], strides = [1, 1]} : vector<8x16xf32> to vector<1x16xf32>
    %523 = vector.broadcast %522 : vector<1x16xf32> to vector<8x16xf32>
    %524 = arith.mulf %6, %523 : vector<8x16xf32>
    %525 = arith.addf %521, %524 : vector<8x16xf32>
    %526 = vector.extract_strided_slice %465 {offsets = [4, 0], sizes = [1, 16], strides = [1, 1]} : vector<8x16xf32> to vector<1x16xf32>
    %527 = vector.broadcast %526 : vector<1x16xf32> to vector<8x16xf32>
    %528 = arith.mulf %7, %527 : vector<8x16xf32>
    %529 = arith.addf %525, %528 : vector<8x16xf32>
    %530 = math.tanh %529 : vector<8x16xf32>
    %cst_49 = arith.constant 1.000000e+00 : f32
    %531 = vector.broadcast %cst_49 : f32 to vector<8x16xf32>
    %532 = arith.addf %531, %530 : vector<8x16xf32>
    %533 = vector.extract_strided_slice %532 {offsets = [0, 0], sizes = [8, 4], strides = [1, 1]} : vector<8x16xf32> to vector<8x4xf32>
    %534 = vector.extract_strided_slice %532 {offsets = [0, 4], sizes = [8, 4], strides = [1, 1]} : vector<8x16xf32> to vector<8x4xf32>
    %535 = vector.extract_strided_slice %530 {offsets = [0, 8], sizes = [8, 4], strides = [1, 1]} : vector<8x16xf32> to vector<8x4xf32>
    %536 = vector.extract_strided_slice %532 {offsets = [0, 12], sizes = [8, 4], strides = [1, 1]} : vector<8x16xf32> to vector<8x4xf32>
    %537 = arith.mulf %534, %460 : vector<8x4xf32>
    %538 = arith.mulf %533, %535 : vector<8x4xf32>
    %539 = arith.addf %537, %538 : vector<8x4xf32>
    %cst_50 = arith.constant 5.000000e-01 : f32
    %540 = vector.broadcast %cst_50 : f32 to vector<8x4xf32>
    %541 = arith.mulf %540, %539 : vector<8x4xf32>
    %542 = math.tanh %541 : vector<8x4xf32>
    %543 = arith.mulf %536, %542 : vector<8x4xf32>
    %cst_51 = arith.constant 5.000000e-01 : f32
    %544 = vector.broadcast %cst_51 : f32 to vector<8x4xf32>
    %545 = arith.mulf %544, %543 : vector<8x4xf32>
    %546 = tpu.concatenate %545, %545, %545, %545 in 1 : vector<8x4xf32>, vector<8x4xf32>, vector<8x4xf32>, vector<8x4xf32> -> vector<8x16xf32>
    %547 = vector.broadcast %504 : vector<1x4xf32> to vector<4x4xf32>
    %548 = arith.mulf %13, %547 : vector<4x4xf32>
    %549 = arith.addf %14, %548 : vector<4x4xf32>
    %550 = vector.extract_strided_slice %545 {offsets = [0, 0], sizes = [1, 4], strides = [1, 1]} : vector<8x4xf32> to vector<1x4xf32>
    %551 = vector.broadcast %550 : vector<1x4xf32> to vector<4x4xf32>
    %552 = arith.mulf %8, %551 : vector<4x4xf32>
    %553 = arith.addf %549, %552 : vector<4x4xf32>
    %554 = vector.extract_strided_slice %545 {offsets = [1, 0], sizes = [1, 4], strides = [1, 1]} : vector<8x4xf32> to vector<1x4xf32>
    %555 = vector.broadcast %554 : vector<1x4xf32> to vector<4x4xf32>
    %556 = arith.mulf %9, %555 : vector<4x4xf32>
    %557 = arith.addf %553, %556 : vector<4x4xf32>
    %558 = vector.extract_strided_slice %545 {offsets = [2, 0], sizes = [1, 4], strides = [1, 1]} : vector<8x4xf32> to vector<1x4xf32>
    %559 = vector.broadcast %558 : vector<1x4xf32> to vector<4x4xf32>
    %560 = arith.mulf %10, %559 : vector<4x4xf32>
    %561 = arith.addf %557, %560 : vector<4x4xf32>
    %562 = vector.extract_strided_slice %545 {offsets = [3, 0], sizes = [1, 4], strides = [1, 1]} : vector<8x4xf32> to vector<1x4xf32>
    %563 = vector.broadcast %562 : vector<1x4xf32> to vector<4x4xf32>
    %564 = arith.mulf %11, %563 : vector<4x4xf32>
    %565 = arith.addf %561, %564 : vector<4x4xf32>
    %566 = vector.extract_strided_slice %545 {offsets = [4, 0], sizes = [1, 4], strides = [1, 1]} : vector<8x4xf32> to vector<1x4xf32>
    %567 = vector.broadcast %566 : vector<1x4xf32> to vector<4x4xf32>
    %568 = arith.mulf %12, %567 : vector<4x4xf32>
    %569 = arith.addf %565, %568 : vector<4x4xf32>
    %570 = math.tanh %569 : vector<4x4xf32>
    %cst_52 = arith.constant 1.000000e+00 : f32
    %571 = vector.broadcast %cst_52 : f32 to vector<4x4xf32>
    %572 = arith.addf %571, %570 : vector<4x4xf32>
    %573 = vector.extract_strided_slice %572 {offsets = [0, 0], sizes = [1, 4], strides = [1, 1]} : vector<4x4xf32> to vector<1x4xf32>
    %574 = vector.extract_strided_slice %572 {offsets = [1, 0], sizes = [1, 4], strides = [1, 1]} : vector<4x4xf32> to vector<1x4xf32>
    %575 = vector.extract_strided_slice %570 {offsets = [2, 0], sizes = [1, 4], strides = [1, 1]} : vector<4x4xf32> to vector<1x4xf32>
    %576 = vector.extract_strided_slice %572 {offsets = [3, 0], sizes = [1, 4], strides = [1, 1]} : vector<4x4xf32> to vector<1x4xf32>
    %577 = arith.mulf %574, %500 : vector<1x4xf32>
    %578 = arith.mulf %573, %575 : vector<1x4xf32>
    %579 = arith.addf %577, %578 : vector<1x4xf32>
    %cst_53 = arith.constant 5.000000e-01 : f32
    %580 = vector.broadcast %cst_53 : f32 to vector<1x4xf32>
    %581 = arith.mulf %580, %579 : vector<1x4xf32>
    %582 = math.tanh %581 : vector<1x4xf32>
    %583 = arith.mulf %576, %582 : vector<1x4xf32>
    %cst_54 = arith.constant 5.000000e-01 : f32
    %584 = vector.broadcast %cst_54 : f32 to vector<1x4xf32>
    %585 = arith.mulf %584, %583 : vector<1x4xf32>
    %c6 = arith.constant 6 : index
    %c0_55 = arith.constant 0 : index
    %586 = vector.load %arg2[%c6, %c0_55] : memref<12x4xf32, #tpu.memory_space<vmem>>, vector<1x4xf32>
    tpu.vector_store %arg2[%c6, %c0_55], %585 {strides = array<i32>} : memref<12x4xf32, #tpu.memory_space<vmem>>, vector<1x4xf32>,
    %587 = vector.extract_strided_slice %15 {offsets = [7, 0], sizes = [1, 16], strides = [1, 1]} : vector<8x16xf32> to vector<1x16xf32>
    %588 = vector.broadcast %587 : vector<1x16xf32> to vector<8x16xf32>
    %589 = arith.mulf %1, %588 : vector<8x16xf32>
    %590 = arith.addf %589, %2 : vector<8x16xf32>
    %591 = vector.extract_strided_slice %546 {offsets = [0, 0], sizes = [1, 16], strides = [1, 1]} : vector<8x16xf32> to vector<1x16xf32>
    %592 = vector.broadcast %591 : vector<1x16xf32> to vector<8x16xf32>
    %593 = arith.mulf %3, %592 : vector<8x16xf32>
    %594 = arith.addf %590, %593 : vector<8x16xf32>
    %595 = vector.extract_strided_slice %546 {offsets = [1, 0], sizes = [1, 16], strides = [1, 1]} : vector<8x16xf32> to vector<1x16xf32>
    %596 = vector.broadcast %595 : vector<1x16xf32> to vector<8x16xf32>
    %597 = arith.mulf %4, %596 : vector<8x16xf32>
    %598 = arith.addf %594, %597 : vector<8x16xf32>
    %599 = vector.extract_strided_slice %546 {offsets = [2, 0], sizes = [1, 16], strides = [1, 1]} : vector<8x16xf32> to vector<1x16xf32>
    %600 = vector.broadcast %599 : vector<1x16xf32> to vector<8x16xf32>
    %601 = arith.mulf %5, %600 : vector<8x16xf32>
    %602 = arith.addf %598, %601 : vector<8x16xf32>
    %603 = vector.extract_strided_slice %546 {offsets = [3, 0], sizes = [1, 16], strides = [1, 1]} : vector<8x16xf32> to vector<1x16xf32>
    %604 = vector.broadcast %603 : vector<1x16xf32> to vector<8x16xf32>
    %605 = arith.mulf %6, %604 : vector<8x16xf32>
    %606 = arith.addf %602, %605 : vector<8x16xf32>
    %607 = vector.extract_strided_slice %546 {offsets = [4, 0], sizes = [1, 16], strides = [1, 1]} : vector<8x16xf32> to vector<1x16xf32>
    %608 = vector.broadcast %607 : vector<1x16xf32> to vector<8x16xf32>
    %609 = arith.mulf %7, %608 : vector<8x16xf32>
    %610 = arith.addf %606, %609 : vector<8x16xf32>
    %611 = math.tanh %610 : vector<8x16xf32>
    %cst_56 = arith.constant 1.000000e+00 : f32
    %612 = vector.broadcast %cst_56 : f32 to vector<8x16xf32>
    %613 = arith.addf %612, %611 : vector<8x16xf32>
    %614 = vector.extract_strided_slice %613 {offsets = [0, 0], sizes = [8, 4], strides = [1, 1]} : vector<8x16xf32> to vector<8x4xf32>
    %615 = vector.extract_strided_slice %613 {offsets = [0, 4], sizes = [8, 4], strides = [1, 1]} : vector<8x16xf32> to vector<8x4xf32>
    %616 = vector.extract_strided_slice %611 {offsets = [0, 8], sizes = [8, 4], strides = [1, 1]} : vector<8x16xf32> to vector<8x4xf32>
    %617 = vector.extract_strided_slice %613 {offsets = [0, 12], sizes = [8, 4], strides = [1, 1]} : vector<8x16xf32> to vector<8x4xf32>
    %618 = arith.mulf %615, %541 : vector<8x4xf32>
    %619 = arith.mulf %614, %616 : vector<8x4xf32>
    %620 = arith.addf %618, %619 : vector<8x4xf32>
    %cst_57 = arith.constant 5.000000e-01 : f32
    %621 = vector.broadcast %cst_57 : f32 to vector<8x4xf32>
    %622 = arith.mulf %621, %620 : vector<8x4xf32>
    %623 = math.tanh %622 : vector<8x4xf32>
    %624 = arith.mulf %617, %623 : vector<8x4xf32>
    %cst_58 = arith.constant 5.000000e-01 : f32
    %625 = vector.broadcast %cst_58 : f32 to vector<8x4xf32>
    %626 = arith.mulf %625, %624 : vector<8x4xf32>
    %627 = tpu.concatenate %626, %626, %626, %626 in 1 : vector<8x4xf32>, vector<8x4xf32>, vector<8x4xf32>, vector<8x4xf32> -> vector<8x16xf32>
    %628 = vector.broadcast %585 : vector<1x4xf32> to vector<4x4xf32>
    %629 = arith.mulf %13, %628 : vector<4x4xf32>
    %630 = arith.addf %14, %629 : vector<4x4xf32>
    %631 = vector.extract_strided_slice %626 {offsets = [0, 0], sizes = [1, 4], strides = [1, 1]} : vector<8x4xf32> to vector<1x4xf32>
    %632 = vector.broadcast %631 : vector<1x4xf32> to vector<4x4xf32>
    %633 = arith.mulf %8, %632 : vector<4x4xf32>
    %634 = arith.addf %630, %633 : vector<4x4xf32>
    %635 = vector.extract_strided_slice %626 {offsets = [1, 0], sizes = [1, 4], strides = [1, 1]} : vector<8x4xf32> to vector<1x4xf32>
    %636 = vector.broadcast %635 : vector<1x4xf32> to vector<4x4xf32>
    %637 = arith.mulf %9, %636 : vector<4x4xf32>
    %638 = arith.addf %634, %637 : vector<4x4xf32>
    %639 = vector.extract_strided_slice %626 {offsets = [2, 0], sizes = [1, 4], strides = [1, 1]} : vector<8x4xf32> to vector<1x4xf32>
    %640 = vector.broadcast %639 : vector<1x4xf32> to vector<4x4xf32>
    %641 = arith.mulf %10, %640 : vector<4x4xf32>
    %642 = arith.addf %638, %641 : vector<4x4xf32>
    %643 = vector.extract_strided_slice %626 {offsets = [3, 0], sizes = [1, 4], strides = [1, 1]} : vector<8x4xf32> to vector<1x4xf32>
    %644 = vector.broadcast %643 : vector<1x4xf32> to vector<4x4xf32>
    %645 = arith.mulf %11, %644 : vector<4x4xf32>
    %646 = arith.addf %642, %645 : vector<4x4xf32>
    %647 = vector.extract_strided_slice %626 {offsets = [4, 0], sizes = [1, 4], strides = [1, 1]} : vector<8x4xf32> to vector<1x4xf32>
    %648 = vector.broadcast %647 : vector<1x4xf32> to vector<4x4xf32>
    %649 = arith.mulf %12, %648 : vector<4x4xf32>
    %650 = arith.addf %646, %649 : vector<4x4xf32>
    %651 = math.tanh %650 : vector<4x4xf32>
    %cst_59 = arith.constant 1.000000e+00 : f32
    %652 = vector.broadcast %cst_59 : f32 to vector<4x4xf32>
    %653 = arith.addf %652, %651 : vector<4x4xf32>
    %654 = vector.extract_strided_slice %653 {offsets = [0, 0], sizes = [1, 4], strides = [1, 1]} : vector<4x4xf32> to vector<1x4xf32>
    %655 = vector.extract_strided_slice %653 {offsets = [1, 0], sizes = [1, 4], strides = [1, 1]} : vector<4x4xf32> to vector<1x4xf32>
    %656 = vector.extract_strided_slice %651 {offsets = [2, 0], sizes = [1, 4], strides = [1, 1]} : vector<4x4xf32> to vector<1x4xf32>
    %657 = vector.extract_strided_slice %653 {offsets = [3, 0], sizes = [1, 4], strides = [1, 1]} : vector<4x4xf32> to vector<1x4xf32>
    %658 = arith.mulf %655, %581 : vector<1x4xf32>
    %659 = arith.mulf %654, %656 : vector<1x4xf32>
    %660 = arith.addf %658, %659 : vector<1x4xf32>
    %cst_60 = arith.constant 5.000000e-01 : f32
    %661 = vector.broadcast %cst_60 : f32 to vector<1x4xf32>
    %662 = arith.mulf %661, %660 : vector<1x4xf32>
    %663 = math.tanh %662 : vector<1x4xf32>
    %664 = arith.mulf %657, %663 : vector<1x4xf32>
    %cst_61 = arith.constant 5.000000e-01 : f32
    %665 = vector.broadcast %cst_61 : f32 to vector<1x4xf32>
    %666 = arith.mulf %665, %664 : vector<1x4xf32>
    %c7 = arith.constant 7 : index
    %c0_62 = arith.constant 0 : index
    %667 = vector.load %arg2[%c7, %c0_62] : memref<12x4xf32, #tpu.memory_space<vmem>>, vector<1x4xf32>
    tpu.vector_store %arg2[%c7, %c0_62], %666 {strides = array<i32>} : memref<12x4xf32, #tpu.memory_space<vmem>>, vector<1x4xf32>,
    %668 = tpu.concatenate %666, %666, %666, %666 in 1 : vector<1x4xf32>, vector<1x4xf32>, vector<1x4xf32>, vector<1x4xf32> -> vector<1x16xf32>
    %669 = vector.broadcast %668 : vector<1x16xf32> to vector<8x16xf32>
    %670 = arith.mulf %1, %669 : vector<8x16xf32>
    %671 = arith.addf %670, %2 : vector<8x16xf32>
    %672 = vector.extract_strided_slice %627 {offsets = [0, 0], sizes = [1, 16], strides = [1, 1]} : vector<8x16xf32> to vector<1x16xf32>
    %673 = vector.broadcast %672 : vector<1x16xf32> to vector<8x16xf32>
    %674 = arith.mulf %3, %673 : vector<8x16xf32>
    %675 = arith.addf %671, %674 : vector<8x16xf32>
    %676 = vector.extract_strided_slice %627 {offsets = [1, 0], sizes = [1, 16], strides = [1, 1]} : vector<8x16xf32> to vector<1x16xf32>
    %677 = vector.broadcast %676 : vector<1x16xf32> to vector<8x16xf32>
    %678 = arith.mulf %4, %677 : vector<8x16xf32>
    %679 = arith.addf %675, %678 : vector<8x16xf32>
    %680 = vector.extract_strided_slice %627 {offsets = [2, 0], sizes = [1, 16], strides = [1, 1]} : vector<8x16xf32> to vector<1x16xf32>
    %681 = vector.broadcast %680 : vector<1x16xf32> to vector<8x16xf32>
    %682 = arith.mulf %5, %681 : vector<8x16xf32>
    %683 = arith.addf %679, %682 : vector<8x16xf32>
    %684 = vector.extract_strided_slice %627 {offsets = [3, 0], sizes = [1, 16], strides = [1, 1]} : vector<8x16xf32> to vector<1x16xf32>
    %685 = vector.broadcast %684 : vector<1x16xf32> to vector<8x16xf32>
    %686 = arith.mulf %6, %685 : vector<8x16xf32>
    %687 = arith.addf %683, %686 : vector<8x16xf32>
    %688 = vector.extract_strided_slice %627 {offsets = [4, 0], sizes = [1, 16], strides = [1, 1]} : vector<8x16xf32> to vector<1x16xf32>
    %689 = vector.broadcast %688 : vector<1x16xf32> to vector<8x16xf32>
    %690 = arith.mulf %7, %689 : vector<8x16xf32>
    %691 = arith.addf %687, %690 : vector<8x16xf32>
    %692 = math.tanh %691 : vector<8x16xf32>
    %cst_63 = arith.constant 1.000000e+00 : f32
    %693 = vector.broadcast %cst_63 : f32 to vector<8x16xf32>
    %694 = arith.addf %693, %692 : vector<8x16xf32>
    %695 = vector.extract_strided_slice %694 {offsets = [0, 0], sizes = [8, 4], strides = [1, 1]} : vector<8x16xf32> to vector<8x4xf32>
    %696 = vector.extract_strided_slice %694 {offsets = [0, 4], sizes = [8, 4], strides = [1, 1]} : vector<8x16xf32> to vector<8x4xf32>
    %697 = vector.extract_strided_slice %692 {offsets = [0, 8], sizes = [8, 4], strides = [1, 1]} : vector<8x16xf32> to vector<8x4xf32>
    %698 = vector.extract_strided_slice %694 {offsets = [0, 12], sizes = [8, 4], strides = [1, 1]} : vector<8x16xf32> to vector<8x4xf32>
    %699 = arith.mulf %696, %622 : vector<8x4xf32>
    %700 = arith.mulf %695, %697 : vector<8x4xf32>
    %701 = arith.addf %699, %700 : vector<8x4xf32>
    %cst_64 = arith.constant 5.000000e-01 : f32
    %702 = vector.broadcast %cst_64 : f32 to vector<8x4xf32>
    %703 = arith.mulf %702, %701 : vector<8x4xf32>
    %704 = math.tanh %703 : vector<8x4xf32>
    %705 = arith.mulf %698, %704 : vector<8x4xf32>
    %cst_65 = arith.constant 5.000000e-01 : f32
    %706 = vector.broadcast %cst_65 : f32 to vector<8x4xf32>
    %707 = arith.mulf %706, %705 : vector<8x4xf32>
    %708 = tpu.concatenate %707, %707, %707, %707 in 1 : vector<8x4xf32>, vector<8x4xf32>, vector<8x4xf32>, vector<8x4xf32> -> vector<8x16xf32>
    %709 = vector.broadcast %666 : vector<1x4xf32> to vector<4x4xf32>
    %710 = arith.mulf %13, %709 : vector<4x4xf32>
    %711 = arith.addf %14, %710 : vector<4x4xf32>
    %712 = vector.extract_strided_slice %707 {offsets = [0, 0], sizes = [1, 4], strides = [1, 1]} : vector<8x4xf32> to vector<1x4xf32>
    %713 = vector.broadcast %712 : vector<1x4xf32> to vector<4x4xf32>
    %714 = arith.mulf %8, %713 : vector<4x4xf32>
    %715 = arith.addf %711, %714 : vector<4x4xf32>
    %716 = vector.extract_strided_slice %707 {offsets = [1, 0], sizes = [1, 4], strides = [1, 1]} : vector<8x4xf32> to vector<1x4xf32>
    %717 = vector.broadcast %716 : vector<1x4xf32> to vector<4x4xf32>
    %718 = arith.mulf %9, %717 : vector<4x4xf32>
    %719 = arith.addf %715, %718 : vector<4x4xf32>
    %720 = vector.extract_strided_slice %707 {offsets = [2, 0], sizes = [1, 4], strides = [1, 1]} : vector<8x4xf32> to vector<1x4xf32>
    %721 = vector.broadcast %720 : vector<1x4xf32> to vector<4x4xf32>
    %722 = arith.mulf %10, %721 : vector<4x4xf32>
    %723 = arith.addf %719, %722 : vector<4x4xf32>
    %724 = vector.extract_strided_slice %707 {offsets = [3, 0], sizes = [1, 4], strides = [1, 1]} : vector<8x4xf32> to vector<1x4xf32>
    %725 = vector.broadcast %724 : vector<1x4xf32> to vector<4x4xf32>
    %726 = arith.mulf %11, %725 : vector<4x4xf32>
    %727 = arith.addf %723, %726 : vector<4x4xf32>
    %728 = vector.extract_strided_slice %707 {offsets = [4, 0], sizes = [1, 4], strides = [1, 1]} : vector<8x4xf32> to vector<1x4xf32>
    %729 = vector.broadcast %728 : vector<1x4xf32> to vector<4x4xf32>
    %730 = arith.mulf %12, %729 : vector<4x4xf32>
    %731 = arith.addf %727, %730 : vector<4x4xf32>
    %732 = math.tanh %731 : vector<4x4xf32>
    %cst_66 = arith.constant 1.000000e+00 : f32
    %733 = vector.broadcast %cst_66 : f32 to vector<4x4xf32>
    %734 = arith.addf %733, %732 : vector<4x4xf32>
    %735 = vector.extract_strided_slice %734 {offsets = [0, 0], sizes = [1, 4], strides = [1, 1]} : vector<4x4xf32> to vector<1x4xf32>
    %736 = vector.extract_strided_slice %734 {offsets = [1, 0], sizes = [1, 4], strides = [1, 1]} : vector<4x4xf32> to vector<1x4xf32>
    %737 = vector.extract_strided_slice %732 {offsets = [2, 0], sizes = [1, 4], strides = [1, 1]} : vector<4x4xf32> to vector<1x4xf32>
    %738 = vector.extract_strided_slice %734 {offsets = [3, 0], sizes = [1, 4], strides = [1, 1]} : vector<4x4xf32> to vector<1x4xf32>
    %739 = arith.mulf %736, %662 : vector<1x4xf32>
    %740 = arith.mulf %735, %737 : vector<1x4xf32>
    %741 = arith.addf %739, %740 : vector<1x4xf32>
    %cst_67 = arith.constant 5.000000e-01 : f32
    %742 = vector.broadcast %cst_67 : f32 to vector<1x4xf32>
    %743 = arith.mulf %742, %741 : vector<1x4xf32>
    %744 = math.tanh %743 : vector<1x4xf32>
    %745 = arith.mulf %738, %744 : vector<1x4xf32>
    %cst_68 = arith.constant 5.000000e-01 : f32
    %746 = vector.broadcast %cst_68 : f32 to vector<1x4xf32>
    %747 = arith.mulf %746, %745 : vector<1x4xf32>
    %c8 = arith.constant 8 : index
    %c0_69 = arith.constant 0 : index
    %748 = vector.load %arg2[%c8, %c0_69] : memref<12x4xf32, #tpu.memory_space<vmem>>, vector<1x4xf32>
    tpu.vector_store %arg2[%c8, %c0_69], %747 {strides = array<i32>} : memref<12x4xf32, #tpu.memory_space<vmem>>, vector<1x4xf32>,
    %749 = tpu.concatenate %747, %747, %747, %747 in 1 : vector<1x4xf32>, vector<1x4xf32>, vector<1x4xf32>, vector<1x4xf32> -> vector<1x16xf32>
    %750 = vector.broadcast %749 : vector<1x16xf32> to vector<8x16xf32>
    %751 = arith.mulf %1, %750 : vector<8x16xf32>
    %752 = arith.addf %751, %2 : vector<8x16xf32>
    %753 = vector.extract_strided_slice %708 {offsets = [0, 0], sizes = [1, 16], strides = [1, 1]} : vector<8x16xf32> to vector<1x16xf32>
    %754 = vector.broadcast %753 : vector<1x16xf32> to vector<8x16xf32>
    %755 = arith.mulf %3, %754 : vector<8x16xf32>
    %756 = arith.addf %752, %755 : vector<8x16xf32>
    %757 = vector.extract_strided_slice %708 {offsets = [1, 0], sizes = [1, 16], strides = [1, 1]} : vector<8x16xf32> to vector<1x16xf32>
    %758 = vector.broadcast %757 : vector<1x16xf32> to vector<8x16xf32>
    %759 = arith.mulf %4, %758 : vector<8x16xf32>
    %760 = arith.addf %756, %759 : vector<8x16xf32>
    %761 = vector.extract_strided_slice %708 {offsets = [2, 0], sizes = [1, 16], strides = [1, 1]} : vector<8x16xf32> to vector<1x16xf32>
    %762 = vector.broadcast %761 : vector<1x16xf32> to vector<8x16xf32>
    %763 = arith.mulf %5, %762 : vector<8x16xf32>
    %764 = arith.addf %760, %763 : vector<8x16xf32>
    %765 = vector.extract_strided_slice %708 {offsets = [3, 0], sizes = [1, 16], strides = [1, 1]} : vector<8x16xf32> to vector<1x16xf32>
    %766 = vector.broadcast %765 : vector<1x16xf32> to vector<8x16xf32>
    %767 = arith.mulf %6, %766 : vector<8x16xf32>
    %768 = arith.addf %764, %767 : vector<8x16xf32>
    %769 = vector.extract_strided_slice %708 {offsets = [4, 0], sizes = [1, 16], strides = [1, 1]} : vector<8x16xf32> to vector<1x16xf32>
    %770 = vector.broadcast %769 : vector<1x16xf32> to vector<8x16xf32>
    %771 = arith.mulf %7, %770 : vector<8x16xf32>
    %772 = arith.addf %768, %771 : vector<8x16xf32>
    %773 = math.tanh %772 : vector<8x16xf32>
    %cst_70 = arith.constant 1.000000e+00 : f32
    %774 = vector.broadcast %cst_70 : f32 to vector<8x16xf32>
    %775 = arith.addf %774, %773 : vector<8x16xf32>
    %776 = vector.extract_strided_slice %775 {offsets = [0, 0], sizes = [8, 4], strides = [1, 1]} : vector<8x16xf32> to vector<8x4xf32>
    %777 = vector.extract_strided_slice %775 {offsets = [0, 4], sizes = [8, 4], strides = [1, 1]} : vector<8x16xf32> to vector<8x4xf32>
    %778 = vector.extract_strided_slice %773 {offsets = [0, 8], sizes = [8, 4], strides = [1, 1]} : vector<8x16xf32> to vector<8x4xf32>
    %779 = vector.extract_strided_slice %775 {offsets = [0, 12], sizes = [8, 4], strides = [1, 1]} : vector<8x16xf32> to vector<8x4xf32>
    %780 = arith.mulf %777, %703 : vector<8x4xf32>
    %781 = arith.mulf %776, %778 : vector<8x4xf32>
    %782 = arith.addf %780, %781 : vector<8x4xf32>
    %cst_71 = arith.constant 5.000000e-01 : f32
    %783 = vector.broadcast %cst_71 : f32 to vector<8x4xf32>
    %784 = arith.mulf %783, %782 : vector<8x4xf32>
    %785 = math.tanh %784 : vector<8x4xf32>
    %786 = arith.mulf %779, %785 : vector<8x4xf32>
    %cst_72 = arith.constant 5.000000e-01 : f32
    %787 = vector.broadcast %cst_72 : f32 to vector<8x4xf32>
    %788 = arith.mulf %787, %786 : vector<8x4xf32>
    %789 = tpu.concatenate %788, %788, %788, %788 in 1 : vector<8x4xf32>, vector<8x4xf32>, vector<8x4xf32>, vector<8x4xf32> -> vector<8x16xf32>
    %790 = vector.broadcast %747 : vector<1x4xf32> to vector<4x4xf32>
    %791 = arith.mulf %13, %790 : vector<4x4xf32>
    %792 = arith.addf %14, %791 : vector<4x4xf32>
    %793 = vector.extract_strided_slice %788 {offsets = [0, 0], sizes = [1, 4], strides = [1, 1]} : vector<8x4xf32> to vector<1x4xf32>
    %794 = vector.broadcast %793 : vector<1x4xf32> to vector<4x4xf32>
    %795 = arith.mulf %8, %794 : vector<4x4xf32>
    %796 = arith.addf %792, %795 : vector<4x4xf32>
    %797 = vector.extract_strided_slice %788 {offsets = [1, 0], sizes = [1, 4], strides = [1, 1]} : vector<8x4xf32> to vector<1x4xf32>
    %798 = vector.broadcast %797 : vector<1x4xf32> to vector<4x4xf32>
    %799 = arith.mulf %9, %798 : vector<4x4xf32>
    %800 = arith.addf %796, %799 : vector<4x4xf32>
    %801 = vector.extract_strided_slice %788 {offsets = [2, 0], sizes = [1, 4], strides = [1, 1]} : vector<8x4xf32> to vector<1x4xf32>
    %802 = vector.broadcast %801 : vector<1x4xf32> to vector<4x4xf32>
    %803 = arith.mulf %10, %802 : vector<4x4xf32>
    %804 = arith.addf %800, %803 : vector<4x4xf32>
    %805 = vector.extract_strided_slice %788 {offsets = [3, 0], sizes = [1, 4], strides = [1, 1]} : vector<8x4xf32> to vector<1x4xf32>
    %806 = vector.broadcast %805 : vector<1x4xf32> to vector<4x4xf32>
    %807 = arith.mulf %11, %806 : vector<4x4xf32>
    %808 = arith.addf %804, %807 : vector<4x4xf32>
    %809 = vector.extract_strided_slice %788 {offsets = [4, 0], sizes = [1, 4], strides = [1, 1]} : vector<8x4xf32> to vector<1x4xf32>
    %810 = vector.broadcast %809 : vector<1x4xf32> to vector<4x4xf32>
    %811 = arith.mulf %12, %810 : vector<4x4xf32>
    %812 = arith.addf %808, %811 : vector<4x4xf32>
    %813 = math.tanh %812 : vector<4x4xf32>
    %cst_73 = arith.constant 1.000000e+00 : f32
    %814 = vector.broadcast %cst_73 : f32 to vector<4x4xf32>
    %815 = arith.addf %814, %813 : vector<4x4xf32>
    %816 = vector.extract_strided_slice %815 {offsets = [0, 0], sizes = [1, 4], strides = [1, 1]} : vector<4x4xf32> to vector<1x4xf32>
    %817 = vector.extract_strided_slice %815 {offsets = [1, 0], sizes = [1, 4], strides = [1, 1]} : vector<4x4xf32> to vector<1x4xf32>
    %818 = vector.extract_strided_slice %813 {offsets = [2, 0], sizes = [1, 4], strides = [1, 1]} : vector<4x4xf32> to vector<1x4xf32>
    %819 = vector.extract_strided_slice %815 {offsets = [3, 0], sizes = [1, 4], strides = [1, 1]} : vector<4x4xf32> to vector<1x4xf32>
    %820 = arith.mulf %817, %743 : vector<1x4xf32>
    %821 = arith.mulf %816, %818 : vector<1x4xf32>
    %822 = arith.addf %820, %821 : vector<1x4xf32>
    %cst_74 = arith.constant 5.000000e-01 : f32
    %823 = vector.broadcast %cst_74 : f32 to vector<1x4xf32>
    %824 = arith.mulf %823, %822 : vector<1x4xf32>
    %825 = math.tanh %824 : vector<1x4xf32>
    %826 = arith.mulf %819, %825 : vector<1x4xf32>
    %cst_75 = arith.constant 5.000000e-01 : f32
    %827 = vector.broadcast %cst_75 : f32 to vector<1x4xf32>
    %828 = arith.mulf %827, %826 : vector<1x4xf32>
    %c9 = arith.constant 9 : index
    %c0_76 = arith.constant 0 : index
    %829 = vector.load %arg2[%c9, %c0_76] : memref<12x4xf32, #tpu.memory_space<vmem>>, vector<1x4xf32>
    tpu.vector_store %arg2[%c9, %c0_76], %828 {strides = array<i32>} : memref<12x4xf32, #tpu.memory_space<vmem>>, vector<1x4xf32>,
    %830 = tpu.concatenate %828, %828, %828, %828 in 1 : vector<1x4xf32>, vector<1x4xf32>, vector<1x4xf32>, vector<1x4xf32> -> vector<1x16xf32>
    %831 = vector.broadcast %830 : vector<1x16xf32> to vector<8x16xf32>
    %832 = arith.mulf %1, %831 : vector<8x16xf32>
    %833 = arith.addf %832, %2 : vector<8x16xf32>
    %834 = vector.extract_strided_slice %789 {offsets = [0, 0], sizes = [1, 16], strides = [1, 1]} : vector<8x16xf32> to vector<1x16xf32>
    %835 = vector.broadcast %834 : vector<1x16xf32> to vector<8x16xf32>
    %836 = arith.mulf %3, %835 : vector<8x16xf32>
    %837 = arith.addf %833, %836 : vector<8x16xf32>
    %838 = vector.extract_strided_slice %789 {offsets = [1, 0], sizes = [1, 16], strides = [1, 1]} : vector<8x16xf32> to vector<1x16xf32>
    %839 = vector.broadcast %838 : vector<1x16xf32> to vector<8x16xf32>
    %840 = arith.mulf %4, %839 : vector<8x16xf32>
    %841 = arith.addf %837, %840 : vector<8x16xf32>
    %842 = vector.extract_strided_slice %789 {offsets = [2, 0], sizes = [1, 16], strides = [1, 1]} : vector<8x16xf32> to vector<1x16xf32>
    %843 = vector.broadcast %842 : vector<1x16xf32> to vector<8x16xf32>
    %844 = arith.mulf %5, %843 : vector<8x16xf32>
    %845 = arith.addf %841, %844 : vector<8x16xf32>
    %846 = vector.extract_strided_slice %789 {offsets = [3, 0], sizes = [1, 16], strides = [1, 1]} : vector<8x16xf32> to vector<1x16xf32>
    %847 = vector.broadcast %846 : vector<1x16xf32> to vector<8x16xf32>
    %848 = arith.mulf %6, %847 : vector<8x16xf32>
    %849 = arith.addf %845, %848 : vector<8x16xf32>
    %850 = vector.extract_strided_slice %789 {offsets = [4, 0], sizes = [1, 16], strides = [1, 1]} : vector<8x16xf32> to vector<1x16xf32>
    %851 = vector.broadcast %850 : vector<1x16xf32> to vector<8x16xf32>
    %852 = arith.mulf %7, %851 : vector<8x16xf32>
    %853 = arith.addf %849, %852 : vector<8x16xf32>
    %854 = math.tanh %853 : vector<8x16xf32>
    %cst_77 = arith.constant 1.000000e+00 : f32
    %855 = vector.broadcast %cst_77 : f32 to vector<8x16xf32>
    %856 = arith.addf %855, %854 : vector<8x16xf32>
    %857 = vector.extract_strided_slice %856 {offsets = [0, 0], sizes = [8, 4], strides = [1, 1]} : vector<8x16xf32> to vector<8x4xf32>
    %858 = vector.extract_strided_slice %856 {offsets = [0, 4], sizes = [8, 4], strides = [1, 1]} : vector<8x16xf32> to vector<8x4xf32>
    %859 = vector.extract_strided_slice %854 {offsets = [0, 8], sizes = [8, 4], strides = [1, 1]} : vector<8x16xf32> to vector<8x4xf32>
    %860 = vector.extract_strided_slice %856 {offsets = [0, 12], sizes = [8, 4], strides = [1, 1]} : vector<8x16xf32> to vector<8x4xf32>
    %861 = arith.mulf %858, %784 : vector<8x4xf32>
    %862 = arith.mulf %857, %859 : vector<8x4xf32>
    %863 = arith.addf %861, %862 : vector<8x4xf32>
    %cst_78 = arith.constant 5.000000e-01 : f32
    %864 = vector.broadcast %cst_78 : f32 to vector<8x4xf32>
    %865 = arith.mulf %864, %863 : vector<8x4xf32>
    %866 = math.tanh %865 : vector<8x4xf32>
    %867 = arith.mulf %860, %866 : vector<8x4xf32>
    %cst_79 = arith.constant 5.000000e-01 : f32
    %868 = vector.broadcast %cst_79 : f32 to vector<8x4xf32>
    %869 = arith.mulf %868, %867 : vector<8x4xf32>
    %870 = tpu.concatenate %869, %869, %869, %869 in 1 : vector<8x4xf32>, vector<8x4xf32>, vector<8x4xf32>, vector<8x4xf32> -> vector<8x16xf32>
    %871 = vector.broadcast %828 : vector<1x4xf32> to vector<4x4xf32>
    %872 = arith.mulf %13, %871 : vector<4x4xf32>
    %873 = arith.addf %14, %872 : vector<4x4xf32>
    %874 = vector.extract_strided_slice %869 {offsets = [0, 0], sizes = [1, 4], strides = [1, 1]} : vector<8x4xf32> to vector<1x4xf32>
    %875 = vector.broadcast %874 : vector<1x4xf32> to vector<4x4xf32>
    %876 = arith.mulf %8, %875 : vector<4x4xf32>
    %877 = arith.addf %873, %876 : vector<4x4xf32>
    %878 = vector.extract_strided_slice %869 {offsets = [1, 0], sizes = [1, 4], strides = [1, 1]} : vector<8x4xf32> to vector<1x4xf32>
    %879 = vector.broadcast %878 : vector<1x4xf32> to vector<4x4xf32>
    %880 = arith.mulf %9, %879 : vector<4x4xf32>
    %881 = arith.addf %877, %880 : vector<4x4xf32>
    %882 = vector.extract_strided_slice %869 {offsets = [2, 0], sizes = [1, 4], strides = [1, 1]} : vector<8x4xf32> to vector<1x4xf32>
    %883 = vector.broadcast %882 : vector<1x4xf32> to vector<4x4xf32>
    %884 = arith.mulf %10, %883 : vector<4x4xf32>
    %885 = arith.addf %881, %884 : vector<4x4xf32>
    %886 = vector.extract_strided_slice %869 {offsets = [3, 0], sizes = [1, 4], strides = [1, 1]} : vector<8x4xf32> to vector<1x4xf32>
    %887 = vector.broadcast %886 : vector<1x4xf32> to vector<4x4xf32>
    %888 = arith.mulf %11, %887 : vector<4x4xf32>
    %889 = arith.addf %885, %888 : vector<4x4xf32>
    %890 = vector.extract_strided_slice %869 {offsets = [4, 0], sizes = [1, 4], strides = [1, 1]} : vector<8x4xf32> to vector<1x4xf32>
    %891 = vector.broadcast %890 : vector<1x4xf32> to vector<4x4xf32>
    %892 = arith.mulf %12, %891 : vector<4x4xf32>
    %893 = arith.addf %889, %892 : vector<4x4xf32>
    %894 = math.tanh %893 : vector<4x4xf32>
    %cst_80 = arith.constant 1.000000e+00 : f32
    %895 = vector.broadcast %cst_80 : f32 to vector<4x4xf32>
    %896 = arith.addf %895, %894 : vector<4x4xf32>
    %897 = vector.extract_strided_slice %896 {offsets = [0, 0], sizes = [1, 4], strides = [1, 1]} : vector<4x4xf32> to vector<1x4xf32>
    %898 = vector.extract_strided_slice %896 {offsets = [1, 0], sizes = [1, 4], strides = [1, 1]} : vector<4x4xf32> to vector<1x4xf32>
    %899 = vector.extract_strided_slice %894 {offsets = [2, 0], sizes = [1, 4], strides = [1, 1]} : vector<4x4xf32> to vector<1x4xf32>
    %900 = vector.extract_strided_slice %896 {offsets = [3, 0], sizes = [1, 4], strides = [1, 1]} : vector<4x4xf32> to vector<1x4xf32>
    %901 = arith.mulf %898, %824 : vector<1x4xf32>
    %902 = arith.mulf %897, %899 : vector<1x4xf32>
    %903 = arith.addf %901, %902 : vector<1x4xf32>
    %cst_81 = arith.constant 5.000000e-01 : f32
    %904 = vector.broadcast %cst_81 : f32 to vector<1x4xf32>
    %905 = arith.mulf %904, %903 : vector<1x4xf32>
    %906 = math.tanh %905 : vector<1x4xf32>
    %907 = arith.mulf %900, %906 : vector<1x4xf32>
    %cst_82 = arith.constant 5.000000e-01 : f32
    %908 = vector.broadcast %cst_82 : f32 to vector<1x4xf32>
    %909 = arith.mulf %908, %907 : vector<1x4xf32>
    %c10 = arith.constant 10 : index
    %c0_83 = arith.constant 0 : index
    %910 = vector.load %arg2[%c10, %c0_83] : memref<12x4xf32, #tpu.memory_space<vmem>>, vector<1x4xf32>
    tpu.vector_store %arg2[%c10, %c0_83], %909 {strides = array<i32>} : memref<12x4xf32, #tpu.memory_space<vmem>>, vector<1x4xf32>,
    %911 = tpu.concatenate %909, %909, %909, %909 in 1 : vector<1x4xf32>, vector<1x4xf32>, vector<1x4xf32>, vector<1x4xf32> -> vector<1x16xf32>
    %912 = vector.broadcast %911 : vector<1x16xf32> to vector<8x16xf32>
    %913 = arith.mulf %1, %912 : vector<8x16xf32>
    %914 = arith.addf %913, %2 : vector<8x16xf32>
    %915 = vector.extract_strided_slice %870 {offsets = [0, 0], sizes = [1, 16], strides = [1, 1]} : vector<8x16xf32> to vector<1x16xf32>
    %916 = vector.broadcast %915 : vector<1x16xf32> to vector<8x16xf32>
    %917 = arith.mulf %3, %916 : vector<8x16xf32>
    %918 = arith.addf %914, %917 : vector<8x16xf32>
    %919 = vector.extract_strided_slice %870 {offsets = [1, 0], sizes = [1, 16], strides = [1, 1]} : vector<8x16xf32> to vector<1x16xf32>
    %920 = vector.broadcast %919 : vector<1x16xf32> to vector<8x16xf32>
    %921 = arith.mulf %4, %920 : vector<8x16xf32>
    %922 = arith.addf %918, %921 : vector<8x16xf32>
    %923 = vector.extract_strided_slice %870 {offsets = [2, 0], sizes = [1, 16], strides = [1, 1]} : vector<8x16xf32> to vector<1x16xf32>
    %924 = vector.broadcast %923 : vector<1x16xf32> to vector<8x16xf32>
    %925 = arith.mulf %5, %924 : vector<8x16xf32>
    %926 = arith.addf %922, %925 : vector<8x16xf32>
    %927 = vector.extract_strided_slice %870 {offsets = [3, 0], sizes = [1, 16], strides = [1, 1]} : vector<8x16xf32> to vector<1x16xf32>
    %928 = vector.broadcast %927 : vector<1x16xf32> to vector<8x16xf32>
    %929 = arith.mulf %6, %928 : vector<8x16xf32>
    %930 = arith.addf %926, %929 : vector<8x16xf32>
    %931 = vector.extract_strided_slice %870 {offsets = [4, 0], sizes = [1, 16], strides = [1, 1]} : vector<8x16xf32> to vector<1x16xf32>
    %932 = vector.broadcast %931 : vector<1x16xf32> to vector<8x16xf32>
    %933 = arith.mulf %7, %932 : vector<8x16xf32>
    %934 = arith.addf %930, %933 : vector<8x16xf32>
    %935 = math.tanh %934 : vector<8x16xf32>
    %cst_84 = arith.constant 1.000000e+00 : f32
    %936 = vector.broadcast %cst_84 : f32 to vector<8x16xf32>
    %937 = arith.addf %936, %935 : vector<8x16xf32>
    %938 = vector.extract_strided_slice %937 {offsets = [0, 0], sizes = [8, 4], strides = [1, 1]} : vector<8x16xf32> to vector<8x4xf32>
    %939 = vector.extract_strided_slice %937 {offsets = [0, 4], sizes = [8, 4], strides = [1, 1]} : vector<8x16xf32> to vector<8x4xf32>
    %940 = vector.extract_strided_slice %935 {offsets = [0, 8], sizes = [8, 4], strides = [1, 1]} : vector<8x16xf32> to vector<8x4xf32>
    %941 = vector.extract_strided_slice %937 {offsets = [0, 12], sizes = [8, 4], strides = [1, 1]} : vector<8x16xf32> to vector<8x4xf32>
    %942 = arith.mulf %939, %865 : vector<8x4xf32>
    %943 = arith.mulf %938, %940 : vector<8x4xf32>
    %944 = arith.addf %942, %943 : vector<8x4xf32>
    %cst_85 = arith.constant 5.000000e-01 : f32
    %945 = vector.broadcast %cst_85 : f32 to vector<8x4xf32>
    %946 = arith.mulf %945, %944 : vector<8x4xf32>
    %947 = math.tanh %946 : vector<8x4xf32>
    %948 = arith.mulf %941, %947 : vector<8x4xf32>
    %cst_86 = arith.constant 5.000000e-01 : f32
    %949 = vector.broadcast %cst_86 : f32 to vector<8x4xf32>
    %950 = arith.mulf %949, %948 : vector<8x4xf32>
    %951 = vector.broadcast %909 : vector<1x4xf32> to vector<4x4xf32>
    %952 = arith.mulf %13, %951 : vector<4x4xf32>
    %953 = arith.addf %14, %952 : vector<4x4xf32>
    %954 = vector.extract_strided_slice %950 {offsets = [0, 0], sizes = [1, 4], strides = [1, 1]} : vector<8x4xf32> to vector<1x4xf32>
    %955 = vector.broadcast %954 : vector<1x4xf32> to vector<4x4xf32>
    %956 = arith.mulf %8, %955 : vector<4x4xf32>
    %957 = arith.addf %953, %956 : vector<4x4xf32>
    %958 = vector.extract_strided_slice %950 {offsets = [1, 0], sizes = [1, 4], strides = [1, 1]} : vector<8x4xf32> to vector<1x4xf32>
    %959 = vector.broadcast %958 : vector<1x4xf32> to vector<4x4xf32>
    %960 = arith.mulf %9, %959 : vector<4x4xf32>
    %961 = arith.addf %957, %960 : vector<4x4xf32>
    %962 = vector.extract_strided_slice %950 {offsets = [2, 0], sizes = [1, 4], strides = [1, 1]} : vector<8x4xf32> to vector<1x4xf32>
    %963 = vector.broadcast %962 : vector<1x4xf32> to vector<4x4xf32>
    %964 = arith.mulf %10, %963 : vector<4x4xf32>
    %965 = arith.addf %961, %964 : vector<4x4xf32>
    %966 = vector.extract_strided_slice %950 {offsets = [3, 0], sizes = [1, 4], strides = [1, 1]} : vector<8x4xf32> to vector<1x4xf32>
    %967 = vector.broadcast %966 : vector<1x4xf32> to vector<4x4xf32>
    %968 = arith.mulf %11, %967 : vector<4x4xf32>
    %969 = arith.addf %965, %968 : vector<4x4xf32>
    %970 = vector.extract_strided_slice %950 {offsets = [4, 0], sizes = [1, 4], strides = [1, 1]} : vector<8x4xf32> to vector<1x4xf32>
    %971 = vector.broadcast %970 : vector<1x4xf32> to vector<4x4xf32>
    %972 = arith.mulf %12, %971 : vector<4x4xf32>
    %973 = arith.addf %969, %972 : vector<4x4xf32>
    %974 = math.tanh %973 : vector<4x4xf32>
    %cst_87 = arith.constant 1.000000e+00 : f32
    %975 = vector.broadcast %cst_87 : f32 to vector<4x4xf32>
    %976 = arith.addf %975, %974 : vector<4x4xf32>
    %977 = vector.extract_strided_slice %976 {offsets = [0, 0], sizes = [1, 4], strides = [1, 1]} : vector<4x4xf32> to vector<1x4xf32>
    %978 = vector.extract_strided_slice %976 {offsets = [1, 0], sizes = [1, 4], strides = [1, 1]} : vector<4x4xf32> to vector<1x4xf32>
    %979 = vector.extract_strided_slice %974 {offsets = [2, 0], sizes = [1, 4], strides = [1, 1]} : vector<4x4xf32> to vector<1x4xf32>
    %980 = vector.extract_strided_slice %976 {offsets = [3, 0], sizes = [1, 4], strides = [1, 1]} : vector<4x4xf32> to vector<1x4xf32>
    %981 = arith.mulf %978, %905 : vector<1x4xf32>
    %982 = arith.mulf %977, %979 : vector<1x4xf32>
    %983 = arith.addf %981, %982 : vector<1x4xf32>
    %cst_88 = arith.constant 5.000000e-01 : f32
    %984 = vector.broadcast %cst_88 : f32 to vector<1x4xf32>
    %985 = arith.mulf %984, %983 : vector<1x4xf32>
    %986 = math.tanh %985 : vector<1x4xf32>
    %987 = arith.mulf %980, %986 : vector<1x4xf32>
    %cst_89 = arith.constant 5.000000e-01 : f32
    %988 = vector.broadcast %cst_89 : f32 to vector<1x4xf32>
    %989 = arith.mulf %988, %987 : vector<1x4xf32>
    %c11 = arith.constant 11 : index
    %c0_90 = arith.constant 0 : index
    %990 = vector.load %arg2[%c11, %c0_90] : memref<12x4xf32, #tpu.memory_space<vmem>>, vector<1x4xf32>
    tpu.vector_store %arg2[%c11, %c0_90], %989 {strides = array<i32>} : memref<12x4xf32, #tpu.memory_space<vmem>>, vector<1x4xf32>,
    return
  }
}

</mosaic_0001>

<bundles_post_ra>
// kernel: tpu_custom_call.1
= control target key start
LH: loop header
LB: loop body
LE: loop exit
PB: predicated region body
PF: predicated region fallthrough
CT: control target
= control target key end

     0   :  { %v26_v0 = vlaneseq  ;;  %s1905_s24 = smov 120   ;;  %s1906_s25 = smov 4   ;;  %vm73_vm0 = vcmask 31744   ;;  %vm75_vm1 = vcmask 64512   ;;  %vm77_vm2 = vcmask 97280   ;;  %s2843_s0 = inlined_call_operand.vmem [shape: f32[8,16], index: 0, kind: input, shape index: {}]   ;;  %s2844_s1 = inlined_call_operand.vmem [shape: f32[112,16], index: 1, kind: input, shape index: {}]   ;;  %s2845_s2 = inlined_call_operand.vmem [shape: f32[12,4], index: 2, kind: output, shape index: {}]  }
   0x1   :  { %v1931_v2 = vld [vmem:[%s2843_s0] sm:$0xff]  ;;  %v1944_v5 = vld [vmem:[%s2844_s1 + $0x10] sm:$0xff]  ;;  %v1951_v7 = vld [vmem:[%s2844_s1 + $0x8] sm:$0xff]  ;;  %s1907_s26 = smov 8   ;;  %s1908_s27 = smov 116   ;;  %vm149_vm3 = vcmask 27651  }
   0x2   :  { %v1926_v1 = vshrl.u32 %v26_v0, 7  ;;  %v1939_v4 = vld [vmem:[%s2844_s1] sm:$0xff]  ;;  %v1956_v8 = vld [vmem:[%s2844_s1 + $0x18] sm:$0xff]  ;;  %v32_v10 = vmul.f32 0.0, %v1944_v5  ;;  %v1970_v14 = vld [vmem:[%s2844_s1 + $0x28] sm:$0xff]  ;;  %s1909_s28 = smov 124  }
   0x3   :  { %v1963_v11 = vld [vmem:[%s2844_s1 + $0x20] sm:$0xff]  ;;  %v34_v13 = vmul.f32 0.0, %v1956_v8  ;;  %v1976_v17 = vld [vmem:[%s2844_s1 + $0x30] sm:$0xff]  ;;  %v38_v19 = vmul.f32 0.0, %v1970_v14  ;;  %s1910_s7 = smov 12  }
   0x4   :  { %v1934_v3 = vsub.s32 0, %v1926_v1  ;;  %v36_v16 = vmul.f32 0.0, %v1963_v11  ;;  %v40_v21 = vmul.f32 0.0, %v1976_v17  ;;  %v1992_v36 = vsub.s32 1, %v1926_v1 }
   0x5   :  { %v2002_v45 = vsub.s32 2, %v1926_v1  ;;  %v2008_v49 = vsub.s32 3, %v1926_v1  ;;  %v2013_v52 = vsub.s32 4, %v1926_v1 }
   0x6   :  { %v29_v6 = vrot.slane %v1931_v2, %v1934_v3  ;;  %v154_v37 = vrot.slane %v1931_v2, %v1992_v36 }
   0x8   :  { %v30_v9 = vmul.f32 %v29_v6, %v1939_v4  ;;  %v155_v40 = vmul.f32 %v154_v37, %v1939_v4 }
   0xa   :  { %v31_v12 = vadd.f32 %v30_v9, %v1951_v7  ;;  %v156_v46 = vadd.f32 %v155_v40, %v1951_v7 }
   0xc   :  { %v33_v15 = vadd.f32 %v32_v10, %v31_v12 }
   0xe   :  { %v35_v18 = vadd.f32 %v34_v13, %v33_v15 }
  0x10   :  { %v37_v20 = vadd.f32 %v36_v16, %v35_v18 }
  0x12   :  { %v39_v22 = vadd.f32 %v38_v19, %v37_v20 }
  0x14   :  { %v41_v23 = vadd.f32 %v40_v21, %v39_v22  ;;  %v299_v22 = vrot.slane %v1931_v2, %v2002_v45 }
  0x16   :  { %1795 = vtanh.f32 %v41_v23 }
  0x20   :  { %v1796_v24 = vpop.eup %1795 }
  0x21   :  { %46 = vrot.lane.b32.xlu0 %v1796_v24, %s1905_s24  ;;  %v43_v25 = vadd.f32 1.0, %v1796_v24 }
  0x23   :  { %v44_v28 = vmul.f32 0.0, %v43_v25 }
  0x93   :  { %v47_v26 = vpop.permute.xlu0 %46 }
  0x94   :  { %v49_v27 = vmul.f32 %v47_v26, %v43_v25 }
  0x96   :  { %51 = vrot.lane.b32.xlu0 %v49_v27, %s1906_s25 }
 0x108   :  { %v52_v29 = vpop.permute.xlu0 %51 }
 0x109   :  { %v54_v30 = vadd.f32 %v52_v29, %v44_v28 }
 0x10b   :  { %v55_v31 = vmul.f32 0.5, %v54_v30 }
 0x10d   :  { %1797 = vtanh.f32 %v55_v31 }
 0x117   :  { %v1798_v32 = vpop.eup %1797 }
 0x118   :  { %58 = vrot.lane.b32.xlu1 %v1798_v32, %s1907_s26 }
 0x18a   :  { %v59_v33 = vpop.permute.xlu1 %58 }
 0x18b   :  { %v61_v34 = vmul.f32 %v59_v33, %v43_v25  ;;  %v300_v25 = vmul.f32 %v299_v22, %v1939_v4 }
 0x18d   :  { %v1983_v35 = vmul.f32 0.5, %v61_v34  ;;  %v301_v30 = vadd.f32 %v300_v25, %v1951_v7 }
 0x18f   :  { %67 = vrot.lane.b32.xlu0 %v1983_v35, %s1905_s24  ;;  %64 = vrot.lane.b32.xlu1 %v1983_v35, %s1908_s27 }
 0x193   :  { %70 = vrot.lane.b32.xlu1 %v1983_v35, %s1909_s28 }
 0x201   :  { %v65_v38 = vpop.permute.xlu1 %64  ;;  %v68_v39 = vpop.permute.xlu0 %67 }
 0x202   :  { %v74_v41 = vsel %vm73_vm0, %v65_v38, %v68_v39 }
 0x205   :  { %v71_v42 = vpop.permute.xlu1 %70 }
 0x206   :  { %v76_v43 = vsel %vm75_vm1, %v74_v41, %v71_v42 }
 0x207   :  { %v78_v44 = vsel %vm77_vm2, %v76_v43, %v1983_v35 }
 0x208   :  { %v160_v47 = vrot.slane %v78_v44, %v1934_v3  ;;  %v166_v48 = vrot.slane %v78_v44, %v1992_v36  ;;  %v172_v51 = vrot.slane %v78_v44, %v2002_v45  ;;  %v178_v55 = vrot.slane %v78_v44, %v2008_v49 }
 0x209   :  { %v184_v58 = vrot.slane %v78_v44, %v2013_v52 }
 0x20a   :  { %v161_v50 = vmul.f32 %v160_v47, %v1944_v5  ;;  %v167_v54 = vmul.f32 %v166_v48, %v1956_v8  ;;  %v173_v57 = vmul.f32 %v172_v51, %v1963_v11  ;;  %v179_v60 = vmul.f32 %v178_v55, %v1970_v14 }
 0x20b   :  { %v185_v62 = vmul.f32 %v184_v58, %v1976_v17 }
 0x20c   :  { %v162_v53 = vadd.f32 %v161_v50, %v156_v46 }
 0x20e   :  { %v168_v56 = vadd.f32 %v167_v54, %v162_v53 }
 0x210   :  { %v174_v59 = vadd.f32 %v173_v57, %v168_v56 }
 0x212   :  { %v180_v61 = vadd.f32 %v179_v60, %v174_v59 }
 0x214   :  { %v186_v63 = vadd.f32 %v185_v62, %v180_v61 }
 0x216   :  { %1799 = vtanh.f32 %v186_v63  ;;  %v444_v63 = vrot.slane %v1931_v2, %v2008_v49 }
 0x220   :  { %v1800_v0 = vpop.eup %1799 }
 0x221   :  { %191 = vrot.lane.b32.xlu0 %v1800_v0, %s1905_s24  ;;  %v188_v6 = vadd.f32 1.0, %v1800_v0 }
 0x223   :  { %v189_v12 = vmul.f32 %v188_v6, %v55_v31 }
 0x293   :  { %v192_v9 = vpop.permute.xlu0 %191 }
 0x294   :  { %v194_v10 = vmul.f32 %v192_v9, %v188_v6  ;;  %v445_v9 = vmul.f32 %v444_v63, %v1939_v4 }
 0x296   :  { %196 = vrot.lane.b32.xlu1 %v194_v10, %s1906_s25 }
 0x308   :  { %v197_v13 = vpop.permute.xlu1 %196 }
 0x309   :  { %v199_v15 = vadd.f32 %v197_v13, %v189_v12 }
 0x30b   :  { %v200_v16 = vmul.f32 0.5, %v199_v15 }
 0x30d   :  { %1801 = vtanh.f32 %v200_v16 }
 0x317   :  { %v1802_v18 = vpop.eup %1801 }
 0x318   :  { %203 = vrot.lane.b32.xlu0 %v1802_v18, %s1907_s26 }
 0x38a   :  { %v204_v19 = vpop.permute.xlu0 %203 }
 0x38b   :  { %v206_v20 = vmul.f32 %v204_v19, %v188_v6 }
 0x38d   :  { %v2024_v21 = vmul.f32 0.5, %v206_v20 }
 0x38f   :  { %212 = vrot.lane.b32.xlu0 %v2024_v21, %s1905_s24  ;;  %209 = vrot.lane.b32.xlu1 %v2024_v21, %s1908_s27 }
 0x393   :  { %215 = vrot.lane.b32.xlu1 %v2024_v21, %s1909_s28 }
 0x401   :  { %v210_v23 = vpop.permute.xlu1 %209  ;;  %v213_v24 = vpop.permute.xlu0 %212 }
 0x402   :  { %v218_v26 = vsel %vm73_vm0, %v210_v23, %v213_v24 }
 0x405   :  { %v216_v27 = vpop.permute.xlu1 %215 }
 0x406   :  { %v219_v28 = vsel %vm75_vm1, %v218_v26, %v216_v27 }
 0x407   :  { %v220_v29 = vsel %vm77_vm2, %v219_v28, %v2024_v21 }
 0x408   :  { %v305_v31 = vrot.slane %v220_v29, %v1934_v3  ;;  %v311_v32 = vrot.slane %v220_v29, %v1992_v36  ;;  %v317_v34 = vrot.slane %v220_v29, %v2002_v45  ;;  %v323_v39 = vrot.slane %v220_v29, %v2008_v49 }
 0x409   :  { %v329_v42 = vrot.slane %v220_v29, %v2013_v52 }
 0x40a   :  { %v306_v33 = vmul.f32 %v305_v31, %v1944_v5  ;;  %v312_v38 = vmul.f32 %v311_v32, %v1956_v8  ;;  %v318_v41 = vmul.f32 %v317_v34, %v1963_v11  ;;  %v324_v44 = vmul.f32 %v323_v39, %v1970_v14 }
 0x40b   :  { %v330_v47 = vmul.f32 %v329_v42, %v1976_v17 }
 0x40c   :  { %v307_v37 = vadd.f32 %v306_v33, %v301_v30 }
 0x40e   :  { %v313_v40 = vadd.f32 %v312_v38, %v307_v37 }
 0x410   :  { %v319_v43 = vadd.f32 %v318_v41, %v313_v40 }
 0x412   :  { %v325_v46 = vadd.f32 %v324_v44, %v319_v43 }
 0x414   :  { %v331_v48 = vadd.f32 %v330_v47, %v325_v46 }
 0x416   :  { %1803 = vtanh.f32 %v331_v48 }
 0x420   :  { %v1804_v50 = vpop.eup %1803 }
 0x421   :  { %336 = vrot.lane.b32.xlu0 %v1804_v50, %s1905_s24  ;;  %v333_v51 = vadd.f32 1.0, %v1804_v50  ;;  %v589_v50 = vrot.slane %v1931_v2, %v2013_v52 }
 0x423   :  { %v334_v55 = vmul.f32 %v333_v51, %v200_v16  ;;  %v446_v16 = vadd.f32 %v445_v9, %v1951_v7 }
 0x493   :  { %v337_v53 = vpop.permute.xlu0 %336 }
 0x494   :  { %v339_v54 = vmul.f32 %v337_v53, %v333_v51 }
 0x496   :  { %341 = vrot.lane.b32.xlu1 %v339_v54, %s1906_s25  ;;  %v590_v54 = vmul.f32 %v589_v50, %v1939_v4 }
 0x508   :  { %v342_v56 = vpop.permute.xlu1 %341 }
 0x509   :  { %v344_v57 = vadd.f32 %v342_v56, %v334_v55 }
 0x50b   :  { %v345_v58 = vmul.f32 0.5, %v344_v57 }
 0x50d   :  { %1805 = vtanh.f32 %v345_v58 }
 0x517   :  { %v1806_v59 = vpop.eup %1805 }
 0x518   :  { %348 = vrot.lane.b32.xlu0 %v1806_v59, %s1907_s26  ;;  %v591_v59 = vadd.f32 %v590_v54, %v1951_v7 }
 0x58a   :  { %v349_v60 = vpop.permute.xlu0 %348 }
 0x58b   :  { %v351_v61 = vmul.f32 %v349_v60, %v333_v51 }
 0x58d   :  { %v2053_v62 = vmul.f32 0.5, %v351_v61 }
 0x58f   :  { %357 = vrot.lane.b32.xlu0 %v2053_v62, %s1905_s24  ;;  %354 = vrot.lane.b32.xlu1 %v2053_v62, %s1908_s27 }
 0x593   :  { %360 = vrot.lane.b32.xlu1 %v2053_v62, %s1909_s28 }
 0x601   :  { %v355_v0 = vpop.permute.xlu1 %354  ;;  %v358_v6 = vpop.permute.xlu0 %357 }
 0x602   :  { %v363_v10 = vsel %vm73_vm0, %v355_v0, %v358_v6 }
 0x605   :  { %v361_v12 = vpop.permute.xlu1 %360 }
 0x606   :  { %v364_v13 = vsel %vm75_vm1, %v363_v10, %v361_v12 }
 0x607   :  { %v365_v15 = vsel %vm77_vm2, %v364_v13, %v2053_v62 }
 0x608   :  { %v450_v18 = vrot.slane %v365_v15, %v1934_v3  ;;  %v456_v19 = vrot.slane %v365_v15, %v1992_v36  ;;  %v462_v22 = vrot.slane %v365_v15, %v2002_v45  ;;  %v468_v25 = vrot.slane %v365_v15, %v2008_v49 }
 0x609   :  { %v474_v28 = vrot.slane %v365_v15, %v2013_v52 }
 0x60a   :  { %v451_v20 = vmul.f32 %v450_v18, %v1944_v5  ;;  %v457_v24 = vmul.f32 %v456_v19, %v1956_v8  ;;  %v463_v27 = vmul.f32 %v462_v22, %v1963_v11  ;;  %v469_v30 = vmul.f32 %v468_v25, %v1970_v14 }
 0x60b   :  { %v475_v32 = vmul.f32 %v474_v28, %v1976_v17 }
 0x60c   :  { %v452_v23 = vadd.f32 %v451_v20, %v446_v16 }
 0x60e   :  { %v458_v26 = vadd.f32 %v457_v24, %v452_v23 }
 0x610   :  { %v464_v29 = vadd.f32 %v463_v27, %v458_v26 }
 0x612   :  { %v470_v31 = vadd.f32 %v469_v30, %v464_v29 }
 0x614   :  { %v476_v33 = vadd.f32 %v475_v32, %v470_v31 }
 0x616   :  { %1807 = vtanh.f32 %v476_v33 }
 0x620   :  { %v1808_v34 = vpop.eup %1807 }
 0x621   :  { %481 = vrot.lane.b32.xlu0 %v1808_v34, %s1905_s24  ;;  %v478_v37 = vadd.f32 1.0, %v1808_v34 }
 0x623   :  { %v479_v40 = vmul.f32 %v478_v37, %v345_v58 }
 0x693   :  { %v482_v38 = vpop.permute.xlu0 %481 }
 0x694   :  { %v484_v39 = vmul.f32 %v482_v38, %v478_v37 }
 0x696   :  { %486 = vrot.lane.b32.xlu1 %v484_v39, %s1906_s25 }
 0x708   :  { %v487_v41 = vpop.permute.xlu1 %486 }
 0x709   :  { %v489_v42 = vadd.f32 %v487_v41, %v479_v40 }
 0x70b   :  { %v490_v43 = vmul.f32 0.5, %v489_v42 }
 0x70d   :  { %1809 = vtanh.f32 %v490_v43 }
 0x717   :  { %v1810_v44 = vpop.eup %1809 }
 0x718   :  { %493 = vrot.lane.b32.xlu0 %v1810_v44, %s1907_s26 }
 0x78a   :  { %v494_v46 = vpop.permute.xlu0 %493 }
 0x78b   :  { %v496_v47 = vmul.f32 %v494_v46, %v478_v37  ;;  %v733_v37 = vsub.s32 5, %v1926_v1 }
 0x78d   :  { %v2082_v48 = vmul.f32 0.5, %v496_v47  ;;  %v734_v38 = vrot.slane %v1931_v2, %v733_v37 }
 0x78f   :  { %502 = vrot.lane.b32.xlu0 %v2082_v48, %s1905_s24  ;;  %499 = vrot.lane.b32.xlu1 %v2082_v48, %s1908_s27  ;;  %v735_v41 = vmul.f32 %v734_v38, %v1939_v4 }
 0x791   :  { %v736_v47 = vadd.f32 %v735_v41, %v1951_v7 }
 0x793   :  { %505 = vrot.lane.b32.xlu1 %v2082_v48, %s1909_s28 }
 0x801   :  { %v500_v51 = vpop.permute.xlu1 %499  ;;  %v503_v53 = vpop.permute.xlu0 %502 }
 0x802   :  { %v508_v55 = vsel %vm73_vm0, %v500_v51, %v503_v53 }
 0x805   :  { %v506_v56 = vpop.permute.xlu1 %505 }
 0x806   :  { %v509_v57 = vsel %vm75_vm1, %v508_v55, %v506_v56 }
 0x807   :  { %v510_v58 = vsel %vm77_vm2, %v509_v57, %v2082_v48 }
 0x808   :  { %v595_v60 = vrot.slane %v510_v58, %v1934_v3  ;;  %v601_v61 = vrot.slane %v510_v58, %v1992_v36  ;;  %v607_v0 = vrot.slane %v510_v58, %v2002_v45  ;;  %v613_v10 = vrot.slane %v510_v58, %v2008_v49 }
 0x809   :  { %v619_v15 = vrot.slane %v510_v58, %v2013_v52 }
 0x80a   :  { %v596_v63 = vmul.f32 %v595_v60, %v1944_v5  ;;  %v602_v9 = vmul.f32 %v601_v61, %v1956_v8  ;;  %v608_v13 = vmul.f32 %v607_v0, %v1963_v11  ;;  %v614_v18 = vmul.f32 %v613_v10, %v1970_v14 }
 0x80b   :  { %v620_v20 = vmul.f32 %v619_v15, %v1976_v17 }
 0x80c   :  { %v597_v6 = vadd.f32 %v596_v63, %v591_v59 }
 0x80e   :  { %v603_v12 = vadd.f32 %v602_v9, %v597_v6 }
 0x810   :  { %v609_v16 = vadd.f32 %v608_v13, %v603_v12 }
 0x812   :  { %v615_v19 = vadd.f32 %v614_v18, %v609_v16 }
 0x814   :  { %v621_v22 = vadd.f32 %v620_v20, %v615_v19 }
 0x816   :  { %1811 = vtanh.f32 %v621_v22 }
 0x820   :  { %v1812_v23 = vpop.eup %1811 }
 0x821   :  { %626 = vrot.lane.b32.xlu0 %v1812_v23, %s1905_s24  ;;  %v623_v24 = vadd.f32 1.0, %v1812_v23 }
 0x823   :  { %v624_v27 = vmul.f32 %v623_v24, %v490_v43 }
 0x893   :  { %v627_v25 = vpop.permute.xlu0 %626 }
 0x894   :  { %v629_v26 = vmul.f32 %v627_v25, %v623_v24 }
 0x896   :  { %631 = vrot.lane.b32.xlu1 %v629_v26, %s1906_s25  ;;  %v878_v26 = vsub.s32 6, %v1926_v1 }
 0x908   :  { %v632_v28 = vpop.permute.xlu1 %631 }
 0x909   :  { %v634_v29 = vadd.f32 %v632_v28, %v624_v27  ;;  %v879_v27 = vrot.slane %v1931_v2, %v878_v26 }
 0x90b   :  { %v635_v30 = vmul.f32 0.5, %v634_v29 }
 0x90d   :  { %1813 = vtanh.f32 %v635_v30 }
 0x917   :  { %v1814_v31 = vpop.eup %1813 }
 0x918   :  { %638 = vrot.lane.b32.xlu0 %v1814_v31, %s1907_s26 }
 0x98a   :  { %v639_v32 = vpop.permute.xlu0 %638 }
 0x98b   :  { %v641_v33 = vmul.f32 %v639_v32, %v623_v24 }
 0x98d   :  { %v2111_v34 = vmul.f32 0.5, %v641_v33 }
 0x98f   :  { %647 = vrot.lane.b32.xlu0 %v2111_v34, %s1905_s24  ;;  %644 = vrot.lane.b32.xlu1 %v2111_v34, %s1908_s27 }
 0x993   :  { %650 = vrot.lane.b32.xlu1 %v2111_v34, %s1909_s28 }
 0xa01   :  { %v645_v39 = vpop.permute.xlu1 %644  ;;  %v648_v40 = vpop.permute.xlu0 %647 }
 0xa02   :  { %v653_v42 = vsel %vm73_vm0, %v645_v39, %v648_v40 }
 0xa05   :  { %v651_v43 = vpop.permute.xlu1 %650 }
 0xa06   :  { %v654_v44 = vsel %vm75_vm1, %v653_v42, %v651_v43 }
 0xa07   :  { %v655_v46 = vsel %vm77_vm2, %v654_v44, %v2111_v34 }
 0xa08   :  { %v740_v50 = vrot.slane %v655_v46, %v1934_v3  ;;  %v746_v51 = vrot.slane %v655_v46, %v1992_v36  ;;  %v752_v54 = vrot.slane %v655_v46, %v2002_v45  ;;  %v758_v57 = vrot.slane %v655_v46, %v2008_v49 }
 0xa09   :  { %v764_v60 = vrot.slane %v655_v46, %v2013_v52 }
 0xa0a   :  { %v741_v53 = vmul.f32 %v740_v50, %v1944_v5  ;;  %v747_v56 = vmul.f32 %v746_v51, %v1956_v8  ;;  %v753_v59 = vmul.f32 %v752_v54, %v1963_v11  ;;  %v759_v63 = vmul.f32 %v758_v57, %v1970_v14 }
 0xa0b   :  { %v765_v6 = vmul.f32 %v764_v60, %v1976_v17  ;;  %v104_v60 = vrot.slane %v1983_v35, %v2002_v45 }
 0xa0c   :  { %v742_v55 = vadd.f32 %v741_v53, %v736_v47 }
 0xa0e   :  { %v748_v58 = vadd.f32 %v747_v56, %v742_v55 }
 0xa10   :  { %v754_v61 = vadd.f32 %v753_v59, %v748_v58  ;;  %v84_v59 = vrot.slane %v1983_v35, %v1934_v3 }
 0xa12   :  { %v760_v0 = vadd.f32 %v759_v63, %v754_v61  ;;  %v124_v61 = vrot.slane %v1983_v35, %v2013_v52  ;;  %v230_v63 = vrot.slane %v2024_v21, %v1934_v3 }
 0xa14   :  { %v766_v9 = vadd.f32 %v765_v6, %v760_v0  ;;  %v250_v0 = vrot.slane %v2024_v21, %v2002_v45  ;;  %v270_v6 = vrot.slane %v2024_v21, %v2013_v52 }
 0xa16   :  { %1815 = vtanh.f32 %v766_v9 }
 0xa20   :  { %v1816_v10 = vpop.eup %1815 }
 0xa21   :  { %771 = vrot.lane.b32.xlu0 %v1816_v10, %s1905_s24  ;;  %v768_v12 = vadd.f32 1.0, %v1816_v10 }
 0xa23   :  { %v769_v16 = vmul.f32 %v768_v12, %v635_v30  ;;  %v880_v30 = vmul.f32 %v879_v27, %v1939_v4 }
 0xa25   :  { %v881_v38 = vadd.f32 %v880_v30, %v1951_v7  ;;  %v2221_v30 = vld [vmem:[%s2844_s1 + $0x40] sm:$0xff] }
 0xa93   :  { %v772_v13 = vpop.permute.xlu0 %771 }
 0xa94   :  { %v774_v15 = vmul.f32 %v772_v13, %v768_v12  ;;  %v94_v13 = vrot.slane %v1983_v35, %v1992_v36 }
 0xa96   :  { %776 = vrot.lane.b32.xlu1 %v774_v15, %s1906_s25  ;;  %v114_v15 = vrot.slane %v1983_v35, %v2008_v49 }
 0xb08   :  { %v777_v18 = vpop.permute.xlu1 %776 }
 0xb09   :  { %v779_v19 = vadd.f32 %v777_v18, %v769_v16  ;;  %v2201_v16 = vld [vmem:[%s2844_s1 + $0x60] sm:$0xff] }
 0xb0b   :  { %v2139_v20 = vmul.f32 0.5, %v779_v19  ;;  %v79_v19 = vmul.f32 0.0, %v2201_v16 }
 0xb0d   :  { %1817 = vtanh.f32 %v2139_v20 }
 0xb17   :  { %v1818_v22 = vpop.eup %1817 }
 0xb18   :  { %783 = vrot.lane.b32.xlu0 %v1818_v22, %s1907_s26  ;;  %v2207_v22 = vld [vmem:[%s2844_s1 + $0x38] sm:$0xff] }
 0xb8a   :  { %v784_v23 = vpop.permute.xlu0 %783 }
 0xb8b   :  { %v786_v24 = vmul.f32 %v784_v23, %v768_v12  ;;  %v2212_v23 = vld [vmem:[%s2844_s1 + $0x68] sm:$0xff] }
 0xb8c   :  { %v80_v26 = vadd.f32 %v79_v19, %v2212_v23 }
 0xb8d   :  { %v2143_v25 = vmul.f32 0.5, %v786_v24 }
 0xb8f   :  { %792 = vrot.lane.b32.xlu0 %v2143_v25, %s1905_s24  ;;  %789 = vrot.lane.b32.xlu1 %v2143_v25, %s1908_s27 }
 0xb93   :  { %795 = vrot.lane.b32.xlu1 %v2143_v25, %s1909_s28 }
 0xc01   :  { %v790_v28 = vpop.permute.xlu1 %789  ;;  %v793_v29 = vpop.permute.xlu0 %792 }
 0xc02   :  { %v798_v31 = vsel %vm73_vm0, %v790_v28, %v793_v29 }
 0xc05   :  { %v796_v32 = vpop.permute.xlu1 %795 }
 0xc06   :  { %v799_v33 = vsel %vm75_vm1, %v798_v31, %v796_v32  ;;  %v2228_v32 = vld [vmem:[%s2844_s1 + $0x48] sm:$0xff] }
 0xc07   :  { %v800_v37 = vsel %vm77_vm2, %v799_v33, %v2143_v25 }
 0xc08   :  { %v885_v39 = vrot.slane %v800_v37, %v1934_v3  ;;  %v891_v40 = vrot.slane %v800_v37, %v1992_v36  ;;  %v897_v42 = vrot.slane %v800_v37, %v2002_v45  ;;  %v903_v46 = vrot.slane %v800_v37, %v2008_v49 }
 0xc09   :  { %v909_v51 = vrot.slane %v800_v37, %v2013_v52 }
 0xc0a   :  { %v886_v41 = vmul.f32 %v885_v39, %v1944_v5  ;;  %v892_v44 = vmul.f32 %v891_v40, %v1956_v8  ;;  %v898_v50 = vmul.f32 %v897_v42, %v1963_v11  ;;  %v904_v54 = vmul.f32 %v903_v46, %v1970_v14 }
 0xc0b   :  { %v910_v56 = vmul.f32 %v909_v51, %v1976_v17 }
 0xc0c   :  { %v887_v43 = vadd.f32 %v886_v41, %v881_v38  ;;  %v2235_v38 = vld [vmem:[%s2844_s1 + $0x50] sm:$0xff]  ;;  %v2241_v41 = vld [vmem:[%s2844_s1 + $0x58] sm:$0xff] }
 0xc0e   :  { %v893_v47 = vadd.f32 %v892_v44, %v887_v43 }
 0xc10   :  { %v899_v53 = vadd.f32 %v898_v50, %v893_v47 }
 0xc12   :  { %v905_v55 = vadd.f32 %v904_v54, %v899_v53  ;;  %v240_v54 = vrot.slane %v2024_v21, %v1992_v36 }
 0xc14   :  { %v911_v57 = vadd.f32 %v910_v56, %v905_v55  ;;  %v260_v55 = vrot.slane %v2024_v21, %v2008_v49 }
 0xc16   :  { %1819 = vtanh.f32 %v911_v57 }
 0xc20   :  { %v1820_v58 = vpop.eup %1819 }
 0xc21   :  { %916 = vrot.lane.b32.xlu0 %v1820_v58, %s1905_s24  ;;  %v2188_v9 = vadd.f32 1.0, %v1820_v58 }
 0xc23   :  { %v914_v35 = vmul.f32 %v2188_v9, %v2139_v20 }
 0xc25   :  { %86 = vrot.lane.b32.xlu0 %v84_v59, %s1908_s27 }
 0xc29   :  { %106 = vrot.lane.b32.xlu0 %v104_v60, %s1908_s27 }
 0xc2d   :  { %126 = vrot.lane.b32.xlu0 %v124_v61, %s1908_s27 }
 0xc31   :  { %232 = vrot.lane.b32.xlu0 %v230_v63, %s1908_s27 }
 0xc35   :  { %252 = vrot.lane.b32.xlu0 %v250_v0, %s1908_s27 }
 0xc39   :  { %272 = vrot.lane.b32.xlu0 %v270_v6, %s1908_s27 }
 0xc93   :  { %v917_v10 = vpop.permute.xlu0 %916 }
 0xc94   :  { %v919_v12 = vmul.f32 %v917_v10, %v2188_v9 }
 0xc96   :  { %921 = vrot.lane.b32.xlu1 %v919_v12, %s1906_s25 }
 0xc97   :  { %v87_v18 = vpop.permute.xlu0 %86 }
 0xc98   :  { %v89_v27 = vmul.f32 %v87_v18, %v2207_v22 }
 0xc9a   :  { %96 = vrot.lane.b32.xlu1 %v94_v13, %s1908_s27  ;;  %v90_v33 = vadd.f32 %v89_v27, %v80_v26 }
 0xc9b   :  { %v107_v29 = vpop.permute.xlu0 %106 }
 0xc9c   :  { %v109_v39 = vmul.f32 %v107_v29, %v2228_v32 }
 0xc9e   :  { %116 = vrot.lane.b32.xlu1 %v114_v15, %s1908_s27 }
 0xc9f   :  { %v127_v42 = vpop.permute.xlu0 %126 }
 0xca0   :  { %v129_v47 = vmul.f32 %v127_v42, %v2241_v41 }
 0xca3   :  { %v233_v15 = vpop.permute.xlu0 %232 }
 0xca4   :  { %v235_v27 = vmul.f32 %v233_v15, %v2207_v22 }
 0xca7   :  { %v253_v26 = vpop.permute.xlu0 %252 }
 0xd08   :  { %v922_v24 = vpop.permute.xlu1 %921 }
 0xd09   :  { %v924_v28 = vadd.f32 %v922_v24, %v914_v35 }
 0xd0b   :  { %v2223_v31 = vmul.f32 0.5, %v924_v28 }
 0xd0c   :  { %v97_v20 = vpop.permute.xlu1 %96 }
 0xd0d   :  { %1821 = vtanh.f32 %v2223_v31  ;;  %v99_v37 = vmul.f32 %v97_v20, %v2221_v30 }
 0xd0f   :  { %v100_v40 = vadd.f32 %v99_v37, %v90_v33  ;;  %v255_v37 = vmul.f32 %v253_v26, %v2228_v32 }
 0xd10   :  { %v117_v43 = vpop.permute.xlu1 %116 }
 0xd11   :  { %v110_v44 = vadd.f32 %v109_v39, %v100_v40  ;;  %v119_v46 = vmul.f32 %v117_v43, %v2235_v38  ;;  %v375_v39 = vrot.slane %v2053_v62, %v1934_v3  ;;  %v273_v40 = vpop.permute.xlu0 %272 }
 0xd13   :  { %v120_v50 = vadd.f32 %v119_v46, %v110_v44  ;;  %v275_v46 = vmul.f32 %v273_v40, %v2241_v41 }
 0xd15   :  { %v130_v51 = vadd.f32 %v129_v47, %v120_v50  ;;  %v385_v50 = vrot.slane %v2053_v62, %v1992_v36 }
 0xd17   :  { %v1822_v53 = vpop.eup %1821  ;;  %1823 = vtanh.f32 %v130_v51  ;;  %v395_v51 = vrot.slane %v2053_v62, %v2002_v45 }
 0xd18   :  { %928 = vrot.lane.b32.xlu1 %v1822_v53, %s1907_s26 }
 0xd1c   :  { %242 = vrot.lane.b32.xlu1 %v240_v54, %s1908_s27  ;;  %v405_v54 = vrot.slane %v2053_v62, %v2008_v49 }
 0xd20   :  { %262 = vrot.lane.b32.xlu1 %v260_v55, %s1908_s27  ;;  %v415_v55 = vrot.slane %v2053_v62, %v2013_v52  ;;  %v550_v62 = vrot.slane %v2082_v48, %v2008_v49 }
 0xd21   :  { %v1824_v56 = vpop.eup %1823 }
 0xd22   :  { %v132_v57 = vadd.f32 1.0, %v1824_v56  ;;  %v135_v58 = vrot.slane %v1824_v56, 2  ;;  %v520_v56 = vrot.slane %v2082_v48, %v1934_v3 }
 0xd24   :  { %v137_v59 = vmul.f32 %v135_v58, %v132_v57  ;;  %v133_v60 = vmul.f32 0.0, %v132_v57  ;;  %v540_v58 = vrot.slane %v2082_v48, %v2002_v45 }
 0xd26   :  { %v139_v61 = vrot.slane %v137_v59, 7 }
 0xd28   :  { %v141_v63 = vadd.f32 %v139_v61, %v133_v60 }
 0xd2a   :  { %v142_v0 = vmul.f32 0.5, %v141_v63  ;;  %v560_v63 = vrot.slane %v2082_v48, %v2013_v52 }
 0xd2c   :  { %1825 = vtanh.f32 %v142_v0 }
 0xd36   :  { %v1826_v6 = vpop.eup %1825 }
 0xd37   :  { %v145_v10 = vrot.slane %v1826_v6, 6 }
 0xd39   :  { %v147_v12 = vmul.f32 %v145_v10, %v132_v57  ;;  %v530_v57 = vrot.slane %v2082_v48, %v1992_v36  ;;  %v705_v48 = vrot.slane %v2111_v34, %v2013_v52 }
 0xd3b   :  { %v148_v13 = vmul.f32 0.5, %v147_v12 }
 0xd3d   :  { %150 = vst.msk [vmem:[%s2845_s2 - $0x3] sm:$0x8] %vm149_vm3, %v148_v13  ;;  %v224_v21 = vrot.slane %v148_v13, %v2008_v49  ;;  %v665_v13 = vrot.slane %v2111_v34, %v1934_v3 }
 0xd3f   :  { %v225_v18 = vmul.f32 %v224_v21, %v2201_v16 }
 0xd41   :  { %v226_v24 = vadd.f32 %v225_v18, %v2212_v23  ;;  %v685_v18 = vrot.slane %v2111_v34, %v2002_v45 }
 0xd43   :  { %v236_v20 = vadd.f32 %v235_v27, %v226_v24  ;;  %v850_v27 = vrot.slane %v2143_v25, %v2013_v52 }
 0xd8a   :  { %v929_v19 = vpop.permute.xlu1 %928 }
 0xd8b   :  { %v931_v35 = vmul.f32 %v929_v19, %v2188_v9 }
 0xd8d   :  { %v2261_v28 = vmul.f32 0.5, %v931_v35  ;;  %v830_v35 = vrot.slane %v2143_v25, %v2002_v45 }
 0xd8e   :  { %v243_v29 = vpop.permute.xlu1 %242 }
 0xd8f   :  { %v245_v33 = vmul.f32 %v243_v29, %v2221_v30  ;;  %934 = vrot.lane.b32.xlu1 %v2261_v28, %s1908_s27  ;;  %937 = vrot.lane.b32.xlu0 %v2261_v28, %s1905_s24 }
 0xd91   :  { %v246_v9 = vadd.f32 %v245_v33, %v236_v20  ;;  %v955_v20 = vrot.slane %v2261_v28, %v1934_v3  ;;  %v975_v33 = vrot.slane %v2261_v28, %v2002_v45 }
 0xd92   :  { %v263_v42 = vpop.permute.xlu1 %262 }
 0xd93   :  { %v256_v43 = vadd.f32 %v255_v37, %v246_v9  ;;  %v265_v44 = vmul.f32 %v263_v42, %v2235_v38  ;;  %940 = vrot.lane.b32.xlu1 %v2261_v28, %s1909_s28  ;;  %377 = vrot.lane.b32.xlu0 %v375_v39, %s1908_s27  ;;  %v995_v37 = vrot.slane %v2261_v28, %v2013_v52  ;;  %v1023_v9 = vsub.s32 7, %v1926_v1 }
 0xd95   :  { %v266_v47 = vadd.f32 %v265_v44, %v256_v43  ;;  %v1024_v39 = vrot.slane %v1931_v2, %v1023_v9 }
 0xd97   :  { %v276_v53 = vadd.f32 %v275_v46, %v266_v47  ;;  %387 = vrot.lane.b32.xlu1 %v385_v50, %s1908_s27  ;;  %397 = vrot.lane.b32.xlu0 %v395_v51, %s1908_s27  ;;  %v1025_v44 = vmul.f32 %v1024_v39, %v1939_v4 }
 0xd99   :  { %1827 = vtanh.f32 %v276_v53  ;;  %v1026_v2 = vadd.f32 %v1025_v44, %v1951_v7  ;;  %v695_v44 = vrot.slane %v2111_v34, %v2008_v49 }
 0xd9b   :  { %407 = vrot.lane.b32.xlu1 %v405_v54, %s1908_s27  ;;  %417 = vrot.lane.b32.xlu0 %v415_v55, %s1908_s27 }
 0xd9f   :  { %522 = vrot.lane.b32.xlu1 %v520_v56, %s1908_s27  ;;  %532 = vrot.lane.b32.xlu0 %v530_v57, %s1908_s27 }
 0xda3   :  { %v1828_v59 = vpop.eup %1827  ;;  %542 = vrot.lane.b32.xlu1 %v540_v58, %s1908_s27  ;;  %552 = vrot.lane.b32.xlu0 %v550_v62, %s1908_s27 }
 0xda4   :  { %v278_v60 = vadd.f32 1.0, %v1828_v59  ;;  %v281_v61 = vrot.slane %v1828_v59, 2 }
 0xda6   :  { %v283_v6 = vmul.f32 %v281_v61, %v278_v60  ;;  %v279_v10 = vmul.f32 %v278_v60, %v142_v0  ;;  %v810_v0 = vrot.slane %v2143_v25, %v1934_v3 }
 0xda7   :  { %562 = vrot.lane.b32.xlu1 %v560_v63, %s1908_s27 }
 0xda8   :  { %v285_v12 = vrot.slane %v283_v6, 7 }
 0xdaa   :  { %v287_v21 = vadd.f32 %v285_v12, %v279_v10 }
 0xdab   :  { %667 = vrot.lane.b32.xlu1 %v665_v13, %s1908_s27 }
 0xdac   :  { %v2306_v15 = vmul.f32 0.5, %v287_v21 }
 0xdae   :  { %1829 = vtanh.f32 %v2306_v15 }
 0xdaf   :  { %687 = vrot.lane.b32.xlu1 %v685_v18, %s1908_s27 }
 0xdb3   :  { %707 = vrot.lane.b32.xlu1 %v705_v48, %s1908_s27 }
 0xdb7   :  { %812 = vrot.lane.b32.xlu1 %v810_v0, %s1908_s27 }
 0xdb8   :  { %v1830_v19 = vpop.eup %1829 }
 0xdb9   :  { %v291_v24 = vrot.slane %v1830_v19, 6 }
 0xdbb   :  { %832 = vrot.lane.b32.xlu1 %v830_v35, %s1908_s27  ;;  %v293_v26 = vmul.f32 %v291_v24, %v278_v60 }
 0xdbd   :  { %v294_v29 = vmul.f32 0.5, %v293_v26 }
 0xdbf   :  { %852 = vrot.lane.b32.xlu1 %v850_v27, %s1908_s27  ;;  %295 = vst.msk [vmem:[%s2845_s2 - $0x2] sm:$0x8] %vm149_vm3, %v294_v29  ;;  %v369_v43 = vrot.slane %v294_v29, %v2008_v49 }
 0xdc1   :  { %v370_v50 = vmul.f32 %v369_v43, %v2201_v16 }
 0xdc3   :  { %957 = vrot.lane.b32.xlu1 %v955_v20, %s1908_s27  ;;  %v371_v4 = vadd.f32 %v370_v50, %v2212_v23 }
 0xdc7   :  { %977 = vrot.lane.b32.xlu1 %v975_v33, %s1908_s27 }
 0xdcb   :  { %997 = vrot.lane.b32.xlu1 %v995_v37, %s1908_s27 }
 0xe01   :  { %v935_v40 = vpop.permute.xlu1 %934  ;;  %v938_v42 = vpop.permute.xlu0 %937 }
 0xe02   :  { %v943_v46 = vsel %vm73_vm0, %v935_v40, %v938_v42 }
 0xe05   :  { %v941_v47 = vpop.permute.xlu1 %940  ;;  %v378_v51 = vpop.permute.xlu0 %377 }
 0xe06   :  { %v944_v53 = vsel %vm75_vm1, %v943_v46, %v941_v47  ;;  %v380_v1 = vmul.f32 %v378_v51, %v2207_v22 }
 0xe07   :  { %v945_v54 = vsel %vm77_vm2, %v944_v53, %v2261_v28 }
 0xe08   :  { %v1030_v55 = vrot.slane %v945_v54, %v1934_v3  ;;  %v1036_v56 = vrot.slane %v945_v54, %v1992_v36  ;;  %v1042_v59 = vrot.slane %v945_v54, %v2002_v45  ;;  %v381_v60 = vadd.f32 %v380_v1, %v371_v4 }
 0xe09   :  { %v388_v57 = vpop.permute.xlu1 %387  ;;  %v398_v58 = vpop.permute.xlu0 %397  ;;  %v1048_v7 = vrot.slane %v945_v54, %v2008_v49  ;;  %v1054_v48 = vrot.slane %v945_v54, %v2013_v52 }
 0xe0a   :  { %v1031_v62 = vmul.f32 %v1030_v55, %v1944_v5  ;;  %v390_v61 = vmul.f32 %v388_v57, %v2221_v30  ;;  %v1037_v6 = vmul.f32 %v1036_v56, %v1956_v8  ;;  %v400_v12 = vmul.f32 %v398_v58, %v2228_v32 }
 0xe0b   :  { %v1043_v18 = vmul.f32 %v1042_v59, %v1963_v11  ;;  %v1049_v24 = vmul.f32 %v1048_v7, %v1970_v14  ;;  %v1055_v29 = vmul.f32 %v1054_v48, %v1976_v17  ;;  %v675_v14 = vrot.slane %v2111_v34, %v1992_v36 }
 0xe0c   :  { %v1032_v63 = vadd.f32 %v1031_v62, %v1026_v2  ;;  %v391_v10 = vadd.f32 %v390_v61, %v381_v60 }
 0xe0d   :  { %v408_v13 = vpop.permute.xlu1 %407  ;;  %v418_v0 = vpop.permute.xlu0 %417 }
 0xe0e   :  { %v1038_v21 = vadd.f32 %v1037_v6, %v1032_v63  ;;  %v410_v5 = vmul.f32 %v408_v13, %v2235_v38  ;;  %v401_v19 = vadd.f32 %v400_v12, %v391_v10  ;;  %v420_v8 = vmul.f32 %v418_v0, %v2241_v41 }
 0xe10   :  { %v1044_v35 = vadd.f32 %v1043_v18, %v1038_v21  ;;  %v411_v26 = vadd.f32 %v410_v5, %v401_v19 }
 0xe11   :  { %v523_v53 = vpop.permute.xlu1 %522  ;;  %v533_v1 = vpop.permute.xlu0 %532 }
 0xe12   :  { %v1050_v27 = vadd.f32 %v1049_v24, %v1044_v35  ;;  %v421_v20 = vadd.f32 %v420_v8, %v411_v26  ;;  %v525_v56 = vmul.f32 %v523_v53, %v2207_v22  ;;  %v535_v57 = vmul.f32 %v533_v1, %v2221_v30 }
 0xe14   :  { %v1056_v33 = vadd.f32 %v1055_v29, %v1050_v27  ;;  %1831 = vtanh.f32 %v421_v20 }
 0xe15   :  { %v543_v34 = vpop.permute.xlu1 %542  ;;  %v553_v58 = vpop.permute.xlu0 %552 }
 0xe16   :  { %1833 = vtanh.f32 %v1056_v33  ;;  %v545_v59 = vmul.f32 %v543_v34, %v2228_v32  ;;  %v555_v63 = vmul.f32 %v553_v58, %v2235_v38 }
 0xe19   :  { %v563_v60 = vpop.permute.xlu1 %562 }
 0xe1a   :  { %v565_v7 = vmul.f32 %v563_v60, %v2241_v41 }
 0xe1d   :  { %v668_v29 = vpop.permute.xlu1 %667 }
 0xe1e   :  { %v1832_v11 = vpop.eup %1831 }
 0xe1f   :  { %v423_v9 = vadd.f32 1.0, %v1832_v11  ;;  %v426_v39 = vrot.slane %v1832_v11, 2 }
 0xe20   :  { %v1834_v37 = vpop.eup %1833 }
 0xe21   :  { %1061 = vrot.lane.b32.xlu0 %v1834_v37, %s1905_s24  ;;  %v428_v40 = vmul.f32 %v426_v39, %v423_v9  ;;  %v424_v42 = vmul.f32 %v423_v9, %v2306_v15  ;;  %v2389_v33 = vadd.f32 1.0, %v1834_v37 }
 0xe23   :  { %v430_v43 = vrot.slane %v428_v40, 7  ;;  %v688_v40 = vpop.permute.xlu1 %687 }
 0xe24   :  { %v690_v37 = vmul.f32 %v688_v40, %v2228_v32 }
 0xe25   :  { %677 = vrot.lane.b32.xlu0 %v675_v14, %s1908_s27  ;;  %v432_v17 = vadd.f32 %v430_v43, %v424_v42  ;;  %v670_v14 = vmul.f32 %v668_v29, %v2207_v22 }
 0xe27   :  { %v433_v46 = vmul.f32 0.5, %v432_v17 }
 0xe29   :  { %697 = vrot.lane.b32.xlu0 %v695_v44, %s1908_s27  ;;  %1835 = vtanh.f32 %v433_v46  ;;  %v820_v44 = vrot.slane %v2143_v25, %v1992_v36 }
 0xe33   :  { %v1836_v47 = vpop.eup %1835 }
 0xe34   :  { %v436_v50 = vrot.slane %v1836_v47, 6  ;;  %v708_v47 = vpop.permute.xlu1 %707 }
 0xe36   :  { %v438_v51 = vmul.f32 %v436_v50, %v423_v9 }
 0xe38   :  { %v439_v54 = vmul.f32 0.5, %v438_v51 }
 0xe3a   :  { %440 = vst.msk [vmem:[%s2845_s2 - $0x1] sm:$0x8] %vm149_vm3, %v439_v54  ;;  %v514_v15 = vrot.slane %v439_v54, %v2008_v49  ;;  %v840_v54 = vrot.slane %v2143_v25, %v2008_v49 }
 0xe3c   :  { %v515_v2 = vmul.f32 %v514_v15, %v2201_v16  ;;  %v710_v15 = vmul.f32 %v708_v47, %v2241_v41 }
 0xe3e   :  { %v516_v55 = vadd.f32 %v515_v2, %v2212_v23 }
 0xe40   :  { %v526_v4 = vadd.f32 %v525_v56, %v516_v55 }
 0xe42   :  { %v536_v62 = vadd.f32 %v535_v57, %v526_v4 }
 0xe44   :  { %v546_v61 = vadd.f32 %v545_v59, %v536_v62 }
 0xe46   :  { %v556_v6 = vadd.f32 %v555_v63, %v546_v61 }
 0xe48   :  { %v566_v10 = vadd.f32 %v565_v7, %v556_v6  ;;  %v813_v7 = vpop.permute.xlu1 %812 }
 0xe4a   :  { %1837 = vtanh.f32 %v566_v10 }
 0xe54   :  { %v1838_v12 = vpop.eup %1837 }
 0xe55   :  { %v568_v13 = vadd.f32 1.0, %v1838_v12  ;;  %v571_v21 = vrot.slane %v1838_v12, 2  ;;  %v1059_v12 = vmul.f32 %v2389_v33, %v2223_v31 }
 0xe57   :  { %v573_v18 = vmul.f32 %v571_v21, %v568_v13  ;;  %v569_v48 = vmul.f32 %v568_v13, %v433_v46 }
 0xe59   :  { %v575_v5 = vrot.slane %v573_v18, 7 }
 0xe5b   :  { %v577_v0 = vadd.f32 %v575_v5, %v569_v48  ;;  %v833_v48 = vpop.permute.xlu1 %832  ;;  %v815_v5 = vmul.f32 %v813_v7, %v2207_v22 }
 0xe5d   :  { %v578_v19 = vmul.f32 0.5, %v577_v0 }
 0xe5f   :  { %1839 = vtanh.f32 %v578_v19 }
 0xe69   :  { %v1840_v35 = vpop.eup %1839 }
 0xe6a   :  { %v581_v24 = vrot.slane %v1840_v35, 6 }
 0xe6c   :  { %v583_v26 = vmul.f32 %v581_v24, %v568_v13 }
 0xe6e   :  { %v584_v8 = vmul.f32 0.5, %v583_v26  ;;  %v835_v26 = vmul.f32 %v833_v48, %v2228_v32 }
 0xe70   :  { %585 = vst.msk [vmem:[%s2845_s2] sm:$0x8] %vm149_vm3, %v584_v8  ;;  %v659_v27 = vrot.slane %v584_v8, %v2008_v49 }
 0xe72   :  { %v660_v20 = vmul.f32 %v659_v27, %v2201_v16  ;;  %v853_v27 = vpop.permute.xlu1 %852 }
 0xe74   :  { %v661_v9 = vadd.f32 %v660_v20, %v2212_v23 }
 0xe76   :  { %v671_v43 = vadd.f32 %v670_v14, %v661_v9  ;;  %v965_v14 = vrot.slane %v2261_v28, %v1992_v36 }
 0xe93   :  { %v1062_v11 = vpop.permute.xlu0 %1061 }
 0xe94   :  { %v1064_v39 = vmul.f32 %v1062_v11, %v2389_v33  ;;  %v855_v11 = vmul.f32 %v853_v27, %v2241_v41 }
 0xe96   :  { %1066 = vrot.lane.b32.xlu0 %v1064_v39, %s1906_s25 }
 0xe97   :  { %v678_v42 = vpop.permute.xlu0 %677 }
 0xe98   :  { %v680_v17 = vmul.f32 %v678_v42, %v2221_v30  ;;  %v985_v42 = vrot.slane %v2261_v28, %v2008_v49 }
 0xe9a   :  { %v681_v46 = vadd.f32 %v680_v17, %v671_v43  ;;  %822 = vrot.lane.b32.xlu0 %v820_v44, %s1908_s27 }
 0xe9b   :  { %v698_v50 = vpop.permute.xlu0 %697 }
 0xe9c   :  { %v691_v51 = vadd.f32 %v690_v37, %v681_v46  ;;  %v700_v53 = vmul.f32 %v698_v50, %v2235_v38 }
 0xe9e   :  { %v701_v1 = vadd.f32 %v700_v53, %v691_v51  ;;  %842 = vrot.lane.b32.xlu0 %v840_v54, %s1908_s27 }
 0xea0   :  { %v711_v2 = vadd.f32 %v710_v15, %v701_v1 }
 0xea2   :  { %1841 = vtanh.f32 %v711_v2  ;;  %v958_v2 = vpop.permute.xlu1 %957 }
 0xeac   :  { %v1842_v34 = vpop.eup %1841 }
 0xead   :  { %v713_v55 = vadd.f32 1.0, %v1842_v34  ;;  %v716_v56 = vrot.slane %v1842_v34, 2 }
 0xeaf   :  { %v718_v4 = vmul.f32 %v716_v56, %v713_v55  ;;  %v714_v57 = vmul.f32 %v713_v55, %v578_v19 }
 0xeb1   :  { %v720_v58 = vrot.slane %v718_v4, 7 }
 0xeb3   :  { %v722_v62 = vadd.f32 %v720_v58, %v714_v57  ;;  %v978_v57 = vpop.permute.xlu1 %977  ;;  %v960_v58 = vmul.f32 %v958_v2, %v2207_v22 }
 0xeb5   :  { %v723_v59 = vmul.f32 0.5, %v722_v62 }
 0xeb7   :  { %1843 = vtanh.f32 %v723_v59  ;;  %v998_v7 = vpop.permute.xlu1 %997 }
 0xeb8   :  { %v1000_v48 = vmul.f32 %v998_v7, %v2241_v41 }
 0xec1   :  { %v1844_v60 = vpop.eup %1843 }
 0xec2   :  { %v726_v61 = vrot.slane %v1844_v60, 6 }
 0xec4   :  { %v728_v63 = vmul.f32 %v726_v61, %v713_v55 }
 0xec6   :  { %v729_v25 = vmul.f32 0.5, %v728_v63 }
 0xec8   :  { %730 = vst.msk [vmem:[%s2845_s2 + $0x1] sm:$0x8] %vm149_vm3, %v729_v25  ;;  %v804_v6 = vrot.slane %v729_v25, %v2008_v49 }
 0xeca   :  { %v805_v10 = vmul.f32 %v804_v6, %v2201_v16  ;;  %v980_v6 = vmul.f32 %v978_v57, %v2228_v32 }
 0xecc   :  { %v806_v18 = vadd.f32 %v805_v10, %v2212_v23 }
 0xece   :  { %v816_v35 = vadd.f32 %v815_v5, %v806_v18 }
 0xf08   :  { %v1067_v13 = vpop.permute.xlu0 %1066 }
 0xf09   :  { %v1069_v21 = vadd.f32 %v1067_v13, %v1059_v12 }
 0xf0b   :  { %v2415_v0 = vmul.f32 0.5, %v1069_v21 }
 0xf0c   :  { %v823_v19 = vpop.permute.xlu0 %822 }
 0xf0d   :  { %1845 = vtanh.f32 %v2415_v0  ;;  %v825_v24 = vmul.f32 %v823_v19, %v2221_v30 }
 0xf0f   :  { %v826_v8 = vadd.f32 %v825_v24, %v816_v35 }
 0xf10   :  { %v843_v31 = vpop.permute.xlu0 %842 }
 0xf11   :  { %v836_v29 = vadd.f32 %v835_v26, %v826_v8  ;;  %v845_v20 = vmul.f32 %v843_v31, %v2235_v38 }
 0xf13   :  { %v846_v9 = vadd.f32 %v845_v20, %v836_v29 }
 0xf15   :  { %v856_v39 = vadd.f32 %v855_v11, %v846_v9 }
 0xf17   :  { %v1846_v40 = vpop.eup %1845  ;;  %1847 = vtanh.f32 %v856_v39 }
 0xf18   :  { %1073 = vrot.lane.b32.xlu0 %v1846_v40, %s1907_s26 }
 0xf1c   :  { %967 = vrot.lane.b32.xlu0 %v965_v14, %s1908_s27 }
 0xf20   :  { %987 = vrot.lane.b32.xlu0 %v985_v42, %s1908_s27 }
 0xf21   :  { %v1848_v43 = vpop.eup %1847 }
 0xf22   :  { %v858_v17 = vadd.f32 1.0, %v1848_v43  ;;  %v861_v44 = vrot.slane %v1848_v43, 2 }
 0xf24   :  { %v863_v37 = vmul.f32 %v861_v44, %v858_v17  ;;  %v859_v46 = vmul.f32 %v858_v17, %v723_v59 }
 0xf26   :  { %v865_v47 = vrot.slane %v863_v37, 7 }
 0xf28   :  { %v867_v50 = vadd.f32 %v865_v47, %v859_v46 }
 0xf2a   :  { %v868_v51 = vmul.f32 0.5, %v867_v50 }
 0xf2c   :  { %1849 = vtanh.f32 %v868_v51 }
 0xf36   :  { %v1850_v53 = vpop.eup %1849 }
 0xf37   :  { %v871_v54 = vrot.slane %v1850_v53, 6 }
 0xf39   :  { %v873_v15 = vmul.f32 %v871_v54, %v858_v17 }
 0xf3b   :  { %v874_v1 = vmul.f32 0.5, %v873_v15 }
 0xf3d   :  { %875 = vst.msk [vmem:[%s2845_s2 + $0x2] sm:$0x8] %vm149_vm3, %v874_v1  ;;  %v949_v28 = vrot.slane %v874_v1, %v2008_v49 }
 0xf3f   :  { %v950_v34 = vmul.f32 %v949_v28, %v2201_v16 }
 0xf41   :  { %v951_v4 = vadd.f32 %v950_v34, %v2212_v23 }
 0xf43   :  { %v961_v60 = vadd.f32 %v960_v58, %v951_v4 }
 0xf8a   :  { %v1074_v55 = vpop.permute.xlu0 %1073 }
 0xf8b   :  { %v1076_v56 = vmul.f32 %v1074_v55, %v2389_v33 }
 0xf8d   :  { %v2438_v62 = vmul.f32 0.5, %v1076_v56 }
 0xf8e   :  { %v968_v59 = vpop.permute.xlu0 %967 }
 0xf8f   :  { %v970_v61 = vmul.f32 %v968_v59, %v2221_v30  ;;  %v1110_v63 = vrot.slane %v2438_v62, %v1992_v36  ;;  %v1100_v25 = vrot.slane %v2438_v62, %v1934_v3  ;;  %v1130_v21 = vrot.slane %v2438_v62, %v2008_v49 }
 0xf90   :  { %v1120_v18 = vrot.slane %v2438_v62, %v2002_v45  ;;  %v1140_v35 = vrot.slane %v2438_v62, %v2013_v52 }
 0xf91   :  { %v971_v33 = vadd.f32 %v970_v61, %v961_v60  ;;  %1112 = vrot.lane.b32.xlu1 %v1110_v63, %s1908_s27  ;;  %1102 = vrot.lane.b32.xlu0 %v1100_v25, %s1908_s27 }
 0xf92   :  { %v988_v10 = vpop.permute.xlu0 %987 }
 0xf93   :  { %v981_v12 = vadd.f32 %v980_v6, %v971_v33  ;;  %v990_v13 = vmul.f32 %v988_v10, %v2235_v38 }
 0xf95   :  { %v991_v5 = vadd.f32 %v990_v13, %v981_v12  ;;  %1132 = vrot.lane.b32.xlu1 %v1130_v21, %s1908_s27  ;;  %1122 = vrot.lane.b32.xlu0 %v1120_v18, %s1908_s27 }
 0xf97   :  { %v1001_v19 = vadd.f32 %v1000_v48, %v991_v5 }
 0xf99   :  { %1851 = vtanh.f32 %v1001_v19  ;;  %1079 = vrot.lane.b32.xlu1 %v2438_v62, %s1908_s27  ;;  %1142 = vrot.lane.b32.xlu0 %v1140_v35, %s1908_s27 }
 0xf9d   :  { %1082 = vrot.lane.b32.xlu0 %v2438_v62, %s1905_s24 }
 0xfa3   :  { %v1852_v24 = vpop.eup %1851 }
 0xfa4   :  { %v1006_v26 = vrot.slane %v1852_v24, 2  ;;  %v1003_v8 = vadd.f32 1.0, %v1852_v24 }
 0xfa6   :  { %v1008_v27 = vmul.f32 %v1006_v26, %v1003_v8  ;;  %v1004_v31 = vmul.f32 %v1003_v8, %v868_v51 }
 0xfa8   :  { %v1010_v29 = vrot.slane %v1008_v27, 7 }
 0xfaa   :  { %v1012_v20 = vadd.f32 %v1010_v29, %v1004_v31 }
 0xfac   :  { %v1013_v11 = vmul.f32 0.5, %v1012_v20  ;;  %v2506_v20 = vld [vmem:[%s2844_s1] sm:$0xff] }
 0xfae   :  { %1853 = vtanh.f32 %v1013_v11 }
 0xfb8   :  { %v1854_v9 = vpop.eup %1853 }
 0xfb9   :  { %v1016_v39 = vrot.slane %v1854_v9, 6 }
 0xfbb   :  { %v1018_v40 = vmul.f32 %v1016_v39, %v1003_v8  ;;  %v2513_v39 = vld [vmem:[%s2844_s1 + $0x10] sm:$0xff] }
 0xfbd   :  { %v1019_v14 = vmul.f32 0.5, %v1018_v40 }
 0xfbf   :  { %1020 = vst.msk [vmem:[%s2845_s2 + $0x3] sm:$0x8] %vm149_vm3, %v1019_v14  ;;  %v1094_v42 = vrot.slane %v1019_v14, %v2008_v49 }
 0xfc1   :  { %v1095_v43 = vmul.f32 %v1094_v42, %v2201_v16 }
 0xfc3   :  { %v1096_v37 = vadd.f32 %v1095_v43, %v2212_v23 }
0x1003   :  { %v1113_v17 = vpop.permute.xlu1 %1112  ;;  %v1103_v44 = vpop.permute.xlu0 %1102 }
0x1004   :  { %v1105_v46 = vmul.f32 %v1103_v44, %v2207_v22  ;;  %v1115_v47 = vmul.f32 %v1113_v17, %v2221_v30  ;;  %v2526_v17 = vld [vmem:[%s2844_s1 + $0x18] sm:$0xff] }
0x1006   :  { %v1106_v50 = vadd.f32 %v1105_v46, %v1096_v37 }
0x1007   :  { %v1133_v51 = vpop.permute.xlu1 %1132  ;;  %v1123_v53 = vpop.permute.xlu0 %1122 }
0x1008   :  { %v1116_v54 = vadd.f32 %v1115_v47, %v1106_v50  ;;  %v1125_v15 = vmul.f32 %v1123_v53, %v2228_v32  ;;  %v1135_v1 = vmul.f32 %v1133_v51, %v2235_v38  ;;  %v2533_v47 = vld [vmem:[%s2844_s1 + $0x20] sm:$0xff] }
0x100a   :  { %v1126_v28 = vadd.f32 %v1125_v15, %v1116_v54  ;;  %v2540_v54 = vld [vmem:[%s2844_s1 + $0x28] sm:$0xff] }
0x100b   :  { %v1143_v2 = vpop.permute.xlu0 %1142  ;;  %v1080_v12 = vpop.permute.xlu1 %1079 }
0x100c   :  { %v1136_v34 = vadd.f32 %v1135_v1, %v1126_v28  ;;  %v1145_v55 = vmul.f32 %v1143_v2, %v2241_v41  ;;  %v2546_v28 = vld [vmem:[%s2844_s1 + $0x30] sm:$0xff] }
0x100e   :  { %v1146_v56 = vadd.f32 %v1145_v55, %v1136_v34 }
0x100f   :  { %v1083_v13 = vpop.permute.xlu0 %1082 }
0x1010   :  { %1855 = vtanh.f32 %v1146_v56  ;;  %v1088_v5 = vsel %vm73_vm0, %v1080_v12, %v1083_v13 }
0x101a   :  { %v1856_v4 = vpop.eup %1855 }
0x101b   :  { %v1148_v57 = vadd.f32 1.0, %v1856_v4  ;;  %v1151_v58 = vrot.slane %v1856_v4, 2 }
0x101d   :  { %v1153_v59 = vmul.f32 %v1151_v58, %v1148_v57  ;;  %v1149_v60 = vmul.f32 %v1148_v57, %v1013_v11 }
0x101f   :  { %v1155_v61 = vrot.slane %v1153_v59, 7 }
0x1021   :  { %v1157_v63 = vadd.f32 %v1155_v61, %v1149_v60 }
0x1023   :  { %v2475_v25 = vmul.f32 0.5, %v1157_v63 }
0x1025   :  { %1857 = vtanh.f32 %v2475_v25 }
0x102f   :  { %v1858_v6 = vpop.eup %1857 }
0x1030   :  { %v1161_v33 = vrot.slane %v1858_v6, 6 }
0x1032   :  { %v1163_v7 = vmul.f32 %v1161_v33, %v1148_v57 }
0x1034   :  { %v2478_v10 = vmul.f32 0.5, %v1163_v7 }
0x1036   :  { %1170 = vrot.lane.b32.xlu0 %v2478_v10, %s1907_s26  ;;  %1165 = vst.msk [vmem:[%s2845_s2 + $0x4] sm:$0x8] %vm149_vm3, %v2478_v10  ;;  %1167 = vrot.lane.b32.xlu1 %v2478_v10, %s1906_s25 }
0x103a   :  { %1085 = vrot.lane.b32.xlu0 %v2438_v62, %s1909_s28  ;;  %1173 = vrot.lane.b32.xlu1 %v2478_v10, %s1910_s7 }
0x10a8   :  { %v1168_v21 = vpop.permute.xlu1 %1167  ;;  %v1171_v18 = vpop.permute.xlu0 %1170 }
0x10a9   :  { %v1176_v48 = vsel %vm73_vm0, %v2478_v10, %v1168_v21 }
0x10aa   :  { %v1177_v19 = vsel %vm75_vm1, %v1176_v48, %v1171_v18  ;;  %v1252_v48 = vrot.slane %v2478_v10, %v2008_v49 }
0x10ac   :  { %v1174_v35 = vpop.permute.xlu1 %1173  ;;  %v1086_v24 = vpop.permute.xlu0 %1085 }
0x10ad   :  { %v1178_v26 = vsel %vm77_vm2, %v1177_v19, %v1174_v35  ;;  %v1089_v8 = vsel %vm75_vm1, %v1088_v5, %v1086_v24  ;;  %v1253_v5 = vmul.f32 %v1252_v48, %v2201_v16 }
0x10ae   :  { %v1182_v27 = vrot.slane %v1178_v26, %v2008_v49  ;;  %v1090_v31 = vsel %vm77_vm2, %v1089_v8, %v2438_v62  ;;  %v2519_v62 = vld [vmem:[%s2844_s1 + $0x8] sm:$0xff] }
0x10af   :  { %v1188_v29 = vrot.slane %v1090_v31, %v1934_v3  ;;  %v1194_v9 = vrot.slane %v1090_v31, %v1992_v36  ;;  %v1200_v42 = vrot.slane %v1090_v31, %v2002_v45  ;;  %v1206_v37 = vrot.slane %v1090_v31, %v2008_v49 }
0x10b0   :  { %v1183_v11 = vmul.f32 %v2506_v20, %v1182_v27  ;;  %v1212_v51 = vrot.slane %v1090_v31, %v2013_v52  ;;  %v1254_v24 = vadd.f32 %v1253_v5, %v2212_v23 }
0x10b1   :  { %v1189_v40 = vmul.f32 %v2513_v39, %v1188_v29  ;;  %v1195_v44 = vmul.f32 %v2526_v17, %v1194_v9  ;;  %v1201_v50 = vmul.f32 %v2533_v47, %v1200_v42  ;;  %v1207_v15 = vmul.f32 %v2540_v54, %v1206_v37 }
0x10b2   :  { %v1184_v14 = vadd.f32 %v2519_v62, %v1183_v11  ;;  %v1213_v2 = vmul.f32 %v2546_v28, %v1212_v51 }
0x10b4   :  { %v1190_v43 = vadd.f32 %v1189_v40, %v1184_v14 }
0x10b6   :  { %v1196_v46 = vadd.f32 %v1195_v44, %v1190_v43 }
0x10b8   :  { %v1202_v53 = vadd.f32 %v1201_v50, %v1196_v46 }
0x10ba   :  { %v1208_v1 = vadd.f32 %v1207_v15, %v1202_v53 }
0x10bc   :  { %v1214_v34 = vadd.f32 %v1213_v2, %v1208_v1 }
0x10be   :  { %1859 = vtanh.f32 %v1214_v34 }
0x10c8   :  { %v1860_v55 = vpop.eup %1859 }
0x10c9   :  { %1219 = vrot.lane.b32.xlu1 %v1860_v55, %s1905_s24  ;;  %v1216_v56 = vadd.f32 1.0, %v1860_v55 }
0x10cb   :  { %v1217_v58 = vmul.f32 %v1216_v56, %v2415_v0 }
0x113b   :  { %v1220_v4 = vpop.permute.xlu1 %1219 }
0x113c   :  { %v1222_v57 = vmul.f32 %v1220_v4, %v1216_v56 }
0x113e   :  { %1224 = vrot.lane.b32.xlu0 %v1222_v57, %s1906_s25 }
0x11b0   :  { %v1225_v59 = vpop.permute.xlu0 %1224 }
0x11b1   :  { %v1227_v60 = vadd.f32 %v1225_v59, %v1217_v58 }
0x11b3   :  { %v2552_v61 = vmul.f32 0.5, %v1227_v60 }
0x11b5   :  { %1861 = vtanh.f32 %v2552_v61 }
0x11bf   :  { %v1862_v63 = vpop.eup %1861 }
0x11c0   :  { %1231 = vrot.lane.b32.xlu1 %v1862_v63, %s1907_s26 }
0x1232   :  { %v1232_v6 = vpop.permute.xlu1 %1231 }
0x1233   :  { %v1234_v33 = vmul.f32 %v1232_v6, %v1216_v56 }
0x1235   :  { %v2556_v7 = vmul.f32 0.5, %v1234_v33 }
0x1237   :  { %v1268_v12 = vrot.slane %v2556_v7, %v1992_v36  ;;  %v1258_v13 = vrot.slane %v2556_v7, %v1934_v3  ;;  %v1288_v0 = vrot.slane %v2556_v7, %v2008_v49  ;;  %v1278_v21 = vrot.slane %v2556_v7, %v2002_v45 }
0x1238   :  { %v1298_v18 = vrot.slane %v2556_v7, %v2013_v52 }
0x1239   :  { %1270 = vrot.lane.b32.xlu1 %v1268_v12, %s1908_s27  ;;  %1260 = vrot.lane.b32.xlu0 %v1258_v13, %s1908_s27 }
0x123d   :  { %1290 = vrot.lane.b32.xlu1 %v1288_v0, %s1908_s27  ;;  %1280 = vrot.lane.b32.xlu0 %v1278_v21, %s1908_s27 }
0x1241   :  { %1237 = vrot.lane.b32.xlu1 %v2556_v7, %s1908_s27  ;;  %1300 = vrot.lane.b32.xlu0 %v1298_v18, %s1908_s27 }
0x1245   :  { %1240 = vrot.lane.b32.xlu0 %v2556_v7, %s1905_s24 }
0x12ab   :  { %v1271_v19 = vpop.permute.xlu1 %1270  ;;  %v1261_v35 = vpop.permute.xlu0 %1260 }
0x12ac   :  { %v1263_v26 = vmul.f32 %v1261_v35, %v2207_v22  ;;  %v1273_v8 = vmul.f32 %v1271_v19, %v2221_v30 }
0x12ae   :  { %v1264_v27 = vadd.f32 %v1263_v26, %v1254_v24 }
0x12af   :  { %v1291_v31 = vpop.permute.xlu1 %1290  ;;  %v1281_v29 = vpop.permute.xlu0 %1280 }
0x12b0   :  { %v1274_v11 = vadd.f32 %v1273_v8, %v1264_v27  ;;  %v1283_v9 = vmul.f32 %v1281_v29, %v2228_v32  ;;  %v1293_v40 = vmul.f32 %v1291_v31, %v2235_v38 }
0x12b2   :  { %v1284_v14 = vadd.f32 %v1283_v9, %v1274_v11 }
0x12b3   :  { %v1301_v10 = vpop.permute.xlu0 %1300 }
0x12b4   :  { %v1294_v42 = vadd.f32 %v1293_v40, %v1284_v14  ;;  %v1303_v16 = vmul.f32 %v1301_v10, %v2241_v41  ;;  %v1238_v41 = vpop.permute.xlu1 %1237 }
0x12b6   :  { %v1304_v43 = vadd.f32 %v1303_v16, %v1294_v42 }
0x12b8   :  { %1863 = vtanh.f32 %v1304_v43 }
0x12c2   :  { %v1864_v23 = vpop.eup %1863 }
0x12c3   :  { %v1306_v44 = vadd.f32 1.0, %v1864_v23  ;;  %v1309_v22 = vrot.slane %v1864_v23, 2 }
0x12c5   :  { %v1311_v37 = vmul.f32 %v1309_v22, %v1306_v44  ;;  %v1307_v30 = vmul.f32 %v1306_v44, %v2475_v25  ;;  %v1241_v25 = vpop.permute.xlu0 %1240 }
0x12c6   :  { %v1246_v55 = vsel %vm73_vm0, %v1238_v41, %v1241_v25 }
0x12c7   :  { %v1313_v46 = vrot.slane %v1311_v37, 7 }
0x12c9   :  { %v1315_v50 = vadd.f32 %v1313_v46, %v1307_v30 }
0x12cb   :  { %v2587_v51 = vmul.f32 0.5, %v1315_v50 }
0x12cd   :  { %1865 = vtanh.f32 %v2587_v51 }
0x12d7   :  { %v1866_v32 = vpop.eup %1865 }
0x12d8   :  { %v1319_v38 = vrot.slane %v1866_v32, 6 }
0x12da   :  { %v1321_v53 = vmul.f32 %v1319_v38, %v1306_v44  ;;  %v2659_v38 = vld [vmem:[%s2844_s1 + $0x60] sm:$0xff] }
0x12dc   :  { %v2590_v15 = vmul.f32 0.5, %v1321_v53 }
0x12de   :  { %1328 = vrot.lane.b32.xlu0 %v2590_v15, %s1907_s26  ;;  %1323 = vst.msk [vmem:[%s2845_s2 + $0x5] sm:$0x8] %vm149_vm3, %v2590_v15  ;;  %1325 = vrot.lane.b32.xlu1 %v2590_v15, %s1906_s25  ;;  %v1410_v32 = vrot.slane %v2590_v15, %v2008_v49 }
0x12e0   :  { %v1411_v53 = vmul.f32 %v2659_v38, %v1410_v32 }
0x12e2   :  { %1243 = vrot.lane.b32.xlu0 %v2556_v7, %s1909_s28  ;;  %1331 = vrot.lane.b32.xlu1 %v2590_v15, %s1910_s7 }
0x1350   :  { %v1326_v1 = vpop.permute.xlu1 %1325  ;;  %v1329_v2 = vpop.permute.xlu0 %1328 }
0x1351   :  { %v1334_v34 = vsel %vm73_vm0, %v2590_v15, %v1326_v1  ;;  %v2665_v1 = vld [vmem:[%s2844_s1 + $0x68] sm:$0xff]  ;;  %v2671_v15 = vld [vmem:[%s2844_s1 + $0x38] sm:$0xff] }
0x1352   :  { %v1335_v56 = vsel %vm75_vm1, %v1334_v34, %v1329_v2  ;;  %v1412_v2 = vadd.f32 %v2665_v1, %v1411_v53 }
0x1354   :  { %v1332_v4 = vpop.permute.xlu1 %1331  ;;  %v1244_v57 = vpop.permute.xlu0 %1243 }
0x1355   :  { %v1336_v58 = vsel %vm77_vm2, %v1335_v56, %v1332_v4  ;;  %v1247_v59 = vsel %vm75_vm1, %v1246_v55, %v1244_v57  ;;  %v2677_v55 = vld [vmem:[%s2844_s1 + $0x40] sm:$0xff] }
0x1356   :  { %v1340_v60 = vrot.slane %v1336_v58, %v2008_v49  ;;  %v1248_v63 = vsel %vm77_vm2, %v1247_v59, %v2556_v7 }
0x1357   :  { %v1346_v6 = vrot.slane %v1248_v63, %v1934_v3  ;;  %v1352_v12 = vrot.slane %v1248_v63, %v1992_v36  ;;  %v1358_v21 = vrot.slane %v1248_v63, %v2002_v45  ;;  %v1364_v5 = vrot.slane %v1248_v63, %v2008_v49 }
0x1358   :  { %v1341_v33 = vmul.f32 %v2506_v20, %v1340_v60  ;;  %v1370_v35 = vrot.slane %v1248_v63, %v2013_v52  ;;  %v2683_v60 = vld [vmem:[%s2844_s1 + $0x48] sm:$0xff] }
0x1359   :  { %v1347_v13 = vmul.f32 %v2513_v39, %v1346_v6  ;;  %v1353_v48 = vmul.f32 %v2526_v17, %v1352_v12  ;;  %v1359_v7 = vmul.f32 %v2533_v47, %v1358_v21  ;;  %v1365_v26 = vmul.f32 %v2540_v54, %v1364_v5  ;;  %v2689_v6 = vld [vmem:[%s2844_s1 + $0x50] sm:$0xff]  ;;  %v2695_v21 = vld [vmem:[%s2844_s1 + $0x58] sm:$0xff] }
0x135a   :  { %v1342_v0 = vadd.f32 %v2519_v62, %v1341_v33  ;;  %v1371_v27 = vmul.f32 %v2546_v28, %v1370_v35 }
0x135c   :  { %v1348_v18 = vadd.f32 %v1347_v13, %v1342_v0 }
0x135e   :  { %v1354_v19 = vadd.f32 %v1353_v48, %v1348_v18 }
0x1360   :  { %v1360_v24 = vadd.f32 %v1359_v7, %v1354_v19 }
0x1362   :  { %v1366_v8 = vadd.f32 %v1365_v26, %v1360_v24 }
0x1364   :  { %v1372_v31 = vadd.f32 %v1371_v27, %v1366_v8 }
0x1366   :  { %1867 = vtanh.f32 %v1372_v31 }
0x1370   :  { %v1868_v29 = vpop.eup %1867 }
0x1371   :  { %1377 = vrot.lane.b32.xlu1 %v1868_v29, %s1905_s24  ;;  %v1374_v11 = vadd.f32 1.0, %v1868_v29 }
0x1373   :  { %v1375_v14 = vmul.f32 %v1374_v11, %v2552_v61 }
0x13e3   :  { %v1378_v9 = vpop.permute.xlu1 %1377 }
0x13e4   :  { %v1380_v40 = vmul.f32 %v1378_v9, %v1374_v11 }
0x13e6   :  { %1382 = vrot.lane.b32.xlu0 %v1380_v40, %s1906_s25 }
0x1458   :  { %v1383_v10 = vpop.permute.xlu0 %1382 }
0x1459   :  { %v1385_v42 = vadd.f32 %v1383_v10, %v1375_v14 }
0x145b   :  { %v2629_v16 = vmul.f32 0.5, %v1385_v42 }
0x145d   :  { %1869 = vtanh.f32 %v2629_v16 }
0x1467   :  { %v1870_v43 = vpop.eup %1869 }
0x1468   :  { %1389 = vrot.lane.b32.xlu1 %v1870_v43, %s1907_s26 }
0x14da   :  { %v1390_v23 = vpop.permute.xlu1 %1389 }
0x14db   :  { %v1392_v44 = vmul.f32 %v1390_v23, %v1374_v11 }
0x14dd   :  { %v2633_v22 = vmul.f32 0.5, %v1392_v44 }
0x14df   :  { %v1426_v37 = vrot.slane %v2633_v22, %v1992_v36  ;;  %v1416_v30 = vrot.slane %v2633_v22, %v1934_v3  ;;  %v1446_v61 = vrot.slane %v2633_v22, %v2008_v49  ;;  %v1436_v46 = vrot.slane %v2633_v22, %v2002_v45 }
0x14e0   :  { %v1456_v50 = vrot.slane %v2633_v22, %v2013_v52 }
0x14e1   :  { %1428 = vrot.lane.b32.xlu1 %v1426_v37, %s1908_s27  ;;  %1418 = vrot.lane.b32.xlu0 %v1416_v30, %s1908_s27 }
0x14e5   :  { %1448 = vrot.lane.b32.xlu1 %v1446_v61, %s1908_s27  ;;  %1438 = vrot.lane.b32.xlu0 %v1436_v46, %s1908_s27 }
0x14e9   :  { %1395 = vrot.lane.b32.xlu1 %v2633_v22, %s1908_s27  ;;  %1458 = vrot.lane.b32.xlu0 %v1456_v50, %s1908_s27 }
0x14ed   :  { %1398 = vrot.lane.b32.xlu0 %v2633_v22, %s1905_s24 }
0x1553   :  { %v1429_v41 = vpop.permute.xlu1 %1428  ;;  %v1419_v25 = vpop.permute.xlu0 %1418 }
0x1554   :  { %v1421_v34 = vmul.f32 %v2671_v15, %v1419_v25  ;;  %v1431_v56 = vmul.f32 %v2677_v55, %v1429_v41 }
0x1556   :  { %v1422_v4 = vadd.f32 %v1421_v34, %v1412_v2 }
0x1557   :  { %v1449_v57 = vpop.permute.xlu1 %1448  ;;  %v1439_v58 = vpop.permute.xlu0 %1438 }
0x1558   :  { %v1432_v59 = vadd.f32 %v1431_v56, %v1422_v4  ;;  %v1441_v63 = vmul.f32 %v2683_v60, %v1439_v58  ;;  %v1451_v33 = vmul.f32 %v2689_v6, %v1449_v57 }
0x155a   :  { %v1442_v12 = vadd.f32 %v1441_v63, %v1432_v59 }
0x155b   :  { %v1459_v13 = vpop.permute.xlu0 %1458 }
0x155c   :  { %v1452_v0 = vadd.f32 %v1451_v33, %v1442_v12  ;;  %v1461_v18 = vmul.f32 %v2695_v21, %v1459_v13 }
0x155e   :  { %v1462_v48 = vadd.f32 %v1461_v18, %v1452_v0 }
0x155f   :  { %v1399_v40 = vpop.permute.xlu0 %1398 }
0x1560   :  { %1871 = vtanh.f32 %v1462_v48 }
0x156a   :  { %v1872_v5 = vpop.eup %1871 }
0x156b   :  { %v1464_v19 = vadd.f32 1.0, %v1872_v5  ;;  %v1467_v7 = vrot.slane %v1872_v5, 2 }
0x156d   :  { %v1469_v35 = vmul.f32 %v1467_v7, %v1464_v19  ;;  %v1465_v24 = vmul.f32 %v1464_v19, %v2587_v51  ;;  %v1396_v51 = vpop.permute.xlu1 %1395 }
0x156e   :  { %v1404_v43 = vsel %vm73_vm0, %v1396_v51, %v1399_v40 }
0x156f   :  { %v1471_v26 = vrot.slane %v1469_v35, 7 }
0x1571   :  { %v1473_v8 = vadd.f32 %v1471_v26, %v1465_v24 }
0x1573   :  { %v2699_v27 = vmul.f32 0.5, %v1473_v8 }
0x1575   :  { %1873 = vtanh.f32 %v2699_v27 }
0x157f   :  { %v1874_v31 = vpop.eup %1873 }
0x1580   :  { %v1477_v29 = vrot.slane %v1874_v31, 6 }
0x1582   :  { %v1479_v11 = vmul.f32 %v1477_v29, %v1464_v19 }
0x1584   :  { %v2702_v9 = vmul.f32 0.5, %v1479_v11 }
0x1586   :  { %1486 = vrot.lane.b32.xlu0 %v2702_v9, %s1907_s26  ;;  %1481 = vst.msk [vmem:[%s2845_s2 + $0x6] sm:$0x8] %vm149_vm3, %v2702_v9  ;;  %1483 = vrot.lane.b32.xlu1 %v2702_v9, %s1906_s25 }
0x158a   :  { %1401 = vrot.lane.b32.xlu0 %v2633_v22, %s1909_s28  ;;  %1489 = vrot.lane.b32.xlu1 %v2702_v9, %s1910_s7 }
0x15f8   :  { %v1484_v14 = vpop.permute.xlu1 %1483  ;;  %v1487_v10 = vpop.permute.xlu0 %1486 }
0x15f9   :  { %v1492_v42 = vsel %vm73_vm0, %v2702_v9, %v1484_v14 }
0x15fa   :  { %v1493_v23 = vsel %vm75_vm1, %v1492_v42, %v1487_v10  ;;  %v1568_v42 = vrot.slane %v2702_v9, %v2008_v49 }
0x15fc   :  { %v1490_v44 = vpop.permute.xlu1 %1489  ;;  %v1402_v37 = vpop.permute.xlu0 %1401 }
0x15fd   :  { %v1494_v30 = vsel %vm77_vm2, %v1493_v23, %v1490_v44  ;;  %v1405_v61 = vsel %vm75_vm1, %v1404_v43, %v1402_v37  ;;  %v1569_v43 = vmul.f32 %v2659_v38, %v1568_v42 }
0x15fe   :  { %v1498_v46 = vrot.slane %v1494_v30, %v2008_v49  ;;  %v1406_v50 = vsel %vm77_vm2, %v1405_v61, %v2633_v22 }
0x15ff   :  { %v1504_v32 = vrot.slane %v1406_v50, %v1934_v3  ;;  %v1510_v41 = vrot.slane %v1406_v50, %v1992_v36  ;;  %v1516_v34 = vrot.slane %v1406_v50, %v2002_v45  ;;  %v1522_v57 = vrot.slane %v1406_v50, %v2008_v49 }
0x1600   :  { %v1499_v53 = vmul.f32 %v2506_v20, %v1498_v46  ;;  %v1528_v59 = vrot.slane %v1406_v50, %v2013_v52  ;;  %v1570_v37 = vadd.f32 %v2665_v1, %v1569_v43 }
0x1601   :  { %v1505_v25 = vmul.f32 %v2513_v39, %v1504_v32  ;;  %v1511_v4 = vmul.f32 %v2526_v17, %v1510_v41  ;;  %v1517_v22 = vmul.f32 %v2533_v47, %v1516_v34  ;;  %v1523_v33 = vmul.f32 %v2540_v54, %v1522_v57 }
0x1602   :  { %v1500_v2 = vadd.f32 %v2519_v62, %v1499_v53  ;;  %v1529_v13 = vmul.f32 %v2546_v28, %v1528_v59 }
0x1604   :  { %v1506_v56 = vadd.f32 %v1505_v25, %v1500_v2 }
0x1606   :  { %v1512_v58 = vadd.f32 %v1511_v4, %v1506_v56 }
0x1608   :  { %v1518_v63 = vadd.f32 %v1517_v22, %v1512_v58 }
0x160a   :  { %v1524_v12 = vadd.f32 %v1523_v33, %v1518_v63 }
0x160c   :  { %v1530_v0 = vadd.f32 %v1529_v13, %v1524_v12 }
0x160e   :  { %1875 = vtanh.f32 %v1530_v0 }
0x1618   :  { %v1876_v18 = vpop.eup %1875 }
0x1619   :  { %1535 = vrot.lane.b32.xlu1 %v1876_v18, %s1905_s24  ;;  %v1532_v48 = vadd.f32 1.0, %v1876_v18 }
0x161b   :  { %v1533_v7 = vmul.f32 %v1532_v48, %v2629_v16 }
0x168b   :  { %v1536_v5 = vpop.permute.xlu1 %1535 }
0x168c   :  { %v1538_v19 = vmul.f32 %v1536_v5, %v1532_v48 }
0x168e   :  { %1540 = vrot.lane.b32.xlu0 %v1538_v19, %s1906_s25 }
0x1700   :  { %v1541_v35 = vpop.permute.xlu0 %1540 }
0x1701   :  { %v1543_v24 = vadd.f32 %v1541_v35, %v1533_v7 }
0x1703   :  { %v2741_v26 = vmul.f32 0.5, %v1543_v24 }
0x1705   :  { %1877 = vtanh.f32 %v2741_v26 }
0x170f   :  { %v1878_v8 = vpop.eup %1877 }
0x1710   :  { %1547 = vrot.lane.b32.xlu1 %v1878_v8, %s1907_s26 }
0x1782   :  { %v1548_v31 = vpop.permute.xlu1 %1547 }
0x1783   :  { %v1550_v29 = vmul.f32 %v1548_v31, %v1532_v48 }
0x1785   :  { %v2745_v11 = vmul.f32 0.5, %v1550_v29 }
0x1787   :  { %v1584_v51 = vrot.slane %v2745_v11, %v1992_v36  ;;  %v1574_v40 = vrot.slane %v2745_v11, %v1934_v3  ;;  %v1604_v16 = vrot.slane %v2745_v11, %v2008_v49  ;;  %v1594_v14 = vrot.slane %v2745_v11, %v2002_v45 }
0x1788   :  { %v1614_v10 = vrot.slane %v2745_v11, %v2013_v52 }
0x1789   :  { %1586 = vrot.lane.b32.xlu1 %v1584_v51, %s1908_s27  ;;  %1576 = vrot.lane.b32.xlu0 %v1574_v40, %s1908_s27 }
0x178d   :  { %1606 = vrot.lane.b32.xlu1 %v1604_v16, %s1908_s27  ;;  %1596 = vrot.lane.b32.xlu0 %v1594_v14, %s1908_s27 }
0x1791   :  { %1553 = vrot.lane.b32.xlu1 %v2745_v11, %s1908_s27  ;;  %1616 = vrot.lane.b32.xlu0 %v1614_v10, %s1908_s27 }
0x1795   :  { %1556 = vrot.lane.b32.xlu0 %v2745_v11, %s1905_s24 }
0x17fb   :  { %v1587_v23 = vpop.permute.xlu1 %1586  ;;  %v1577_v44 = vpop.permute.xlu0 %1576 }
0x17fc   :  { %v1579_v30 = vmul.f32 %v2671_v15, %v1577_v44  ;;  %v1589_v61 = vmul.f32 %v2677_v55, %v1587_v23 }
0x17fe   :  { %v1580_v46 = vadd.f32 %v1579_v30, %v1570_v37 }
0x17ff   :  { %v1607_v50 = vpop.permute.xlu1 %1606  ;;  %v1597_v32 = vpop.permute.xlu0 %1596 }
0x1800   :  { %v1590_v53 = vadd.f32 %v1589_v61, %v1580_v46  ;;  %v1599_v41 = vmul.f32 %v2683_v60, %v1597_v32  ;;  %v1609_v25 = vmul.f32 %v2689_v6, %v1607_v50 }
0x1802   :  { %v1600_v2 = vadd.f32 %v1599_v41, %v1590_v53 }
0x1803   :  { %v1617_v9 = vpop.permute.xlu0 %1616 }
0x1804   :  { %v1610_v34 = vadd.f32 %v1609_v25, %v1600_v2  ;;  %v1619_v56 = vmul.f32 %v2695_v21, %v1617_v9 }
0x1806   :  { %v1620_v4 = vadd.f32 %v1619_v56, %v1610_v34 }
0x1807   :  { %v1557_v19 = vpop.permute.xlu0 %1556 }
0x1808   :  { %1879 = vtanh.f32 %v1620_v4 }
0x1812   :  { %v1880_v57 = vpop.eup %1879 }
0x1813   :  { %v1622_v58 = vadd.f32 1.0, %v1880_v57  ;;  %v1625_v22 = vrot.slane %v1880_v57, 2 }
0x1815   :  { %v1627_v59 = vmul.f32 %v1625_v22, %v1622_v58  ;;  %v1623_v63 = vmul.f32 %v1622_v58, %v2699_v27  ;;  %v1554_v27 = vpop.permute.xlu1 %1553 }
0x1816   :  { %v1562_v8 = vsel %vm73_vm0, %v1554_v27, %v1557_v19 }
0x1817   :  { %v1629_v33 = vrot.slane %v1627_v59, 7 }
0x1819   :  { %v1631_v12 = vadd.f32 %v1629_v33, %v1623_v63 }
0x181b   :  { %v2776_v13 = vmul.f32 0.5, %v1631_v12 }
0x181d   :  { %1881 = vtanh.f32 %v2776_v13 }
0x1827   :  { %v1882_v0 = vpop.eup %1881 }
0x1828   :  { %v1635_v18 = vrot.slane %v1882_v0, 6 }
0x182a   :  { %v1637_v48 = vmul.f32 %v1635_v18, %v1622_v58 }
0x182c   :  { %v2779_v5 = vmul.f32 0.5, %v1637_v48 }
0x182e   :  { %1644 = vrot.lane.b32.xlu0 %v2779_v5, %s1907_s26  ;;  %1639 = vst.msk [vmem:[%s2845_s2 + $0x7] sm:$0x8] %vm149_vm3, %v2779_v5  ;;  %1641 = vrot.lane.b32.xlu1 %v2779_v5, %s1906_s25 }
0x1832   :  { %1559 = vrot.lane.b32.xlu0 %v2745_v11, %s1909_s28  ;;  %1647 = vrot.lane.b32.xlu1 %v2779_v5, %s1910_s7 }
0x18a0   :  { %v1642_v7 = vpop.permute.xlu1 %1641  ;;  %v1645_v35 = vpop.permute.xlu0 %1644 }
0x18a1   :  { %v1650_v24 = vsel %vm73_vm0, %v2779_v5, %v1642_v7 }
0x18a2   :  { %v1651_v31 = vsel %vm75_vm1, %v1650_v24, %v1645_v35 }
0x18a4   :  { %v1648_v29 = vpop.permute.xlu1 %1647  ;;  %v1560_v51 = vpop.permute.xlu0 %1559 }
0x18a5   :  { %v1652_v40 = vsel %vm77_vm2, %v1651_v31, %v1648_v29  ;;  %v1563_v16 = vsel %vm75_vm1, %v1562_v8, %v1560_v51 }
0x18a6   :  { %v1656_v14 = vrot.slane %v1652_v40, %v2008_v49  ;;  %v1564_v10 = vsel %vm77_vm2, %v1563_v16, %v2745_v11 }
0x18a7   :  { %v1662_v42 = vrot.slane %v1564_v10, %v1934_v3  ;;  %v1668_v23 = vrot.slane %v1564_v10, %v1992_v36  ;;  %v1674_v30 = vrot.slane %v1564_v10, %v2002_v45  ;;  %v1680_v50 = vrot.slane %v1564_v10, %v2008_v49 }
0x18a8   :  { %v1657_v43 = vmul.f32 %v2506_v20, %v1656_v14  ;;  %v1686_v53 = vrot.slane %v1564_v10, %v2013_v52 }
0x18a9   :  { %v1663_v44 = vmul.f32 %v2513_v39, %v1662_v42  ;;  %v1669_v46 = vmul.f32 %v2526_v17, %v1668_v23  ;;  %v1675_v11 = vmul.f32 %v2533_v47, %v1674_v30  ;;  %v1681_v20 = vmul.f32 %v2540_v54, %v1680_v50 }
0x18aa   :  { %v1658_v37 = vadd.f32 %v2519_v62, %v1657_v43  ;;  %v1687_v39 = vmul.f32 %v2546_v28, %v1686_v53 }
0x18ac   :  { %v1664_v61 = vadd.f32 %v1663_v44, %v1658_v37 }
0x18ae   :  { %v1670_v32 = vadd.f32 %v1669_v46, %v1664_v61 }
0x18b0   :  { %v1676_v41 = vadd.f32 %v1675_v11, %v1670_v32 }
0x18b2   :  { %v1682_v25 = vadd.f32 %v1681_v20, %v1676_v41 }
0x18b4   :  { %v1688_v2 = vadd.f32 %v1687_v39, %v1682_v25 }
0x18b6   :  { %1883 = vtanh.f32 %v1688_v2 }
0x18c0   :  { %v1884_v62 = vpop.eup %1883 }
0x18c1   :  { %1693 = vrot.lane.b32.xlu1 %v1884_v62, %s1905_s24  ;;  %v1690_v9 = vadd.f32 1.0, %v1884_v62 }
0x18c3   :  { %v1691_v47 = vmul.f32 %v1690_v9, %v2741_v26 }
0x1933   :  { %v1694_v17 = vpop.permute.xlu1 %1693 }
0x1934   :  { %v1696_v34 = vmul.f32 %v1694_v17, %v1690_v9 }
0x1936   :  { %1698 = vrot.lane.b32.xlu0 %v1696_v34, %s1906_s25 }
0x19a8   :  { %v1699_v56 = vpop.permute.xlu0 %1698 }
0x19a9   :  { %v1701_v4 = vadd.f32 %v1699_v56, %v1691_v47 }
0x19ab   :  { %v1702_v57 = vmul.f32 0.5, %v1701_v4 }
0x19ad   :  { %1885 = vtanh.f32 %v1702_v57 }
0x19b7   :  { %v1886_v54 = vpop.eup %1885 }
0x19b8   :  { %1705 = vrot.lane.b32.xlu1 %v1886_v54, %s1907_s26 }
0x1a2a   :  { %v1706_v28 = vpop.permute.xlu1 %1705 }
0x1a2b   :  { %v1708_v58 = vmul.f32 %v1706_v28, %v1690_v9 }
0x1a2d   :  { %v1709_v22 = vmul.f32 0.5, %v1708_v58 }
0x1a2f   :  { %v1729_v59 = vrot.slane %v1709_v22, %v1992_v36  ;;  %v1719_v63 = vrot.slane %v1709_v22, %v1934_v3  ;;  %v1749_v26 = vrot.slane %v1709_v22, %v2008_v49  ;;  %v1739_v33 = vrot.slane %v1709_v22, %v2002_v45 }
0x1a30   :  { %v1759_v12 = vrot.slane %v1709_v22, %v2013_v52  ;;  %v1713_v36 = vrot.slane %v2779_v5, %v2008_v49 }
0x1a31   :  { %1731 = vrot.lane.b32.xlu1 %v1729_v59, %s1908_s27  ;;  %1721 = vrot.lane.b32.xlu0 %v1719_v63, %s1908_s27 }
0x1a32   :  { %v1714_v3 = vmul.f32 %v2659_v38, %v1713_v36 }
0x1a34   :  { %v1715_v48 = vadd.f32 %v2665_v1, %v1714_v3 }
0x1a35   :  { %1751 = vrot.lane.b32.xlu1 %v1749_v26, %s1908_s27  ;;  %1741 = vrot.lane.b32.xlu0 %v1739_v33, %s1908_s27 }
0x1a39   :  { %1761 = vrot.lane.b32.xlu0 %v1759_v12, %s1908_s27 }
0x1aa3   :  { %v1732_v0 = vpop.permute.xlu1 %1731  ;;  %v1722_v18 = vpop.permute.xlu0 %1721 }
0x1aa4   :  { %v1724_v27 = vmul.f32 %v2671_v15, %v1722_v18  ;;  %v1734_v45 = vmul.f32 %v2677_v55, %v1732_v0 }
0x1aa6   :  { %v1725_v19 = vadd.f32 %v1724_v27, %v1715_v48 }
0x1aa7   :  { %v1752_v7 = vpop.permute.xlu1 %1751  ;;  %v1742_v35 = vpop.permute.xlu0 %1741 }
0x1aa8   :  { %v1735_v24 = vadd.f32 %v1734_v45, %v1725_v19  ;;  %v1744_v52 = vmul.f32 %v2683_v60, %v1742_v35  ;;  %v1754_v8 = vmul.f32 %v2689_v6, %v1752_v7 }
0x1aaa   :  { %v1745_v31 = vadd.f32 %v1744_v52, %v1735_v24 }
0x1aab   :  { %v1762_v49 = vpop.permute.xlu0 %1761 }
0x1aac   :  { %v1755_v5 = vadd.f32 %v1754_v8, %v1745_v31  ;;  %v1764_v38 = vmul.f32 %v2695_v21, %v1762_v49 }
0x1aae   :  { %v1765_v29 = vadd.f32 %v1764_v38, %v1755_v5 }
0x1ab0   :  { %1887 = vtanh.f32 %v1765_v29 }
0x1aba   :  { %v1888_v1 = vpop.eup %1887 }
0x1abb   :  { %v1767_v51 = vadd.f32 1.0, %v1888_v1  ;;  %v1770_v15 = vrot.slane %v1888_v1, 2 }
0x1abd   :  { %v1772_v40 = vmul.f32 %v1770_v15, %v1767_v51  ;;  %v1768_v55 = vmul.f32 %v1767_v51, %v2776_v13 }
0x1abf   :  { %v1774_v16 = vrot.slane %v1772_v40, 7 }
0x1ac1   :  { %v1776_v14 = vadd.f32 %v1774_v16, %v1768_v55 }
0x1ac3   :  { %v1777_v10 = vmul.f32 0.5, %v1776_v14 }
0x1ac5   :  { %1889 = vtanh.f32 %v1777_v10 }
0x1acf   :  { %v1890_v60 = vpop.eup %1889 }
0x1ad0   :  { %v1780_v42 = vrot.slane %v1890_v60, 6 }
0x1ad2   :  { %v1782_v6 = vmul.f32 %v1780_v42, %v1767_v51 }
0x1ad4   :  { %v1783_v43 = vmul.f32 0.5, %v1782_v6 }
0x1ad6   :  { %1784 = vst.msk [vmem:[%s2845_s2 + $0x8] sm:$0x8] %vm149_vm3, %v1783_v43 }

</bundles_post_ra>
